<compile_context>
chip_gen: v7x
topology: tpu7x:2x2x1
jax: 0.10.0
libtpu: 0.0.40
codegen_flags: <defaults>
</compile_context>

<pallas_src>
import math
from functools import partial

import jax
import jax.numpy as jnp
from jax.experimental import pallas as pl
from jax.experimental.pallas import tpu as pltpu

LN_EPS = 1e-5  # PyTorch nn.LayerNorm default


def _layernorm(v, w, b):
    # f32 elementwise path (keep even when matmul operands are bf16).
    mu = jnp.mean(v, axis=-1, keepdims=True)
    var = jnp.mean((v - mu) ** 2, axis=-1, keepdims=True)
    return (v - mu) * jax.lax.rsqrt(var + LN_EPS) * w + b


# ----------------------------------------------------------------------------
# Fused kernel: all transformer layers + final LayerNorm + lm_head in one call.
# Each grid step processes block_b batch elements with batch folded into rows.
# ----------------------------------------------------------------------------
def _fused_model_kernel(num_heads, approx_gelu,
                        x_ref, bias_ref,
                        ln1w_ref, ln1b_ref, wqkv_ref, bqkv_ref, wo_ref, bo_ref,
                        ln2w_ref, ln2b_ref, w1_ref, b1_ref, w2_ref, b2_ref,
                        normw_ref, normb_ref, lmw_ref,
                        out_ref):
    R, D = x_ref.shape                      # R = block_b * S rows (batch folded in)
    block_b, S, _ = bias_ref.shape
    L = wqkv_ref.shape[0]
    H = num_heads
    Dh = D // H
    BH = H * block_b
    scale = 1.0 / math.sqrt(Dh)
    mm_dtype = wqkv_ref.dtype               # bf16: native MXU operand dtype

    # Combined (causal + key-padding) additive bias, broadcast over heads ONCE.
    # Head-major ordering matches split_heads() below.
    bias = bias_ref[...]                                             # (block_b,S,S) f32
    bias_bh = jnp.broadcast_to(bias[None], (H, block_b, S, S)).reshape(BH, S, S)

    def split_heads(t):
        # (R, H*Dsub) -> (H*block_b, S, Dsub): head-major batched layout so ONE
        # batched matmul covers all heads/batch elements (no per-head Python dots).
        dsub = t.shape[-1] // H
        t3 = t.reshape(block_b, S, H * dsub)
        return jnp.concatenate(
            [t3[:, :, h * dsub:(h + 1) * dsub] for h in range(H)], axis=0)

    def layer_body(l, x):
        # ---- pre-LN multi-head self-attention + residual (dropout = identity) ----
        nx = _layernorm(x, ln1w_ref[l], ln1b_ref[l])
        qkv = jnp.dot(nx.astype(mm_dtype), wqkv_ref[l],
                      preferred_element_type=jnp.float32) + bqkv_ref[l]   # (R,3D) f32
        q = split_heads(qkv[:, :D].astype(mm_dtype))                      # (BH,S,Dh)
        k = split_heads(qkv[:, D:2 * D].astype(mm_dtype))
        v = split_heads(qkv[:, 2 * D:].astype(mm_dtype))

        # Head-batched scores; softmax stays f32.  Exact divide (not approx
        # reciprocal) so results track the PyTorch reference closely.
        s = jnp.einsum('bqd,bkd->bqk', q, k,
                       preferred_element_type=jnp.float32) * scale + bias_bh
        # NOTE: a fully key-padded query row gets a uniform softmax here instead of
        # PyTorch's NaN; harmless since padded positions are discarded downstream.
        s = s - jnp.max(s, axis=-1, keepdims=True)
        p = jnp.exp(s)
        p = p / jnp.sum(p, axis=-1, keepdims=True)
        o = jnp.einsum('bqk,bkd->bqd', p.astype(mm_dtype), v,
                       preferred_element_type=jnp.float32)                # (BH,S,Dh)

        # Merge heads back onto lanes; ONE (R,D)@(D,D) out-projection matmul.
        o4 = o.reshape(H, block_b, S, Dh)
        merged = jnp.concatenate([o4[h].reshape(R, Dh) for h in range(H)], axis=1)
        attn = jnp.dot(merged.astype(mm_dtype), wo_ref[l],
                       preferred_element_type=jnp.float32) + bo_ref[l]
        x = x + attn

        # ---- pre-LN feed-forward + residual ----
        nx2 = _layernorm(x, ln2w_ref[l], ln2b_ref[l])
        h1 = jnp.dot(nx2.astype(mm_dtype), w1_ref[l],
                     preferred_element_type=jnp.float32) + b1_ref[l]
        h1 = jax.nn.gelu(h1, approximate=approx_gelu)   # tanh form -> EUP slot
        ff = jnp.dot(h1.astype(mm_dtype), w2_ref[l],
                     preferred_element_type=jnp.float32) + b2_ref[l]
        return x + ff

    # fori_loop bounds live ranges at large L; fully unrolled only for small L.
    x = jax.lax.fori_loop(0, L, layer_body, x_ref[...], unroll=(L <= 4))

    # ---- final LayerNorm + lm_head (vocab lane-padded to a multiple of 128) ----
    nxf = _layernorm(x, normw_ref[...], normb_ref[...])
    out_ref[...] = jnp.dot(nxf.astype(mm_dtype), lmw_ref[...],
                           preferred_element_type=jnp.float32).astype(out_ref.dtype)


# ----------------------------------------------------------------------------
# Wrapper
# ----------------------------------------------------------------------------
def forward(params, input_ids, num_heads, max_seq_len, attention_mask=None,
            matmul_dtype=jnp.bfloat16, approx_gelu=True):
    B, S = input_ids.shape
    D = params['token_emb'].shape[1]
    V = params['lm_head_w'].shape[1]
    assert D % num_heads == 0

    # ---- glue (embedding gathers) in plain JAX ----
    tok = jnp.take(params['token_emb'], input_ids, axis=0)            # (B, S, D)
    pos_ids = jnp.clip(jnp.arange(S), 0, max_seq_len - 1)              # matches torch.clamp
    pos = jnp.take(params['pos_emb'], pos_ids, axis=0)[None]           # (1, S, D)
    x = (tok + pos).astype(jnp.float32).reshape(B * S, D)              # batch folded into rows

    # Combined causal + key-padding additive bias, built once in JAX (f32).
    neg = jnp.float32(-1e30)
    ar = jnp.arange(S)
    causal = jnp.where(ar[None, :] > ar[:, None], neg, jnp.float32(0.0))   # (S, S)
    if attention_mask is None:
        keypad = jnp.zeros((B, 1, S), jnp.float32)
    else:
        keypad = jnp.where(attention_mask.astype(bool),
                           jnp.float32(0.0), neg)[:, None, :]
    attn_bias = (causal[None, :, :] + keypad).astype(jnp.float32)          # (B, S, S)

    # Lane-dense logits: pad vocab up to a multiple of 128; slice the pad off after.
    Vp = ((V + 127) // 128) * 128
    lm_w = params['lm_head_w']
    if Vp != V:
        lm_w = jnp.pad(lm_w, ((0, 0), (0, Vp - V)))

    # Split the batch across TensorCores only when each core still gets a large-M
    # matmul (>=256 rows); otherwise NB=1 (v5e/v6e have 1 TC and small M starves
    # the MXU anyway).
    NB = 1
    if B % 2 == 0 and (B // 2) * S >= 256 and ((B // 2) * S) % 8 == 0:
        NB = 2
    block_b = B // NB
    Rb = block_b * S

    # Matmul weights as bf16 MXU operands; biases / LN params stay f32 and are
    # reshaped so a dynamic layer index yields a broadcastable (1, features) row.
    mm = lambda w: w.astype(matmul_dtype)
    f32 = lambda w: w.astype(jnp.float32)
    weights = [
        f32(params['ln1_w'])[:, None, :], f32(params['ln1_b'])[:, None, :],
        mm(params['wqkv']),               f32(params['bqkv'])[:, None, :],
        mm(params['wo']),                 f32(params['bo'])[:, None, :],
        f32(params['ln2_w'])[:, None, :], f32(params['ln2_b'])[:, None, :],
        mm(params['w1']),                 f32(params['b1'])[:, None, :],
        mm(params['w2']),                 f32(params['b2'])[:, None, :],
        f32(params['norm_w'])[None, :],   f32(params['norm_b'])[None, :],
        mm(lm_w),
    ]

    # Emit bf16 logits at real vocab sizes (halves the dominant HBM writeback).
    logits_dtype = jnp.bfloat16 if Vp >= 4096 else jnp.float32

    # VMEM budget: resident weights + activation/bias/output blocks, with headroom.
    resident = sum(int(w.size) * w.dtype.itemsize for w in weights)
    resident += Rb * D * 4 + block_b * S * S * 4 + Rb * Vp * 4
    vmem_limit = int(min(128 * 2 ** 20, max(32 * 2 ** 20, 3 * resident)))

    def build_in_specs(single_buffer):
        wspecs = []
        for w in weights:
            nd = w.ndim
            idx = lambda i, _nd=nd: (0,) * _nd
            if single_buffer:
                # Block index never changes across the grid -> single buffer.
                wspecs.append(pl.BlockSpec(w.shape, idx,
                                           pipeline_mode=pl.Buffered(1)))
            else:
                wspecs.append(pl.BlockSpec(w.shape, idx))
        return [pl.BlockSpec((Rb, D), lambda i: (i, 0)),
                pl.BlockSpec((block_b, S, S), lambda i: (i, 0, 0))] + wspecs

    def run(single_buffer):
        return pl.pallas_call(
            partial(_fused_model_kernel, num_heads, approx_gelu),
            out_shape=jax.ShapeDtypeStruct((B * S, Vp), logits_dtype),
            grid=(NB,),
            in_specs=build_in_specs(single_buffer),
            out_specs=pl.BlockSpec((Rb, Vp), lambda i: (i, 0)),
            compiler_params=pltpu.CompilerParams(
                dimension_semantics=("parallel",),
                vmem_limit_bytes=vmem_limit),
        )(x, attn_bias, *weights)

    try:
        out = run(single_buffer=True)
    except Exception:
        # Compatibility fallback if this JAX build rejects pl.Buffered(1) on the
        # top-level pallas_call pipeline; identical math, default double-buffering.
        out = run(single_buffer=False)

    logits = out[:, :V].reshape(B, S, V)
    # TODO(synk): CrossEntropyLoss (labels path) and autoregressive generate() are not kernelized.
    return {'logits': logits}


# ----------------------------------------------------------------------------
# Parameter init (deterministic; std=0.02 normal for weights/embeddings, zero bias,
# LayerNorm weight=1 / bias=0). Per-layer weights are stored stacked along axis 0.
# ----------------------------------------------------------------------------
def init_params(key, vocab_size, d_model, num_layers, max_seq_len):
    keys = iter(jax.random.split(key, 8))

    def normal(shape):
        return 0.02 * jax.random.normal(next(keys), shape, jnp.float32)

    L, D = num_layers, d_model
    return {
        'token_emb': normal((vocab_size, D)),
        'pos_emb': normal((max_seq_len, D)),
        'ln1_w': jnp.ones((L, D), jnp.float32), 'ln1_b': jnp.zeros((L, D), jnp.float32),
        'wqkv': normal((L, D, 3 * D)), 'bqkv': jnp.zeros((L, 3 * D), jnp.float32),
        'wo': normal((L, D, D)), 'bo': jnp.zeros((L, D), jnp.float32),
        'ln2_w': jnp.ones((L, D), jnp.float32), 'ln2_b': jnp.zeros((L, D), jnp.float32),
        'w1': normal((L, D, 4 * D)), 'b1': jnp.zeros((L, 4 * D), jnp.float32),
        'w2': normal((L, 4 * D, D)), 'b2': jnp.zeros((L, D), jnp.float32),
        'norm_w': jnp.ones((D,), jnp.float32), 'norm_b': jnp.zeros((D,), jnp.float32),
        'lm_head_w': normal((D, vocab_size)),   # lm_head has no bias
    }


if __name__ == "__main__":
    vocab_size = 64
    d_model = 32
    num_layers = 2
    num_heads = 4
    max_seq_len = 16
    batch, seq = 2, 8

    key = jax.random.PRNGKey(0)
    k_param, k_ids = jax.random.split(key)
    params = init_params(k_param, vocab_size, d_model, num_layers, max_seq_len)

    input_ids = jax.random.randint(k_ids, (batch, seq), 0, vocab_size, dtype=jnp.int32)
    attention_mask = jnp.ones((batch, seq), dtype=jnp.int32)

    out = forward(params, input_ids, num_heads, max_seq_len, attention_mask)
    logits = jax.block_until_ready(out['logits'])
    assert logits.shape == (batch, seq, vocab_size)
    assert bool(jnp.all(jnp.isfinite(logits)))
    print("KERNEL_OK")
</pallas_src>

<mosaic_0001>
module attributes {stable_mosaic.version = 11 : i64} {
  func.func @_fused_model_kernel(%arg0: i32, %arg1: memref<16x32xf32, #tpu.memory_space<vmem>>, %arg2: memref<2x8x8xf32, #tpu.memory_space<vmem>>, %arg3: memref<2x1x32xf32, #tpu.memory_space<vmem>>, %arg4: memref<2x1x32xf32, #tpu.memory_space<vmem>>, %arg5: memref<2x32x96xbf16, #tpu.memory_space<vmem>>, %arg6: memref<2x1x96xf32, #tpu.memory_space<vmem>>, %arg7: memref<2x32x32xbf16, #tpu.memory_space<vmem>>, %arg8: memref<2x1x32xf32, #tpu.memory_space<vmem>>, %arg9: memref<2x1x32xf32, #tpu.memory_space<vmem>>, %arg10: memref<2x1x32xf32, #tpu.memory_space<vmem>>, %arg11: memref<2x32x128xbf16, #tpu.memory_space<vmem>>, %arg12: memref<2x1x128xf32, #tpu.memory_space<vmem>>, %arg13: memref<2x128x32xbf16, #tpu.memory_space<vmem>>, %arg14: memref<2x1x32xf32, #tpu.memory_space<vmem>>, %arg15: memref<1x32xf32, #tpu.memory_space<vmem>>, %arg16: memref<1x32xf32, #tpu.memory_space<vmem>>, %arg17: memref<32x128xbf16, #tpu.memory_space<vmem>>, %arg18: memref<16x128xf32, #tpu.memory_space<vmem>>) attributes {dimension_semantics = [#tpu.dimension_semantics<parallel>], iteration_bounds = array<i64: 1>, scalar_prefetch = 0 : i64, scratch_operands = 0 : i64, tpu.core_type = #tpu.core_type<tc>, window_params = [{transform_indices = @transform_0, window_bounds = array<i64: 16, 32>}, {transform_indices = @transform_1, window_bounds = array<i64: 2, 8, 8>}, {pipeline_mode = #tpu.pipeline_mode<synchronous>, transform_indices = @transform_2, window_bounds = array<i64: 2, 1, 32>}, {pipeline_mode = #tpu.pipeline_mode<synchronous>, transform_indices = @transform_3, window_bounds = array<i64: 2, 1, 32>}, {pipeline_mode = #tpu.pipeline_mode<synchronous>, transform_indices = @transform_4, window_bounds = array<i64: 2, 32, 96>}, {pipeline_mode = #tpu.pipeline_mode<synchronous>, transform_indices = @transform_5, window_bounds = array<i64: 2, 1, 96>}, {pipeline_mode = #tpu.pipeline_mode<synchronous>, transform_indices = @transform_6, window_bounds = array<i64: 2, 32, 32>}, {pipeline_mode = #tpu.pipeline_mode<synchronous>, transform_indices = @transform_7, window_bounds = array<i64: 2, 1, 32>}, {pipeline_mode = #tpu.pipeline_mode<synchronous>, transform_indices = @transform_8, window_bounds = array<i64: 2, 1, 32>}, {pipeline_mode = #tpu.pipeline_mode<synchronous>, transform_indices = @transform_9, window_bounds = array<i64: 2, 1, 32>}, {pipeline_mode = #tpu.pipeline_mode<synchronous>, transform_indices = @transform_10, window_bounds = array<i64: 2, 32, 128>}, {pipeline_mode = #tpu.pipeline_mode<synchronous>, transform_indices = @transform_11, window_bounds = array<i64: 2, 1, 128>}, {pipeline_mode = #tpu.pipeline_mode<synchronous>, transform_indices = @transform_12, window_bounds = array<i64: 2, 128, 32>}, {pipeline_mode = #tpu.pipeline_mode<synchronous>, transform_indices = @transform_13, window_bounds = array<i64: 2, 1, 32>}, {pipeline_mode = #tpu.pipeline_mode<synchronous>, transform_indices = @transform_14, window_bounds = array<i64: 1, 32>}, {pipeline_mode = #tpu.pipeline_mode<synchronous>, transform_indices = @transform_15, window_bounds = array<i64: 1, 32>}, {pipeline_mode = #tpu.pipeline_mode<synchronous>, transform_indices = @transform_16, window_bounds = array<i64: 32, 128>}, {transform_indices = @transform_17, window_bounds = array<i64: 16, 128>}]} {
    %c0 = arith.constant 0 : index
    %c0_0 = arith.constant 0 : index
    %c0_1 = arith.constant 0 : index
    %0 = vector.load %arg2[%c0, %c0_0, %c0_1] : memref<2x8x8xf32, #tpu.memory_space<vmem>>, vector<2x8x8xf32>
    %1 = vector.shape_cast %0 : vector<2x8x8xf32> to vector<1x2x8x8xf32>
    %2 = vector.shape_cast %1 : vector<1x2x8x8xf32> to vector<1x2x8x8xf32>
    %3 = vector.broadcast %2 : vector<1x2x8x8xf32> to vector<4x2x8x8xf32>
    %4 = vector.shape_cast %3 : vector<4x2x8x8xf32> to vector<8x8x8xf32>
    %c0_2 = arith.constant 0 : index
    %c0_3 = arith.constant 0 : index
    %5 = vector.load %arg1[%c0_2, %c0_3] : memref<16x32xf32, #tpu.memory_space<vmem>>, vector<16x32xf32>
    %c0_i32 = arith.constant 0 : i32
    %6 = arith.index_cast %c0_i32 : i32 to index
    %c0_4 = arith.constant 0 : index
    %c0_5 = arith.constant 0 : index
    %7 = vector.load %arg3[%6, %c0_4, %c0_5] : memref<2x1x32xf32, #tpu.memory_space<vmem>>, vector<1x1x32xf32>
    %8 = vector.shape_cast %7 : vector<1x1x32xf32> to vector<1x32xf32>
    %9 = arith.index_cast %c0_i32 : i32 to index
    %c0_6 = arith.constant 0 : index
    %c0_7 = arith.constant 0 : index
    %10 = vector.load %arg4[%9, %c0_6, %c0_7] : memref<2x1x32xf32, #tpu.memory_space<vmem>>, vector<1x1x32xf32>
    %11 = vector.shape_cast %10 : vector<1x1x32xf32> to vector<1x32xf32>
    %cst = arith.constant dense<0.000000e+00> : vector<16xf32>
    %12 = vector.multi_reduction <add>, %5, %cst [1] : vector<16x32xf32> to vector<16xf32>
    %13 = vector.shape_cast %12 : vector<16xf32> to vector<16x1xf32>
    %cst_8 = arith.constant 3.200000e+01 : f32
    %14 = vector.broadcast %cst_8 : f32 to vector<16x1xf32>
    %15 = arith.divf %13, %14 : vector<16x1xf32>
    %16 = vector.broadcast %15 : vector<16x1xf32> to vector<16x32xf32>
    %17 = arith.subf %5, %16 : vector<16x32xf32>
    %18 = arith.mulf %17, %17 : vector<16x32xf32>
    %cst_9 = arith.constant dense<0.000000e+00> : vector<16xf32>
    %19 = vector.multi_reduction <add>, %18, %cst_9 [1] : vector<16x32xf32> to vector<16xf32>
    %20 = vector.shape_cast %19 : vector<16xf32> to vector<16x1xf32>
    %cst_10 = arith.constant 3.200000e+01 : f32
    %21 = vector.broadcast %cst_10 : f32 to vector<16x1xf32>
    %22 = arith.divf %20, %21 : vector<16x1xf32>
    %23 = vector.broadcast %15 : vector<16x1xf32> to vector<16x32xf32>
    %24 = arith.subf %5, %23 : vector<16x32xf32>
    %cst_11 = arith.constant 9.99999974E-6 : f32
    %25 = vector.broadcast %cst_11 : f32 to vector<16x1xf32>
    %26 = arith.addf %22, %25 : vector<16x1xf32>
    %27 = math.rsqrt %26 : vector<16x1xf32>
    %28 = vector.broadcast %27 : vector<16x1xf32> to vector<16x32xf32>
    %29 = arith.mulf %24, %28 : vector<16x32xf32>
    %30 = vector.broadcast %8 : vector<1x32xf32> to vector<16x32xf32>
    %31 = arith.mulf %29, %30 : vector<16x32xf32>
    %32 = vector.broadcast %11 : vector<1x32xf32> to vector<16x32xf32>
    %33 = arith.addf %31, %32 : vector<16x32xf32>
    %34 = arith.truncf %33 : vector<16x32xf32> to vector<16x32xbf16>
    %35 = arith.index_cast %c0_i32 : i32 to index
    %c0_12 = arith.constant 0 : index
    %c0_13 = arith.constant 0 : index
    %36 = vector.load %arg5[%35, %c0_12, %c0_13] : memref<2x32x96xbf16, #tpu.memory_space<vmem>>, vector<1x32x96xbf16>
    %37 = vector.shape_cast %36 : vector<1x32x96xbf16> to vector<32x96xbf16>
    %cst_14 = arith.constant dense<0.000000e+00> : vector<16x96xf32>
    %38 = tpu.matmul %34, %37, %cst_14 {dimension_numbers = #tpu.dot_dimension_numbers<[1], [0], [0], [1], [0, 0, 1, 1], [], []>} : vector<16x32xbf16>, vector<32x96xbf16>, vector<16x96xf32> -> vector<16x96xf32>
    %39 = arith.index_cast %c0_i32 : i32 to index
    %c0_15 = arith.constant 0 : index
    %c0_16 = arith.constant 0 : index
    %40 = vector.load %arg6[%39, %c0_15, %c0_16] : memref<2x1x96xf32, #tpu.memory_space<vmem>>, vector<1x1x96xf32>
    %41 = vector.shape_cast %40 : vector<1x1x96xf32> to vector<1x96xf32>
    %42 = vector.broadcast %41 : vector<1x96xf32> to vector<16x96xf32>
    %43 = arith.addf %38, %42 : vector<16x96xf32>
    %44 = vector.extract_strided_slice %43 {offsets = [0, 0], sizes = [16, 32], strides = [1, 1]} : vector<16x96xf32> to vector<16x32xf32>
    %45 = arith.truncf %44 : vector<16x32xf32> to vector<16x32xbf16>
    %46 = vector.shape_cast %45 : vector<16x32xbf16> to vector<2x8x32xbf16>
    %47 = vector.extract_strided_slice %46 {offsets = [0, 0, 0], sizes = [2, 8, 8], strides = [1, 1, 1]} : vector<2x8x32xbf16> to vector<2x8x8xbf16>
    %48 = vector.extract_strided_slice %46 {offsets = [0, 0, 8], sizes = [2, 8, 8], strides = [1, 1, 1]} : vector<2x8x32xbf16> to vector<2x8x8xbf16>
    %49 = vector.extract_strided_slice %46 {offsets = [0, 0, 16], sizes = [2, 8, 8], strides = [1, 1, 1]} : vector<2x8x32xbf16> to vector<2x8x8xbf16>
    %50 = vector.extract_strided_slice %46 {offsets = [0, 0, 24], sizes = [2, 8, 8], strides = [1, 1, 1]} : vector<2x8x32xbf16> to vector<2x8x8xbf16>
    %51 = tpu.concatenate %47, %48, %49, %50 in 0 : vector<2x8x8xbf16>, vector<2x8x8xbf16>, vector<2x8x8xbf16>, vector<2x8x8xbf16> -> vector<8x8x8xbf16>
    %52 = vector.extract_strided_slice %43 {offsets = [0, 32], sizes = [16, 32], strides = [1, 1]} : vector<16x96xf32> to vector<16x32xf32>
    %53 = arith.truncf %52 : vector<16x32xf32> to vector<16x32xbf16>
    %54 = vector.shape_cast %53 : vector<16x32xbf16> to vector<2x8x32xbf16>
    %55 = vector.extract_strided_slice %54 {offsets = [0, 0, 0], sizes = [2, 8, 8], strides = [1, 1, 1]} : vector<2x8x32xbf16> to vector<2x8x8xbf16>
    %56 = vector.extract_strided_slice %54 {offsets = [0, 0, 8], sizes = [2, 8, 8], strides = [1, 1, 1]} : vector<2x8x32xbf16> to vector<2x8x8xbf16>
    %57 = vector.extract_strided_slice %54 {offsets = [0, 0, 16], sizes = [2, 8, 8], strides = [1, 1, 1]} : vector<2x8x32xbf16> to vector<2x8x8xbf16>
    %58 = vector.extract_strided_slice %54 {offsets = [0, 0, 24], sizes = [2, 8, 8], strides = [1, 1, 1]} : vector<2x8x32xbf16> to vector<2x8x8xbf16>
    %59 = tpu.concatenate %55, %56, %57, %58 in 0 : vector<2x8x8xbf16>, vector<2x8x8xbf16>, vector<2x8x8xbf16>, vector<2x8x8xbf16> -> vector<8x8x8xbf16>
    %60 = vector.extract_strided_slice %43 {offsets = [0, 64], sizes = [16, 32], strides = [1, 1]} : vector<16x96xf32> to vector<16x32xf32>
    %61 = arith.truncf %60 : vector<16x32xf32> to vector<16x32xbf16>
    %62 = vector.shape_cast %61 : vector<16x32xbf16> to vector<2x8x32xbf16>
    %63 = vector.extract_strided_slice %62 {offsets = [0, 0, 0], sizes = [2, 8, 8], strides = [1, 1, 1]} : vector<2x8x32xbf16> to vector<2x8x8xbf16>
    %64 = vector.extract_strided_slice %62 {offsets = [0, 0, 8], sizes = [2, 8, 8], strides = [1, 1, 1]} : vector<2x8x32xbf16> to vector<2x8x8xbf16>
    %65 = vector.extract_strided_slice %62 {offsets = [0, 0, 16], sizes = [2, 8, 8], strides = [1, 1, 1]} : vector<2x8x32xbf16> to vector<2x8x8xbf16>
    %66 = vector.extract_strided_slice %62 {offsets = [0, 0, 24], sizes = [2, 8, 8], strides = [1, 1, 1]} : vector<2x8x32xbf16> to vector<2x8x8xbf16>
    %67 = tpu.concatenate %63, %64, %65, %66 in 0 : vector<2x8x8xbf16>, vector<2x8x8xbf16>, vector<2x8x8xbf16>, vector<2x8x8xbf16> -> vector<8x8x8xbf16>
    "tpu.trace_start"() <{level = 10 : i32, message = "bqd,bkd->bqk"}> : () -> ()
    %cst_17 = arith.constant dense<0.000000e+00> : vector<8x8x8xf32>
    %68 = tpu.matmul %51, %59, %cst_17 {dimension_numbers = #tpu.dot_dimension_numbers<[2], [2], [1], [1], [0, 0, 0, 1, 1, 1], [0], [0]>} : vector<8x8x8xbf16>, vector<8x8x8xbf16>, vector<8x8x8xf32> -> vector<8x8x8xf32>
    "tpu.trace_stop"() : () -> ()
    %cst_18 = arith.constant 0.353553385 : f32
    %69 = vector.broadcast %cst_18 : f32 to vector<8x8x8xf32>
    %70 = arith.mulf %68, %69 : vector<8x8x8xf32>
    %71 = arith.addf %70, %4 : vector<8x8x8xf32>
    %cst_19 = arith.constant dense<0xFF800000> : vector<8x8xf32>
    %72 = vector.multi_reduction <maximumf>, %71, %cst_19 [2] : vector<8x8x8xf32> to vector<8x8xf32>
    %73 = vector.shape_cast %72 : vector<8x8xf32> to vector<8x8x1xf32>
    %74 = vector.broadcast %73 : vector<8x8x1xf32> to vector<8x8x8xf32>
    %75 = arith.subf %71, %74 : vector<8x8x8xf32>
    %76 = math.exp %75 : vector<8x8x8xf32>
    %cst_20 = arith.constant dense<0.000000e+00> : vector<8x8xf32>
    %77 = vector.multi_reduction <add>, %76, %cst_20 [2] : vector<8x8x8xf32> to vector<8x8xf32>
    %78 = vector.shape_cast %77 : vector<8x8xf32> to vector<8x8x1xf32>
    %79 = vector.broadcast %78 : vector<8x8x1xf32> to vector<8x8x8xf32>
    %80 = arith.divf %76, %79 : vector<8x8x8xf32>
    %81 = arith.truncf %80 : vector<8x8x8xf32> to vector<8x8x8xbf16>
    "tpu.trace_start"() <{level = 10 : i32, message = "bqk,bkd->bqd"}> : () -> ()
    %cst_21 = arith.constant dense<0.000000e+00> : vector<8x8x8xf32>
    %82 = tpu.matmul %81, %67, %cst_21 {dimension_numbers = #tpu.dot_dimension_numbers<[2], [1], [1], [2], [0, 0, 0, 1, 1, 2], [0], [0]>} : vector<8x8x8xbf16>, vector<8x8x8xbf16>, vector<8x8x8xf32> -> vector<8x8x8xf32>
    "tpu.trace_stop"() : () -> ()
    %83 = vector.shape_cast %82 : vector<8x8x8xf32> to vector<4x2x8x8xf32>
    %84 = vector.extract_strided_slice %83 {offsets = [0, 0, 0, 0], sizes = [1, 2, 8, 8], strides = [1, 1, 1, 1]} : vector<4x2x8x8xf32> to vector<1x2x8x8xf32>
    %85 = vector.shape_cast %84 : vector<1x2x8x8xf32> to vector<2x8x8xf32>
    %86 = vector.shape_cast %85 : vector<2x8x8xf32> to vector<16x8xf32>
    %87 = vector.extract_strided_slice %83 {offsets = [1, 0, 0, 0], sizes = [1, 2, 8, 8], strides = [1, 1, 1, 1]} : vector<4x2x8x8xf32> to vector<1x2x8x8xf32>
    %88 = vector.shape_cast %87 : vector<1x2x8x8xf32> to vector<2x8x8xf32>
    %89 = vector.shape_cast %88 : vector<2x8x8xf32> to vector<16x8xf32>
    %90 = vector.extract_strided_slice %83 {offsets = [2, 0, 0, 0], sizes = [1, 2, 8, 8], strides = [1, 1, 1, 1]} : vector<4x2x8x8xf32> to vector<1x2x8x8xf32>
    %91 = vector.shape_cast %90 : vector<1x2x8x8xf32> to vector<2x8x8xf32>
    %92 = vector.shape_cast %91 : vector<2x8x8xf32> to vector<16x8xf32>
    %93 = vector.extract_strided_slice %83 {offsets = [3, 0, 0, 0], sizes = [1, 2, 8, 8], strides = [1, 1, 1, 1]} : vector<4x2x8x8xf32> to vector<1x2x8x8xf32>
    %94 = vector.shape_cast %93 : vector<1x2x8x8xf32> to vector<2x8x8xf32>
    %95 = vector.shape_cast %94 : vector<2x8x8xf32> to vector<16x8xf32>
    %96 = tpu.concatenate %86, %89, %92, %95 in 1 : vector<16x8xf32>, vector<16x8xf32>, vector<16x8xf32>, vector<16x8xf32> -> vector<16x32xf32>
    %97 = arith.truncf %96 : vector<16x32xf32> to vector<16x32xbf16>
    %98 = arith.index_cast %c0_i32 : i32 to index
    %c0_22 = arith.constant 0 : index
    %c0_23 = arith.constant 0 : index
    %99 = vector.load %arg7[%98, %c0_22, %c0_23] : memref<2x32x32xbf16, #tpu.memory_space<vmem>>, vector<1x32x32xbf16>
    %100 = vector.shape_cast %99 : vector<1x32x32xbf16> to vector<32x32xbf16>
    %cst_24 = arith.constant dense<0.000000e+00> : vector<16x32xf32>
    %101 = tpu.matmul %97, %100, %cst_24 {dimension_numbers = #tpu.dot_dimension_numbers<[1], [0], [0], [1], [0, 0, 1, 1], [], []>} : vector<16x32xbf16>, vector<32x32xbf16>, vector<16x32xf32> -> vector<16x32xf32>
    %102 = arith.index_cast %c0_i32 : i32 to index
    %c0_25 = arith.constant 0 : index
    %c0_26 = arith.constant 0 : index
    %103 = vector.load %arg8[%102, %c0_25, %c0_26] : memref<2x1x32xf32, #tpu.memory_space<vmem>>, vector<1x1x32xf32>
    %104 = vector.shape_cast %103 : vector<1x1x32xf32> to vector<1x32xf32>
    %105 = vector.broadcast %104 : vector<1x32xf32> to vector<16x32xf32>
    %106 = arith.addf %101, %105 : vector<16x32xf32>
    %107 = arith.addf %5, %106 : vector<16x32xf32>
    %108 = arith.index_cast %c0_i32 : i32 to index
    %c0_27 = arith.constant 0 : index
    %c0_28 = arith.constant 0 : index
    %109 = vector.load %arg9[%108, %c0_27, %c0_28] : memref<2x1x32xf32, #tpu.memory_space<vmem>>, vector<1x1x32xf32>
    %110 = vector.shape_cast %109 : vector<1x1x32xf32> to vector<1x32xf32>
    %111 = arith.index_cast %c0_i32 : i32 to index
    %c0_29 = arith.constant 0 : index
    %c0_30 = arith.constant 0 : index
    %112 = vector.load %arg10[%111, %c0_29, %c0_30] : memref<2x1x32xf32, #tpu.memory_space<vmem>>, vector<1x1x32xf32>
    %113 = vector.shape_cast %112 : vector<1x1x32xf32> to vector<1x32xf32>
    %cst_31 = arith.constant dense<0.000000e+00> : vector<16xf32>
    %114 = vector.multi_reduction <add>, %107, %cst_31 [1] : vector<16x32xf32> to vector<16xf32>
    %115 = vector.shape_cast %114 : vector<16xf32> to vector<16x1xf32>
    %cst_32 = arith.constant 3.200000e+01 : f32
    %116 = vector.broadcast %cst_32 : f32 to vector<16x1xf32>
    %117 = arith.divf %115, %116 : vector<16x1xf32>
    %118 = vector.broadcast %117 : vector<16x1xf32> to vector<16x32xf32>
    %119 = arith.subf %107, %118 : vector<16x32xf32>
    %120 = arith.mulf %119, %119 : vector<16x32xf32>
    %cst_33 = arith.constant dense<0.000000e+00> : vector<16xf32>
    %121 = vector.multi_reduction <add>, %120, %cst_33 [1] : vector<16x32xf32> to vector<16xf32>
    %122 = vector.shape_cast %121 : vector<16xf32> to vector<16x1xf32>
    %cst_34 = arith.constant 3.200000e+01 : f32
    %123 = vector.broadcast %cst_34 : f32 to vector<16x1xf32>
    %124 = arith.divf %122, %123 : vector<16x1xf32>
    %125 = vector.broadcast %117 : vector<16x1xf32> to vector<16x32xf32>
    %126 = arith.subf %107, %125 : vector<16x32xf32>
    %cst_35 = arith.constant 9.99999974E-6 : f32
    %127 = vector.broadcast %cst_35 : f32 to vector<16x1xf32>
    %128 = arith.addf %124, %127 : vector<16x1xf32>
    %129 = math.rsqrt %128 : vector<16x1xf32>
    %130 = vector.broadcast %129 : vector<16x1xf32> to vector<16x32xf32>
    %131 = arith.mulf %126, %130 : vector<16x32xf32>
    %132 = vector.broadcast %110 : vector<1x32xf32> to vector<16x32xf32>
    %133 = arith.mulf %131, %132 : vector<16x32xf32>
    %134 = vector.broadcast %113 : vector<1x32xf32> to vector<16x32xf32>
    %135 = arith.addf %133, %134 : vector<16x32xf32>
    %136 = arith.truncf %135 : vector<16x32xf32> to vector<16x32xbf16>
    %137 = arith.index_cast %c0_i32 : i32 to index
    %c0_36 = arith.constant 0 : index
    %c0_37 = arith.constant 0 : index
    %138 = vector.load %arg11[%137, %c0_36, %c0_37] : memref<2x32x128xbf16, #tpu.memory_space<vmem>>, vector<1x32x128xbf16>
    %139 = vector.shape_cast %138 : vector<1x32x128xbf16> to vector<32x128xbf16>
    %cst_38 = arith.constant dense<0.000000e+00> : vector<16x128xf32>
    %140 = tpu.matmul %136, %139, %cst_38 {dimension_numbers = #tpu.dot_dimension_numbers<[1], [0], [0], [1], [0, 0, 1, 1], [], []>} : vector<16x32xbf16>, vector<32x128xbf16>, vector<16x128xf32> -> vector<16x128xf32>
    %141 = arith.index_cast %c0_i32 : i32 to index
    %c0_39 = arith.constant 0 : index
    %c0_40 = arith.constant 0 : index
    %142 = vector.load %arg12[%141, %c0_39, %c0_40] : memref<2x1x128xf32, #tpu.memory_space<vmem>>, vector<1x1x128xf32>
    %143 = vector.shape_cast %142 : vector<1x1x128xf32> to vector<1x128xf32>
    %144 = vector.broadcast %143 : vector<1x128xf32> to vector<16x128xf32>
    %145 = arith.addf %140, %144 : vector<16x128xf32>
    %146 = arith.mulf %145, %145 : vector<16x128xf32>
    %147 = arith.mulf %145, %146 : vector<16x128xf32>
    %cst_41 = arith.constant 4.471500e-02 : f32
    %148 = vector.broadcast %cst_41 : f32 to vector<16x128xf32>
    %149 = arith.mulf %148, %147 : vector<16x128xf32>
    %150 = arith.addf %145, %149 : vector<16x128xf32>
    %cst_42 = arith.constant 0.797884583 : f32
    %151 = vector.broadcast %cst_42 : f32 to vector<16x128xf32>
    %152 = arith.mulf %151, %150 : vector<16x128xf32>
    %153 = math.tanh %152 : vector<16x128xf32>
    %cst_43 = arith.constant 1.000000e+00 : f32
    %154 = vector.broadcast %cst_43 : f32 to vector<16x128xf32>
    %155 = arith.addf %154, %153 : vector<16x128xf32>
    %cst_44 = arith.constant 5.000000e-01 : f32
    %156 = vector.broadcast %cst_44 : f32 to vector<16x128xf32>
    %157 = arith.mulf %156, %155 : vector<16x128xf32>
    %158 = arith.mulf %145, %157 : vector<16x128xf32>
    %159 = arith.truncf %158 : vector<16x128xf32> to vector<16x128xbf16>
    %160 = arith.index_cast %c0_i32 : i32 to index
    %c0_45 = arith.constant 0 : index
    %c0_46 = arith.constant 0 : index
    %161 = vector.load %arg13[%160, %c0_45, %c0_46] : memref<2x128x32xbf16, #tpu.memory_space<vmem>>, vector<1x128x32xbf16>
    %162 = vector.shape_cast %161 : vector<1x128x32xbf16> to vector<128x32xbf16>
    %cst_47 = arith.constant dense<0.000000e+00> : vector<16x32xf32>
    %163 = tpu.matmul %159, %162, %cst_47 {dimension_numbers = #tpu.dot_dimension_numbers<[1], [0], [0], [1], [0, 0, 1, 1], [], []>} : vector<16x128xbf16>, vector<128x32xbf16>, vector<16x32xf32> -> vector<16x32xf32>
    %164 = arith.index_cast %c0_i32 : i32 to index
    %c0_48 = arith.constant 0 : index
    %c0_49 = arith.constant 0 : index
    %165 = vector.load %arg14[%164, %c0_48, %c0_49] : memref<2x1x32xf32, #tpu.memory_space<vmem>>, vector<1x1x32xf32>
    %166 = vector.shape_cast %165 : vector<1x1x32xf32> to vector<1x32xf32>
    %167 = vector.broadcast %166 : vector<1x32xf32> to vector<16x32xf32>
    %168 = arith.addf %163, %167 : vector<16x32xf32>
    %169 = arith.addf %107, %168 : vector<16x32xf32>
    %c1_i32 = arith.constant 1 : i32
    %170 = arith.index_cast %c1_i32 : i32 to index
    %c0_50 = arith.constant 0 : index
    %c0_51 = arith.constant 0 : index
    %171 = vector.load %arg3[%170, %c0_50, %c0_51] : memref<2x1x32xf32, #tpu.memory_space<vmem>>, vector<1x1x32xf32>
    %172 = vector.shape_cast %171 : vector<1x1x32xf32> to vector<1x32xf32>
    %173 = arith.index_cast %c1_i32 : i32 to index
    %c0_52 = arith.constant 0 : index
    %c0_53 = arith.constant 0 : index
    %174 = vector.load %arg4[%173, %c0_52, %c0_53] : memref<2x1x32xf32, #tpu.memory_space<vmem>>, vector<1x1x32xf32>
    %175 = vector.shape_cast %174 : vector<1x1x32xf32> to vector<1x32xf32>
    %cst_54 = arith.constant dense<0.000000e+00> : vector<16xf32>
    %176 = vector.multi_reduction <add>, %169, %cst_54 [1] : vector<16x32xf32> to vector<16xf32>
    %177 = vector.shape_cast %176 : vector<16xf32> to vector<16x1xf32>
    %cst_55 = arith.constant 3.200000e+01 : f32
    %178 = vector.broadcast %cst_55 : f32 to vector<16x1xf32>
    %179 = arith.divf %177, %178 : vector<16x1xf32>
    %180 = vector.broadcast %179 : vector<16x1xf32> to vector<16x32xf32>
    %181 = arith.subf %169, %180 : vector<16x32xf32>
    %182 = arith.mulf %181, %181 : vector<16x32xf32>
    %cst_56 = arith.constant dense<0.000000e+00> : vector<16xf32>
    %183 = vector.multi_reduction <add>, %182, %cst_56 [1] : vector<16x32xf32> to vector<16xf32>
    %184 = vector.shape_cast %183 : vector<16xf32> to vector<16x1xf32>
    %cst_57 = arith.constant 3.200000e+01 : f32
    %185 = vector.broadcast %cst_57 : f32 to vector<16x1xf32>
    %186 = arith.divf %184, %185 : vector<16x1xf32>
    %187 = vector.broadcast %179 : vector<16x1xf32> to vector<16x32xf32>
    %188 = arith.subf %169, %187 : vector<16x32xf32>
    %cst_58 = arith.constant 9.99999974E-6 : f32
    %189 = vector.broadcast %cst_58 : f32 to vector<16x1xf32>
    %190 = arith.addf %186, %189 : vector<16x1xf32>
    %191 = math.rsqrt %190 : vector<16x1xf32>
    %192 = vector.broadcast %191 : vector<16x1xf32> to vector<16x32xf32>
    %193 = arith.mulf %188, %192 : vector<16x32xf32>
    %194 = vector.broadcast %172 : vector<1x32xf32> to vector<16x32xf32>
    %195 = arith.mulf %193, %194 : vector<16x32xf32>
    %196 = vector.broadcast %175 : vector<1x32xf32> to vector<16x32xf32>
    %197 = arith.addf %195, %196 : vector<16x32xf32>
    %198 = arith.truncf %197 : vector<16x32xf32> to vector<16x32xbf16>
    %199 = arith.index_cast %c1_i32 : i32 to index
    %c0_59 = arith.constant 0 : index
    %c0_60 = arith.constant 0 : index
    %200 = vector.load %arg5[%199, %c0_59, %c0_60] : memref<2x32x96xbf16, #tpu.memory_space<vmem>>, vector<1x32x96xbf16>
    %201 = vector.shape_cast %200 : vector<1x32x96xbf16> to vector<32x96xbf16>
    %cst_61 = arith.constant dense<0.000000e+00> : vector<16x96xf32>
    %202 = tpu.matmul %198, %201, %cst_61 {dimension_numbers = #tpu.dot_dimension_numbers<[1], [0], [0], [1], [0, 0, 1, 1], [], []>} : vector<16x32xbf16>, vector<32x96xbf16>, vector<16x96xf32> -> vector<16x96xf32>
    %203 = arith.index_cast %c1_i32 : i32 to index
    %c0_62 = arith.constant 0 : index
    %c0_63 = arith.constant 0 : index
    %204 = vector.load %arg6[%203, %c0_62, %c0_63] : memref<2x1x96xf32, #tpu.memory_space<vmem>>, vector<1x1x96xf32>
    %205 = vector.shape_cast %204 : vector<1x1x96xf32> to vector<1x96xf32>
    %206 = vector.broadcast %205 : vector<1x96xf32> to vector<16x96xf32>
    %207 = arith.addf %202, %206 : vector<16x96xf32>
    %208 = vector.extract_strided_slice %207 {offsets = [0, 0], sizes = [16, 32], strides = [1, 1]} : vector<16x96xf32> to vector<16x32xf32>
    %209 = arith.truncf %208 : vector<16x32xf32> to vector<16x32xbf16>
    %210 = vector.shape_cast %209 : vector<16x32xbf16> to vector<2x8x32xbf16>
    %211 = vector.extract_strided_slice %210 {offsets = [0, 0, 0], sizes = [2, 8, 8], strides = [1, 1, 1]} : vector<2x8x32xbf16> to vector<2x8x8xbf16>
    %212 = vector.extract_strided_slice %210 {offsets = [0, 0, 8], sizes = [2, 8, 8], strides = [1, 1, 1]} : vector<2x8x32xbf16> to vector<2x8x8xbf16>
    %213 = vector.extract_strided_slice %210 {offsets = [0, 0, 16], sizes = [2, 8, 8], strides = [1, 1, 1]} : vector<2x8x32xbf16> to vector<2x8x8xbf16>
    %214 = vector.extract_strided_slice %210 {offsets = [0, 0, 24], sizes = [2, 8, 8], strides = [1, 1, 1]} : vector<2x8x32xbf16> to vector<2x8x8xbf16>
    %215 = tpu.concatenate %211, %212, %213, %214 in 0 : vector<2x8x8xbf16>, vector<2x8x8xbf16>, vector<2x8x8xbf16>, vector<2x8x8xbf16> -> vector<8x8x8xbf16>
    %216 = vector.extract_strided_slice %207 {offsets = [0, 32], sizes = [16, 32], strides = [1, 1]} : vector<16x96xf32> to vector<16x32xf32>
    %217 = arith.truncf %216 : vector<16x32xf32> to vector<16x32xbf16>
    %218 = vector.shape_cast %217 : vector<16x32xbf16> to vector<2x8x32xbf16>
    %219 = vector.extract_strided_slice %218 {offsets = [0, 0, 0], sizes = [2, 8, 8], strides = [1, 1, 1]} : vector<2x8x32xbf16> to vector<2x8x8xbf16>
    %220 = vector.extract_strided_slice %218 {offsets = [0, 0, 8], sizes = [2, 8, 8], strides = [1, 1, 1]} : vector<2x8x32xbf16> to vector<2x8x8xbf16>
    %221 = vector.extract_strided_slice %218 {offsets = [0, 0, 16], sizes = [2, 8, 8], strides = [1, 1, 1]} : vector<2x8x32xbf16> to vector<2x8x8xbf16>
    %222 = vector.extract_strided_slice %218 {offsets = [0, 0, 24], sizes = [2, 8, 8], strides = [1, 1, 1]} : vector<2x8x32xbf16> to vector<2x8x8xbf16>
    %223 = tpu.concatenate %219, %220, %221, %222 in 0 : vector<2x8x8xbf16>, vector<2x8x8xbf16>, vector<2x8x8xbf16>, vector<2x8x8xbf16> -> vector<8x8x8xbf16>
    %224 = vector.extract_strided_slice %207 {offsets = [0, 64], sizes = [16, 32], strides = [1, 1]} : vector<16x96xf32> to vector<16x32xf32>
    %225 = arith.truncf %224 : vector<16x32xf32> to vector<16x32xbf16>
    %226 = vector.shape_cast %225 : vector<16x32xbf16> to vector<2x8x32xbf16>
    %227 = vector.extract_strided_slice %226 {offsets = [0, 0, 0], sizes = [2, 8, 8], strides = [1, 1, 1]} : vector<2x8x32xbf16> to vector<2x8x8xbf16>
    %228 = vector.extract_strided_slice %226 {offsets = [0, 0, 8], sizes = [2, 8, 8], strides = [1, 1, 1]} : vector<2x8x32xbf16> to vector<2x8x8xbf16>
    %229 = vector.extract_strided_slice %226 {offsets = [0, 0, 16], sizes = [2, 8, 8], strides = [1, 1, 1]} : vector<2x8x32xbf16> to vector<2x8x8xbf16>
    %230 = vector.extract_strided_slice %226 {offsets = [0, 0, 24], sizes = [2, 8, 8], strides = [1, 1, 1]} : vector<2x8x32xbf16> to vector<2x8x8xbf16>
    %231 = tpu.concatenate %227, %228, %229, %230 in 0 : vector<2x8x8xbf16>, vector<2x8x8xbf16>, vector<2x8x8xbf16>, vector<2x8x8xbf16> -> vector<8x8x8xbf16>
    "tpu.trace_start"() <{level = 10 : i32, message = "bqd,bkd->bqk"}> : () -> ()
    %cst_64 = arith.constant dense<0.000000e+00> : vector<8x8x8xf32>
    %232 = tpu.matmul %215, %223, %cst_64 {dimension_numbers = #tpu.dot_dimension_numbers<[2], [2], [1], [1], [0, 0, 0, 1, 1, 1], [0], [0]>} : vector<8x8x8xbf16>, vector<8x8x8xbf16>, vector<8x8x8xf32> -> vector<8x8x8xf32>
    "tpu.trace_stop"() : () -> ()
    %cst_65 = arith.constant 0.353553385 : f32
    %233 = vector.broadcast %cst_65 : f32 to vector<8x8x8xf32>
    %234 = arith.mulf %232, %233 : vector<8x8x8xf32>
    %235 = arith.addf %234, %4 : vector<8x8x8xf32>
    %cst_66 = arith.constant dense<0xFF800000> : vector<8x8xf32>
    %236 = vector.multi_reduction <maximumf>, %235, %cst_66 [2] : vector<8x8x8xf32> to vector<8x8xf32>
    %237 = vector.shape_cast %236 : vector<8x8xf32> to vector<8x8x1xf32>
    %238 = vector.broadcast %237 : vector<8x8x1xf32> to vector<8x8x8xf32>
    %239 = arith.subf %235, %238 : vector<8x8x8xf32>
    %240 = math.exp %239 : vector<8x8x8xf32>
    %cst_67 = arith.constant dense<0.000000e+00> : vector<8x8xf32>
    %241 = vector.multi_reduction <add>, %240, %cst_67 [2] : vector<8x8x8xf32> to vector<8x8xf32>
    %242 = vector.shape_cast %241 : vector<8x8xf32> to vector<8x8x1xf32>
    %243 = vector.broadcast %242 : vector<8x8x1xf32> to vector<8x8x8xf32>
    %244 = arith.divf %240, %243 : vector<8x8x8xf32>
    %245 = arith.truncf %244 : vector<8x8x8xf32> to vector<8x8x8xbf16>
    "tpu.trace_start"() <{level = 10 : i32, message = "bqk,bkd->bqd"}> : () -> ()
    %cst_68 = arith.constant dense<0.000000e+00> : vector<8x8x8xf32>
    %246 = tpu.matmul %245, %231, %cst_68 {dimension_numbers = #tpu.dot_dimension_numbers<[2], [1], [1], [2], [0, 0, 0, 1, 1, 2], [0], [0]>} : vector<8x8x8xbf16>, vector<8x8x8xbf16>, vector<8x8x8xf32> -> vector<8x8x8xf32>
    "tpu.trace_stop"() : () -> ()
    %247 = vector.shape_cast %246 : vector<8x8x8xf32> to vector<4x2x8x8xf32>
    %248 = vector.extract_strided_slice %247 {offsets = [0, 0, 0, 0], sizes = [1, 2, 8, 8], strides = [1, 1, 1, 1]} : vector<4x2x8x8xf32> to vector<1x2x8x8xf32>
    %249 = vector.shape_cast %248 : vector<1x2x8x8xf32> to vector<2x8x8xf32>
    %250 = vector.shape_cast %249 : vector<2x8x8xf32> to vector<16x8xf32>
    %251 = vector.extract_strided_slice %247 {offsets = [1, 0, 0, 0], sizes = [1, 2, 8, 8], strides = [1, 1, 1, 1]} : vector<4x2x8x8xf32> to vector<1x2x8x8xf32>
    %252 = vector.shape_cast %251 : vector<1x2x8x8xf32> to vector<2x8x8xf32>
    %253 = vector.shape_cast %252 : vector<2x8x8xf32> to vector<16x8xf32>
    %254 = vector.extract_strided_slice %247 {offsets = [2, 0, 0, 0], sizes = [1, 2, 8, 8], strides = [1, 1, 1, 1]} : vector<4x2x8x8xf32> to vector<1x2x8x8xf32>
    %255 = vector.shape_cast %254 : vector<1x2x8x8xf32> to vector<2x8x8xf32>
    %256 = vector.shape_cast %255 : vector<2x8x8xf32> to vector<16x8xf32>
    %257 = vector.extract_strided_slice %247 {offsets = [3, 0, 0, 0], sizes = [1, 2, 8, 8], strides = [1, 1, 1, 1]} : vector<4x2x8x8xf32> to vector<1x2x8x8xf32>
    %258 = vector.shape_cast %257 : vector<1x2x8x8xf32> to vector<2x8x8xf32>
    %259 = vector.shape_cast %258 : vector<2x8x8xf32> to vector<16x8xf32>
    %260 = tpu.concatenate %250, %253, %256, %259 in 1 : vector<16x8xf32>, vector<16x8xf32>, vector<16x8xf32>, vector<16x8xf32> -> vector<16x32xf32>
    %261 = arith.truncf %260 : vector<16x32xf32> to vector<16x32xbf16>
    %262 = arith.index_cast %c1_i32 : i32 to index
    %c0_69 = arith.constant 0 : index
    %c0_70 = arith.constant 0 : index
    %263 = vector.load %arg7[%262, %c0_69, %c0_70] : memref<2x32x32xbf16, #tpu.memory_space<vmem>>, vector<1x32x32xbf16>
    %264 = vector.shape_cast %263 : vector<1x32x32xbf16> to vector<32x32xbf16>
    %cst_71 = arith.constant dense<0.000000e+00> : vector<16x32xf32>
    %265 = tpu.matmul %261, %264, %cst_71 {dimension_numbers = #tpu.dot_dimension_numbers<[1], [0], [0], [1], [0, 0, 1, 1], [], []>} : vector<16x32xbf16>, vector<32x32xbf16>, vector<16x32xf32> -> vector<16x32xf32>
    %266 = arith.index_cast %c1_i32 : i32 to index
    %c0_72 = arith.constant 0 : index
    %c0_73 = arith.constant 0 : index
    %267 = vector.load %arg8[%266, %c0_72, %c0_73] : memref<2x1x32xf32, #tpu.memory_space<vmem>>, vector<1x1x32xf32>
    %268 = vector.shape_cast %267 : vector<1x1x32xf32> to vector<1x32xf32>
    %269 = vector.broadcast %268 : vector<1x32xf32> to vector<16x32xf32>
    %270 = arith.addf %265, %269 : vector<16x32xf32>
    %271 = arith.addf %169, %270 : vector<16x32xf32>
    %272 = arith.index_cast %c1_i32 : i32 to index
    %c0_74 = arith.constant 0 : index
    %c0_75 = arith.constant 0 : index
    %273 = vector.load %arg9[%272, %c0_74, %c0_75] : memref<2x1x32xf32, #tpu.memory_space<vmem>>, vector<1x1x32xf32>
    %274 = vector.shape_cast %273 : vector<1x1x32xf32> to vector<1x32xf32>
    %275 = arith.index_cast %c1_i32 : i32 to index
    %c0_76 = arith.constant 0 : index
    %c0_77 = arith.constant 0 : index
    %276 = vector.load %arg10[%275, %c0_76, %c0_77] : memref<2x1x32xf32, #tpu.memory_space<vmem>>, vector<1x1x32xf32>
    %277 = vector.shape_cast %276 : vector<1x1x32xf32> to vector<1x32xf32>
    %cst_78 = arith.constant dense<0.000000e+00> : vector<16xf32>
    %278 = vector.multi_reduction <add>, %271, %cst_78 [1] : vector<16x32xf32> to vector<16xf32>
    %279 = vector.shape_cast %278 : vector<16xf32> to vector<16x1xf32>
    %cst_79 = arith.constant 3.200000e+01 : f32
    %280 = vector.broadcast %cst_79 : f32 to vector<16x1xf32>
    %281 = arith.divf %279, %280 : vector<16x1xf32>
    %282 = vector.broadcast %281 : vector<16x1xf32> to vector<16x32xf32>
    %283 = arith.subf %271, %282 : vector<16x32xf32>
    %284 = arith.mulf %283, %283 : vector<16x32xf32>
    %cst_80 = arith.constant dense<0.000000e+00> : vector<16xf32>
    %285 = vector.multi_reduction <add>, %284, %cst_80 [1] : vector<16x32xf32> to vector<16xf32>
    %286 = vector.shape_cast %285 : vector<16xf32> to vector<16x1xf32>
    %cst_81 = arith.constant 3.200000e+01 : f32
    %287 = vector.broadcast %cst_81 : f32 to vector<16x1xf32>
    %288 = arith.divf %286, %287 : vector<16x1xf32>
    %289 = vector.broadcast %281 : vector<16x1xf32> to vector<16x32xf32>
    %290 = arith.subf %271, %289 : vector<16x32xf32>
    %cst_82 = arith.constant 9.99999974E-6 : f32
    %291 = vector.broadcast %cst_82 : f32 to vector<16x1xf32>
    %292 = arith.addf %288, %291 : vector<16x1xf32>
    %293 = math.rsqrt %292 : vector<16x1xf32>
    %294 = vector.broadcast %293 : vector<16x1xf32> to vector<16x32xf32>
    %295 = arith.mulf %290, %294 : vector<16x32xf32>
    %296 = vector.broadcast %274 : vector<1x32xf32> to vector<16x32xf32>
    %297 = arith.mulf %295, %296 : vector<16x32xf32>
    %298 = vector.broadcast %277 : vector<1x32xf32> to vector<16x32xf32>
    %299 = arith.addf %297, %298 : vector<16x32xf32>
    %300 = arith.truncf %299 : vector<16x32xf32> to vector<16x32xbf16>
    %301 = arith.index_cast %c1_i32 : i32 to index
    %c0_83 = arith.constant 0 : index
    %c0_84 = arith.constant 0 : index
    %302 = vector.load %arg11[%301, %c0_83, %c0_84] : memref<2x32x128xbf16, #tpu.memory_space<vmem>>, vector<1x32x128xbf16>
    %303 = vector.shape_cast %302 : vector<1x32x128xbf16> to vector<32x128xbf16>
    %cst_85 = arith.constant dense<0.000000e+00> : vector<16x128xf32>
    %304 = tpu.matmul %300, %303, %cst_85 {dimension_numbers = #tpu.dot_dimension_numbers<[1], [0], [0], [1], [0, 0, 1, 1], [], []>} : vector<16x32xbf16>, vector<32x128xbf16>, vector<16x128xf32> -> vector<16x128xf32>
    %305 = arith.index_cast %c1_i32 : i32 to index
    %c0_86 = arith.constant 0 : index
    %c0_87 = arith.constant 0 : index
    %306 = vector.load %arg12[%305, %c0_86, %c0_87] : memref<2x1x128xf32, #tpu.memory_space<vmem>>, vector<1x1x128xf32>
    %307 = vector.shape_cast %306 : vector<1x1x128xf32> to vector<1x128xf32>
    %308 = vector.broadcast %307 : vector<1x128xf32> to vector<16x128xf32>
    %309 = arith.addf %304, %308 : vector<16x128xf32>
    %310 = arith.mulf %309, %309 : vector<16x128xf32>
    %311 = arith.mulf %309, %310 : vector<16x128xf32>
    %cst_88 = arith.constant 4.471500e-02 : f32
    %312 = vector.broadcast %cst_88 : f32 to vector<16x128xf32>
    %313 = arith.mulf %312, %311 : vector<16x128xf32>
    %314 = arith.addf %309, %313 : vector<16x128xf32>
    %cst_89 = arith.constant 0.797884583 : f32
    %315 = vector.broadcast %cst_89 : f32 to vector<16x128xf32>
    %316 = arith.mulf %315, %314 : vector<16x128xf32>
    %317 = math.tanh %316 : vector<16x128xf32>
    %cst_90 = arith.constant 1.000000e+00 : f32
    %318 = vector.broadcast %cst_90 : f32 to vector<16x128xf32>
    %319 = arith.addf %318, %317 : vector<16x128xf32>
    %cst_91 = arith.constant 5.000000e-01 : f32
    %320 = vector.broadcast %cst_91 : f32 to vector<16x128xf32>
    %321 = arith.mulf %320, %319 : vector<16x128xf32>
    %322 = arith.mulf %309, %321 : vector<16x128xf32>
    %323 = arith.truncf %322 : vector<16x128xf32> to vector<16x128xbf16>
    %324 = arith.index_cast %c1_i32 : i32 to index
    %c0_92 = arith.constant 0 : index
    %c0_93 = arith.constant 0 : index
    %325 = vector.load %arg13[%324, %c0_92, %c0_93] : memref<2x128x32xbf16, #tpu.memory_space<vmem>>, vector<1x128x32xbf16>
    %326 = vector.shape_cast %325 : vector<1x128x32xbf16> to vector<128x32xbf16>
    %cst_94 = arith.constant dense<0.000000e+00> : vector<16x32xf32>
    %327 = tpu.matmul %323, %326, %cst_94 {dimension_numbers = #tpu.dot_dimension_numbers<[1], [0], [0], [1], [0, 0, 1, 1], [], []>} : vector<16x128xbf16>, vector<128x32xbf16>, vector<16x32xf32> -> vector<16x32xf32>
    %328 = arith.index_cast %c1_i32 : i32 to index
    %c0_95 = arith.constant 0 : index
    %c0_96 = arith.constant 0 : index
    %329 = vector.load %arg14[%328, %c0_95, %c0_96] : memref<2x1x32xf32, #tpu.memory_space<vmem>>, vector<1x1x32xf32>
    %330 = vector.shape_cast %329 : vector<1x1x32xf32> to vector<1x32xf32>
    %331 = vector.broadcast %330 : vector<1x32xf32> to vector<16x32xf32>
    %332 = arith.addf %327, %331 : vector<16x32xf32>
    %333 = arith.addf %271, %332 : vector<16x32xf32>
    %c2_i32 = arith.constant 2 : i32
    %c0_97 = arith.constant 0 : index
    %c0_98 = arith.constant 0 : index
    %334 = vector.load %arg15[%c0_97, %c0_98] : memref<1x32xf32, #tpu.memory_space<vmem>>, vector<1x32xf32>
    %c0_99 = arith.constant 0 : index
    %c0_100 = arith.constant 0 : index
    %335 = vector.load %arg16[%c0_99, %c0_100] : memref<1x32xf32, #tpu.memory_space<vmem>>, vector<1x32xf32>
    %cst_101 = arith.constant dense<0.000000e+00> : vector<16xf32>
    %336 = vector.multi_reduction <add>, %333, %cst_101 [1] : vector<16x32xf32> to vector<16xf32>
    %337 = vector.shape_cast %336 : vector<16xf32> to vector<16x1xf32>
    %cst_102 = arith.constant 3.200000e+01 : f32
    %338 = vector.broadcast %cst_102 : f32 to vector<16x1xf32>
    %339 = arith.divf %337, %338 : vector<16x1xf32>
    %340 = vector.broadcast %339 : vector<16x1xf32> to vector<16x32xf32>
    %341 = arith.subf %333, %340 : vector<16x32xf32>
    %342 = arith.mulf %341, %341 : vector<16x32xf32>
    %cst_103 = arith.constant dense<0.000000e+00> : vector<16xf32>
    %343 = vector.multi_reduction <add>, %342, %cst_103 [1] : vector<16x32xf32> to vector<16xf32>
    %344 = vector.shape_cast %343 : vector<16xf32> to vector<16x1xf32>
    %cst_104 = arith.constant 3.200000e+01 : f32
    %345 = vector.broadcast %cst_104 : f32 to vector<16x1xf32>
    %346 = arith.divf %344, %345 : vector<16x1xf32>
    %347 = vector.broadcast %339 : vector<16x1xf32> to vector<16x32xf32>
    %348 = arith.subf %333, %347 : vector<16x32xf32>
    %cst_105 = arith.constant 9.99999974E-6 : f32
    %349 = vector.broadcast %cst_105 : f32 to vector<16x1xf32>
    %350 = arith.addf %346, %349 : vector<16x1xf32>
    %351 = math.rsqrt %350 : vector<16x1xf32>
    %352 = vector.broadcast %351 : vector<16x1xf32> to vector<16x32xf32>
    %353 = arith.mulf %348, %352 : vector<16x32xf32>
    %354 = vector.broadcast %334 : vector<1x32xf32> to vector<16x32xf32>
    %355 = arith.mulf %353, %354 : vector<16x32xf32>
    %356 = vector.broadcast %335 : vector<1x32xf32> to vector<16x32xf32>
    %357 = arith.addf %355, %356 : vector<16x32xf32>
    %358 = arith.truncf %357 : vector<16x32xf32> to vector<16x32xbf16>
    %c0_106 = arith.constant 0 : index
    %c0_107 = arith.constant 0 : index
    %359 = vector.load %arg17[%c0_106, %c0_107] : memref<32x128xbf16, #tpu.memory_space<vmem>>, vector<32x128xbf16>
    %cst_108 = arith.constant dense<0.000000e+00> : vector<16x128xf32>
    %360 = tpu.matmul %358, %359, %cst_108 {dimension_numbers = #tpu.dot_dimension_numbers<[1], [0], [0], [1], [0, 0, 1, 1], [], []>} : vector<16x32xbf16>, vector<32x128xbf16>, vector<16x128xf32> -> vector<16x128xf32>
    %c0_109 = arith.constant 0 : index
    %c0_110 = arith.constant 0 : index
    %361 = vector.load %arg18[%c0_109, %c0_110] : memref<16x128xf32, #tpu.memory_space<vmem>>, vector<16x128xf32>
    tpu.vector_store %arg18[%c0_109, %c0_110], %360 {strides = array<i32>} : memref<16x128xf32, #tpu.memory_space<vmem>>, vector<16x128xf32>,
    return
  }
  func.func @transform_0(%arg0: i32) -> (i32, i32) {
    %c0_i32 = arith.constant 0 : i32
    %c0_i32_0 = arith.constant 0 : i32
    return %arg0, %c0_i32 : i32, i32
  }
  func.func @transform_1(%arg0: i32) -> (i32, i32, i32) {
    %c0_i32 = arith.constant 0 : i32
    %c0_i32_0 = arith.constant 0 : i32
    %c0_i32_1 = arith.constant 0 : i32
    return %arg0, %c0_i32, %c0_i32_0 : i32, i32, i32
  }
  func.func @transform_2(%arg0: i32) -> (i32, i32, i32) {
    %c0_i32 = arith.constant 0 : i32
    %c0_i32_0 = arith.constant 0 : i32
    %c0_i32_1 = arith.constant 0 : i32
    %c0_i32_2 = arith.constant 0 : i32
    return %c0_i32, %c0_i32_0, %c0_i32_1 : i32, i32, i32
  }
  func.func @transform_3(%arg0: i32) -> (i32, i32, i32) {
    %c0_i32 = arith.constant 0 : i32
    %c0_i32_0 = arith.constant 0 : i32
    %c0_i32_1 = arith.constant 0 : i32
    %c0_i32_2 = arith.constant 0 : i32
    return %c0_i32, %c0_i32_0, %c0_i32_1 : i32, i32, i32
  }
  func.func @transform_4(%arg0: i32) -> (i32, i32, i32) {
    %c0_i32 = arith.constant 0 : i32
    %c0_i32_0 = arith.constant 0 : i32
    %c0_i32_1 = arith.constant 0 : i32
    %c0_i32_2 = arith.constant 0 : i32
    return %c0_i32, %c0_i32_0, %c0_i32_1 : i32, i32, i32
  }
  func.func @transform_5(%arg0: i32) -> (i32, i32, i32) {
    %c0_i32 = arith.constant 0 : i32
    %c0_i32_0 = arith.constant 0 : i32
    %c0_i32_1 = arith.constant 0 : i32
    %c0_i32_2 = arith.constant 0 : i32
    return %c0_i32, %c0_i32_0, %c0_i32_1 : i32, i32, i32
  }
  func.func @transform_6(%arg0: i32) -> (i32, i32, i32) {
    %c0_i32 = arith.constant 0 : i32
    %c0_i32_0 = arith.constant 0 : i32
    %c0_i32_1 = arith.constant 0 : i32
    %c0_i32_2 = arith.constant 0 : i32
    return %c0_i32, %c0_i32_0, %c0_i32_1 : i32, i32, i32
  }
  func.func @transform_7(%arg0: i32) -> (i32, i32, i32) {
    %c0_i32 = arith.constant 0 : i32
    %c0_i32_0 = arith.constant 0 : i32
    %c0_i32_1 = arith.constant 0 : i32
    %c0_i32_2 = arith.constant 0 : i32
    return %c0_i32, %c0_i32_0, %c0_i32_1 : i32, i32, i32
  }
  func.func @transform_8(%arg0: i32) -> (i32, i32, i32) {
    %c0_i32 = arith.constant 0 : i32
    %c0_i32_0 = arith.constant 0 : i32
    %c0_i32_1 = arith.constant 0 : i32
    %c0_i32_2 = arith.constant 0 : i32
    return %c0_i32, %c0_i32_0, %c0_i32_1 : i32, i32, i32
  }
  func.func @transform_9(%arg0: i32) -> (i32, i32, i32) {
    %c0_i32 = arith.constant 0 : i32
    %c0_i32_0 = arith.constant 0 : i32
    %c0_i32_1 = arith.constant 0 : i32
    %c0_i32_2 = arith.constant 0 : i32
    return %c0_i32, %c0_i32_0, %c0_i32_1 : i32, i32, i32
  }
  func.func @transform_10(%arg0: i32) -> (i32, i32, i32) {
    %c0_i32 = arith.constant 0 : i32
    %c0_i32_0 = arith.constant 0 : i32
    %c0_i32_1 = arith.constant 0 : i32
    %c0_i32_2 = arith.constant 0 : i32
    return %c0_i32, %c0_i32_0, %c0_i32_1 : i32, i32, i32
  }
  func.func @transform_11(%arg0: i32) -> (i32, i32, i32) {
    %c0_i32 = arith.constant 0 : i32
    %c0_i32_0 = arith.constant 0 : i32
    %c0_i32_1 = arith.constant 0 : i32
    %c0_i32_2 = arith.constant 0 : i32
    return %c0_i32, %c0_i32_0, %c0_i32_1 : i32, i32, i32
  }
  func.func @transform_12(%arg0: i32) -> (i32, i32, i32) {
    %c0_i32 = arith.constant 0 : i32
    %c0_i32_0 = arith.constant 0 : i32
    %c0_i32_1 = arith.constant 0 : i32
    %c0_i32_2 = arith.constant 0 : i32
    return %c0_i32, %c0_i32_0, %c0_i32_1 : i32, i32, i32
  }
  func.func @transform_13(%arg0: i32) -> (i32, i32, i32) {
    %c0_i32 = arith.constant 0 : i32
    %c0_i32_0 = arith.constant 0 : i32
    %c0_i32_1 = arith.constant 0 : i32
    %c0_i32_2 = arith.constant 0 : i32
    return %c0_i32, %c0_i32_0, %c0_i32_1 : i32, i32, i32
  }
  func.func @transform_14(%arg0: i32) -> (i32, i32) {
    %c0_i32 = arith.constant 0 : i32
    %c0_i32_0 = arith.constant 0 : i32
    %c0_i32_1 = arith.constant 0 : i32
    return %c0_i32, %c0_i32_0 : i32, i32
  }
  func.func @transform_15(%arg0: i32) -> (i32, i32) {
    %c0_i32 = arith.constant 0 : i32
    %c0_i32_0 = arith.constant 0 : i32
    %c0_i32_1 = arith.constant 0 : i32
    return %c0_i32, %c0_i32_0 : i32, i32
  }
  func.func @transform_16(%arg0: i32) -> (i32, i32) {
    %c0_i32 = arith.constant 0 : i32
    %c0_i32_0 = arith.constant 0 : i32
    %c0_i32_1 = arith.constant 0 : i32
    return %c0_i32, %c0_i32_0 : i32, i32
  }
  func.func @transform_17(%arg0: i32) -> (i32, i32) {
    %c0_i32 = arith.constant 0 : i32
    %c0_i32_0 = arith.constant 0 : i32
    return %arg0, %c0_i32 : i32, i32
  }
}

module attributes {stable_mosaic.version = 11 : i64} {
  func.func @_fused_model_kernel(%arg0: i32, %arg1: memref<16x32xf32, #tpu.memory_space<vmem>>, %arg2: memref<2x8x8xf32, #tpu.memory_space<vmem>>, %arg3: memref<2x1x32xf32, #tpu.memory_space<vmem>>, %arg4: memref<2x1x32xf32, #tpu.memory_space<vmem>>, %arg5: memref<2x32x96xbf16, #tpu.memory_space<vmem>>, %arg6: memref<2x1x96xf32, #tpu.memory_space<vmem>>, %arg7: memref<2x32x32xbf16, #tpu.memory_space<vmem>>, %arg8: memref<2x1x32xf32, #tpu.memory_space<vmem>>, %arg9: memref<2x1x32xf32, #tpu.memory_space<vmem>>, %arg10: memref<2x1x32xf32, #tpu.memory_space<vmem>>, %arg11: memref<2x32x128xbf16, #tpu.memory_space<vmem>>, %arg12: memref<2x1x128xf32, #tpu.memory_space<vmem>>, %arg13: memref<2x128x32xbf16, #tpu.memory_space<vmem>>, %arg14: memref<2x1x32xf32, #tpu.memory_space<vmem>>, %arg15: memref<1x32xf32, #tpu.memory_space<vmem>>, %arg16: memref<1x32xf32, #tpu.memory_space<vmem>>, %arg17: memref<32x128xbf16, #tpu.memory_space<vmem>>, %arg18: memref<16x128xf32, #tpu.memory_space<vmem>>) attributes {dimension_semantics = [#tpu.dimension_semantics<parallel>], iteration_bounds = array<i64: 1>, scalar_prefetch = 0 : i64, scratch_operands = 0 : i64, tpu.core_type = #tpu.core_type<tc>, window_params = [{transform_indices = @transform_0, window_bounds = array<i64: 16, 32>}, {transform_indices = @transform_1, window_bounds = array<i64: 2, 8, 8>}, {pipeline_mode = #tpu.pipeline_mode<synchronous>, transform_indices = @transform_2, window_bounds = array<i64: 2, 1, 32>}, {pipeline_mode = #tpu.pipeline_mode<synchronous>, transform_indices = @transform_3, window_bounds = array<i64: 2, 1, 32>}, {pipeline_mode = #tpu.pipeline_mode<synchronous>, transform_indices = @transform_4, window_bounds = array<i64: 2, 32, 96>}, {pipeline_mode = #tpu.pipeline_mode<synchronous>, transform_indices = @transform_5, window_bounds = array<i64: 2, 1, 96>}, {pipeline_mode = #tpu.pipeline_mode<synchronous>, transform_indices = @transform_6, window_bounds = array<i64: 2, 32, 32>}, {pipeline_mode = #tpu.pipeline_mode<synchronous>, transform_indices = @transform_7, window_bounds = array<i64: 2, 1, 32>}, {pipeline_mode = #tpu.pipeline_mode<synchronous>, transform_indices = @transform_8, window_bounds = array<i64: 2, 1, 32>}, {pipeline_mode = #tpu.pipeline_mode<synchronous>, transform_indices = @transform_9, window_bounds = array<i64: 2, 1, 32>}, {pipeline_mode = #tpu.pipeline_mode<synchronous>, transform_indices = @transform_10, window_bounds = array<i64: 2, 32, 128>}, {pipeline_mode = #tpu.pipeline_mode<synchronous>, transform_indices = @transform_11, window_bounds = array<i64: 2, 1, 128>}, {pipeline_mode = #tpu.pipeline_mode<synchronous>, transform_indices = @transform_12, window_bounds = array<i64: 2, 128, 32>}, {pipeline_mode = #tpu.pipeline_mode<synchronous>, transform_indices = @transform_13, window_bounds = array<i64: 2, 1, 32>}, {pipeline_mode = #tpu.pipeline_mode<synchronous>, transform_indices = @transform_14, window_bounds = array<i64: 1, 32>}, {pipeline_mode = #tpu.pipeline_mode<synchronous>, transform_indices = @transform_15, window_bounds = array<i64: 1, 32>}, {pipeline_mode = #tpu.pipeline_mode<synchronous>, transform_indices = @transform_16, window_bounds = array<i64: 32, 128>}, {transform_indices = @transform_17, window_bounds = array<i64: 16, 128>}]} {
    %c0 = arith.constant 0 : index
    %c0_0 = arith.constant 0 : index
    %c0_1 = arith.constant 0 : index
    %0 = vector.load %arg2[%c0, %c0_0, %c0_1] : memref<2x8x8xf32, #tpu.memory_space<vmem>>, vector<2x8x8xf32>
    %1 = vector.shape_cast %0 : vector<2x8x8xf32> to vector<1x2x8x8xf32>
    %2 = vector.shape_cast %1 : vector<1x2x8x8xf32> to vector<1x2x8x8xf32>
    %3 = vector.broadcast %2 : vector<1x2x8x8xf32> to vector<4x2x8x8xf32>
    %4 = vector.shape_cast %3 : vector<4x2x8x8xf32> to vector<8x8x8xf32>
    %c0_2 = arith.constant 0 : index
    %c0_3 = arith.constant 0 : index
    %5 = vector.load %arg1[%c0_2, %c0_3] : memref<16x32xf32, #tpu.memory_space<vmem>>, vector<16x32xf32>
    %c0_i32 = arith.constant 0 : i32
    %6 = arith.index_cast %c0_i32 : i32 to index
    %c0_4 = arith.constant 0 : index
    %c0_5 = arith.constant 0 : index
    %7 = vector.load %arg3[%6, %c0_4, %c0_5] : memref<2x1x32xf32, #tpu.memory_space<vmem>>, vector<1x1x32xf32>
    %8 = vector.shape_cast %7 : vector<1x1x32xf32> to vector<1x32xf32>
    %9 = arith.index_cast %c0_i32 : i32 to index
    %c0_6 = arith.constant 0 : index
    %c0_7 = arith.constant 0 : index
    %10 = vector.load %arg4[%9, %c0_6, %c0_7] : memref<2x1x32xf32, #tpu.memory_space<vmem>>, vector<1x1x32xf32>
    %11 = vector.shape_cast %10 : vector<1x1x32xf32> to vector<1x32xf32>
    %cst = arith.constant dense<0.000000e+00> : vector<16xf32>
    %12 = vector.multi_reduction <add>, %5, %cst [1] : vector<16x32xf32> to vector<16xf32>
    %13 = vector.shape_cast %12 : vector<16xf32> to vector<16x1xf32>
    %cst_8 = arith.constant 3.200000e+01 : f32
    %14 = vector.broadcast %cst_8 : f32 to vector<16x1xf32>
    %15 = arith.divf %13, %14 : vector<16x1xf32>
    %16 = vector.broadcast %15 : vector<16x1xf32> to vector<16x32xf32>
    %17 = arith.subf %5, %16 : vector<16x32xf32>
    %18 = arith.mulf %17, %17 : vector<16x32xf32>
    %cst_9 = arith.constant dense<0.000000e+00> : vector<16xf32>
    %19 = vector.multi_reduction <add>, %18, %cst_9 [1] : vector<16x32xf32> to vector<16xf32>
    %20 = vector.shape_cast %19 : vector<16xf32> to vector<16x1xf32>
    %cst_10 = arith.constant 3.200000e+01 : f32
    %21 = vector.broadcast %cst_10 : f32 to vector<16x1xf32>
    %22 = arith.divf %20, %21 : vector<16x1xf32>
    %23 = vector.broadcast %15 : vector<16x1xf32> to vector<16x32xf32>
    %24 = arith.subf %5, %23 : vector<16x32xf32>
    %cst_11 = arith.constant 9.99999974E-6 : f32
    %25 = vector.broadcast %cst_11 : f32 to vector<16x1xf32>
    %26 = arith.addf %22, %25 : vector<16x1xf32>
    %27 = math.rsqrt %26 : vector<16x1xf32>
    %28 = vector.broadcast %27 : vector<16x1xf32> to vector<16x32xf32>
    %29 = arith.mulf %24, %28 : vector<16x32xf32>
    %30 = vector.broadcast %8 : vector<1x32xf32> to vector<16x32xf32>
    %31 = arith.mulf %29, %30 : vector<16x32xf32>
    %32 = vector.broadcast %11 : vector<1x32xf32> to vector<16x32xf32>
    %33 = arith.addf %31, %32 : vector<16x32xf32>
    %34 = arith.truncf %33 : vector<16x32xf32> to vector<16x32xbf16>
    %35 = arith.index_cast %c0_i32 : i32 to index
    %c0_12 = arith.constant 0 : index
    %c0_13 = arith.constant 0 : index
    %36 = vector.load %arg5[%35, %c0_12, %c0_13] : memref<2x32x96xbf16, #tpu.memory_space<vmem>>, vector<1x32x96xbf16>
    %37 = vector.shape_cast %36 : vector<1x32x96xbf16> to vector<32x96xbf16>
    %cst_14 = arith.constant dense<0.000000e+00> : vector<16x96xf32>
    %38 = tpu.matmul %34, %37, %cst_14 {dimension_numbers = #tpu.dot_dimension_numbers<[1], [0], [0], [1], [0, 0, 1, 1], [], []>} : vector<16x32xbf16>, vector<32x96xbf16>, vector<16x96xf32> -> vector<16x96xf32>
    %39 = arith.index_cast %c0_i32 : i32 to index
    %c0_15 = arith.constant 0 : index
    %c0_16 = arith.constant 0 : index
    %40 = vector.load %arg6[%39, %c0_15, %c0_16] : memref<2x1x96xf32, #tpu.memory_space<vmem>>, vector<1x1x96xf32>
    %41 = vector.shape_cast %40 : vector<1x1x96xf32> to vector<1x96xf32>
    %42 = vector.broadcast %41 : vector<1x96xf32> to vector<16x96xf32>
    %43 = arith.addf %38, %42 : vector<16x96xf32>
    %44 = vector.extract_strided_slice %43 {offsets = [0, 0], sizes = [16, 32], strides = [1, 1]} : vector<16x96xf32> to vector<16x32xf32>
    %45 = arith.truncf %44 : vector<16x32xf32> to vector<16x32xbf16>
    %46 = vector.shape_cast %45 : vector<16x32xbf16> to vector<2x8x32xbf16>
    %47 = vector.extract_strided_slice %46 {offsets = [0, 0, 0], sizes = [2, 8, 8], strides = [1, 1, 1]} : vector<2x8x32xbf16> to vector<2x8x8xbf16>
    %48 = vector.extract_strided_slice %46 {offsets = [0, 0, 8], sizes = [2, 8, 8], strides = [1, 1, 1]} : vector<2x8x32xbf16> to vector<2x8x8xbf16>
    %49 = vector.extract_strided_slice %46 {offsets = [0, 0, 16], sizes = [2, 8, 8], strides = [1, 1, 1]} : vector<2x8x32xbf16> to vector<2x8x8xbf16>
    %50 = vector.extract_strided_slice %46 {offsets = [0, 0, 24], sizes = [2, 8, 8], strides = [1, 1, 1]} : vector<2x8x32xbf16> to vector<2x8x8xbf16>
    %51 = tpu.concatenate %47, %48, %49, %50 in 0 : vector<2x8x8xbf16>, vector<2x8x8xbf16>, vector<2x8x8xbf16>, vector<2x8x8xbf16> -> vector<8x8x8xbf16>
    %52 = vector.extract_strided_slice %43 {offsets = [0, 32], sizes = [16, 32], strides = [1, 1]} : vector<16x96xf32> to vector<16x32xf32>
    %53 = arith.truncf %52 : vector<16x32xf32> to vector<16x32xbf16>
    %54 = vector.shape_cast %53 : vector<16x32xbf16> to vector<2x8x32xbf16>
    %55 = vector.extract_strided_slice %54 {offsets = [0, 0, 0], sizes = [2, 8, 8], strides = [1, 1, 1]} : vector<2x8x32xbf16> to vector<2x8x8xbf16>
    %56 = vector.extract_strided_slice %54 {offsets = [0, 0, 8], sizes = [2, 8, 8], strides = [1, 1, 1]} : vector<2x8x32xbf16> to vector<2x8x8xbf16>
    %57 = vector.extract_strided_slice %54 {offsets = [0, 0, 16], sizes = [2, 8, 8], strides = [1, 1, 1]} : vector<2x8x32xbf16> to vector<2x8x8xbf16>
    %58 = vector.extract_strided_slice %54 {offsets = [0, 0, 24], sizes = [2, 8, 8], strides = [1, 1, 1]} : vector<2x8x32xbf16> to vector<2x8x8xbf16>
    %59 = tpu.concatenate %55, %56, %57, %58 in 0 : vector<2x8x8xbf16>, vector<2x8x8xbf16>, vector<2x8x8xbf16>, vector<2x8x8xbf16> -> vector<8x8x8xbf16>
    %60 = vector.extract_strided_slice %43 {offsets = [0, 64], sizes = [16, 32], strides = [1, 1]} : vector<16x96xf32> to vector<16x32xf32>
    %61 = arith.truncf %60 : vector<16x32xf32> to vector<16x32xbf16>
    %62 = vector.shape_cast %61 : vector<16x32xbf16> to vector<2x8x32xbf16>
    %63 = vector.extract_strided_slice %62 {offsets = [0, 0, 0], sizes = [2, 8, 8], strides = [1, 1, 1]} : vector<2x8x32xbf16> to vector<2x8x8xbf16>
    %64 = vector.extract_strided_slice %62 {offsets = [0, 0, 8], sizes = [2, 8, 8], strides = [1, 1, 1]} : vector<2x8x32xbf16> to vector<2x8x8xbf16>
    %65 = vector.extract_strided_slice %62 {offsets = [0, 0, 16], sizes = [2, 8, 8], strides = [1, 1, 1]} : vector<2x8x32xbf16> to vector<2x8x8xbf16>
    %66 = vector.extract_strided_slice %62 {offsets = [0, 0, 24], sizes = [2, 8, 8], strides = [1, 1, 1]} : vector<2x8x32xbf16> to vector<2x8x8xbf16>
    %67 = tpu.concatenate %63, %64, %65, %66 in 0 : vector<2x8x8xbf16>, vector<2x8x8xbf16>, vector<2x8x8xbf16>, vector<2x8x8xbf16> -> vector<8x8x8xbf16>
    "tpu.trace_start"() <{level = 10 : i32, message = "bqd,bkd->bqk"}> : () -> ()
    %cst_17 = arith.constant dense<0.000000e+00> : vector<8x8x8xf32>
    %68 = tpu.matmul %51, %59, %cst_17 {dimension_numbers = #tpu.dot_dimension_numbers<[2], [2], [1], [1], [0, 0, 0, 1, 1, 1], [0], [0]>} : vector<8x8x8xbf16>, vector<8x8x8xbf16>, vector<8x8x8xf32> -> vector<8x8x8xf32>
    "tpu.trace_stop"() : () -> ()
    %cst_18 = arith.constant 0.353553385 : f32
    %69 = vector.broadcast %cst_18 : f32 to vector<8x8x8xf32>
    %70 = arith.mulf %68, %69 : vector<8x8x8xf32>
    %71 = arith.addf %70, %4 : vector<8x8x8xf32>
    %cst_19 = arith.constant dense<0xFF800000> : vector<8x8xf32>
    %72 = vector.multi_reduction <maximumf>, %71, %cst_19 [2] : vector<8x8x8xf32> to vector<8x8xf32>
    %73 = vector.shape_cast %72 : vector<8x8xf32> to vector<8x8x1xf32>
    %74 = vector.broadcast %73 : vector<8x8x1xf32> to vector<8x8x8xf32>
    %75 = arith.subf %71, %74 : vector<8x8x8xf32>
    %76 = math.exp %75 : vector<8x8x8xf32>
    %cst_20 = arith.constant dense<0.000000e+00> : vector<8x8xf32>
    %77 = vector.multi_reduction <add>, %76, %cst_20 [2] : vector<8x8x8xf32> to vector<8x8xf32>
    %78 = vector.shape_cast %77 : vector<8x8xf32> to vector<8x8x1xf32>
    %79 = vector.broadcast %78 : vector<8x8x1xf32> to vector<8x8x8xf32>
    %80 = arith.divf %76, %79 : vector<8x8x8xf32>
    %81 = arith.truncf %80 : vector<8x8x8xf32> to vector<8x8x8xbf16>
    "tpu.trace_start"() <{level = 10 : i32, message = "bqk,bkd->bqd"}> : () -> ()
    %cst_21 = arith.constant dense<0.000000e+00> : vector<8x8x8xf32>
    %82 = tpu.matmul %81, %67, %cst_21 {dimension_numbers = #tpu.dot_dimension_numbers<[2], [1], [1], [2], [0, 0, 0, 1, 1, 2], [0], [0]>} : vector<8x8x8xbf16>, vector<8x8x8xbf16>, vector<8x8x8xf32> -> vector<8x8x8xf32>
    "tpu.trace_stop"() : () -> ()
    %83 = vector.shape_cast %82 : vector<8x8x8xf32> to vector<4x2x8x8xf32>
    %84 = vector.extract_strided_slice %83 {offsets = [0, 0, 0, 0], sizes = [1, 2, 8, 8], strides = [1, 1, 1, 1]} : vector<4x2x8x8xf32> to vector<1x2x8x8xf32>
    %85 = vector.shape_cast %84 : vector<1x2x8x8xf32> to vector<2x8x8xf32>
    %86 = vector.shape_cast %85 : vector<2x8x8xf32> to vector<16x8xf32>
    %87 = vector.extract_strided_slice %83 {offsets = [1, 0, 0, 0], sizes = [1, 2, 8, 8], strides = [1, 1, 1, 1]} : vector<4x2x8x8xf32> to vector<1x2x8x8xf32>
    %88 = vector.shape_cast %87 : vector<1x2x8x8xf32> to vector<2x8x8xf32>
    %89 = vector.shape_cast %88 : vector<2x8x8xf32> to vector<16x8xf32>
    %90 = vector.extract_strided_slice %83 {offsets = [2, 0, 0, 0], sizes = [1, 2, 8, 8], strides = [1, 1, 1, 1]} : vector<4x2x8x8xf32> to vector<1x2x8x8xf32>
    %91 = vector.shape_cast %90 : vector<1x2x8x8xf32> to vector<2x8x8xf32>
    %92 = vector.shape_cast %91 : vector<2x8x8xf32> to vector<16x8xf32>
    %93 = vector.extract_strided_slice %83 {offsets = [3, 0, 0, 0], sizes = [1, 2, 8, 8], strides = [1, 1, 1, 1]} : vector<4x2x8x8xf32> to vector<1x2x8x8xf32>
    %94 = vector.shape_cast %93 : vector<1x2x8x8xf32> to vector<2x8x8xf32>
    %95 = vector.shape_cast %94 : vector<2x8x8xf32> to vector<16x8xf32>
    %96 = tpu.concatenate %86, %89, %92, %95 in 1 : vector<16x8xf32>, vector<16x8xf32>, vector<16x8xf32>, vector<16x8xf32> -> vector<16x32xf32>
    %97 = arith.truncf %96 : vector<16x32xf32> to vector<16x32xbf16>
    %98 = arith.index_cast %c0_i32 : i32 to index
    %c0_22 = arith.constant 0 : index
    %c0_23 = arith.constant 0 : index
    %99 = vector.load %arg7[%98, %c0_22, %c0_23] : memref<2x32x32xbf16, #tpu.memory_space<vmem>>, vector<1x32x32xbf16>
    %100 = vector.shape_cast %99 : vector<1x32x32xbf16> to vector<32x32xbf16>
    %cst_24 = arith.constant dense<0.000000e+00> : vector<16x32xf32>
    %101 = tpu.matmul %97, %100, %cst_24 {dimension_numbers = #tpu.dot_dimension_numbers<[1], [0], [0], [1], [0, 0, 1, 1], [], []>} : vector<16x32xbf16>, vector<32x32xbf16>, vector<16x32xf32> -> vector<16x32xf32>
    %102 = arith.index_cast %c0_i32 : i32 to index
    %c0_25 = arith.constant 0 : index
    %c0_26 = arith.constant 0 : index
    %103 = vector.load %arg8[%102, %c0_25, %c0_26] : memref<2x1x32xf32, #tpu.memory_space<vmem>>, vector<1x1x32xf32>
    %104 = vector.shape_cast %103 : vector<1x1x32xf32> to vector<1x32xf32>
    %105 = vector.broadcast %104 : vector<1x32xf32> to vector<16x32xf32>
    %106 = arith.addf %101, %105 : vector<16x32xf32>
    %107 = arith.addf %5, %106 : vector<16x32xf32>
    %108 = arith.index_cast %c0_i32 : i32 to index
    %c0_27 = arith.constant 0 : index
    %c0_28 = arith.constant 0 : index
    %109 = vector.load %arg9[%108, %c0_27, %c0_28] : memref<2x1x32xf32, #tpu.memory_space<vmem>>, vector<1x1x32xf32>
    %110 = vector.shape_cast %109 : vector<1x1x32xf32> to vector<1x32xf32>
    %111 = arith.index_cast %c0_i32 : i32 to index
    %c0_29 = arith.constant 0 : index
    %c0_30 = arith.constant 0 : index
    %112 = vector.load %arg10[%111, %c0_29, %c0_30] : memref<2x1x32xf32, #tpu.memory_space<vmem>>, vector<1x1x32xf32>
    %113 = vector.shape_cast %112 : vector<1x1x32xf32> to vector<1x32xf32>
    %cst_31 = arith.constant dense<0.000000e+00> : vector<16xf32>
    %114 = vector.multi_reduction <add>, %107, %cst_31 [1] : vector<16x32xf32> to vector<16xf32>
    %115 = vector.shape_cast %114 : vector<16xf32> to vector<16x1xf32>
    %cst_32 = arith.constant 3.200000e+01 : f32
    %116 = vector.broadcast %cst_32 : f32 to vector<16x1xf32>
    %117 = arith.divf %115, %116 : vector<16x1xf32>
    %118 = vector.broadcast %117 : vector<16x1xf32> to vector<16x32xf32>
    %119 = arith.subf %107, %118 : vector<16x32xf32>
    %120 = arith.mulf %119, %119 : vector<16x32xf32>
    %cst_33 = arith.constant dense<0.000000e+00> : vector<16xf32>
    %121 = vector.multi_reduction <add>, %120, %cst_33 [1] : vector<16x32xf32> to vector<16xf32>
    %122 = vector.shape_cast %121 : vector<16xf32> to vector<16x1xf32>
    %cst_34 = arith.constant 3.200000e+01 : f32
    %123 = vector.broadcast %cst_34 : f32 to vector<16x1xf32>
    %124 = arith.divf %122, %123 : vector<16x1xf32>
    %125 = vector.broadcast %117 : vector<16x1xf32> to vector<16x32xf32>
    %126 = arith.subf %107, %125 : vector<16x32xf32>
    %cst_35 = arith.constant 9.99999974E-6 : f32
    %127 = vector.broadcast %cst_35 : f32 to vector<16x1xf32>
    %128 = arith.addf %124, %127 : vector<16x1xf32>
    %129 = math.rsqrt %128 : vector<16x1xf32>
    %130 = vector.broadcast %129 : vector<16x1xf32> to vector<16x32xf32>
    %131 = arith.mulf %126, %130 : vector<16x32xf32>
    %132 = vector.broadcast %110 : vector<1x32xf32> to vector<16x32xf32>
    %133 = arith.mulf %131, %132 : vector<16x32xf32>
    %134 = vector.broadcast %113 : vector<1x32xf32> to vector<16x32xf32>
    %135 = arith.addf %133, %134 : vector<16x32xf32>
    %136 = arith.truncf %135 : vector<16x32xf32> to vector<16x32xbf16>
    %137 = arith.index_cast %c0_i32 : i32 to index
    %c0_36 = arith.constant 0 : index
    %c0_37 = arith.constant 0 : index
    %138 = vector.load %arg11[%137, %c0_36, %c0_37] : memref<2x32x128xbf16, #tpu.memory_space<vmem>>, vector<1x32x128xbf16>
    %139 = vector.shape_cast %138 : vector<1x32x128xbf16> to vector<32x128xbf16>
    %cst_38 = arith.constant dense<0.000000e+00> : vector<16x128xf32>
    %140 = tpu.matmul %136, %139, %cst_38 {dimension_numbers = #tpu.dot_dimension_numbers<[1], [0], [0], [1], [0, 0, 1, 1], [], []>} : vector<16x32xbf16>, vector<32x128xbf16>, vector<16x128xf32> -> vector<16x128xf32>
    %141 = arith.index_cast %c0_i32 : i32 to index
    %c0_39 = arith.constant 0 : index
    %c0_40 = arith.constant 0 : index
    %142 = vector.load %arg12[%141, %c0_39, %c0_40] : memref<2x1x128xf32, #tpu.memory_space<vmem>>, vector<1x1x128xf32>
    %143 = vector.shape_cast %142 : vector<1x1x128xf32> to vector<1x128xf32>
    %144 = vector.broadcast %143 : vector<1x128xf32> to vector<16x128xf32>
    %145 = arith.addf %140, %144 : vector<16x128xf32>
    %146 = arith.mulf %145, %145 : vector<16x128xf32>
    %147 = arith.mulf %145, %146 : vector<16x128xf32>
    %cst_41 = arith.constant 4.471500e-02 : f32
    %148 = vector.broadcast %cst_41 : f32 to vector<16x128xf32>
    %149 = arith.mulf %148, %147 : vector<16x128xf32>
    %150 = arith.addf %145, %149 : vector<16x128xf32>
    %cst_42 = arith.constant 0.797884583 : f32
    %151 = vector.broadcast %cst_42 : f32 to vector<16x128xf32>
    %152 = arith.mulf %151, %150 : vector<16x128xf32>
    %153 = math.tanh %152 : vector<16x128xf32>
    %cst_43 = arith.constant 1.000000e+00 : f32
    %154 = vector.broadcast %cst_43 : f32 to vector<16x128xf32>
    %155 = arith.addf %154, %153 : vector<16x128xf32>
    %cst_44 = arith.constant 5.000000e-01 : f32
    %156 = vector.broadcast %cst_44 : f32 to vector<16x128xf32>
    %157 = arith.mulf %156, %155 : vector<16x128xf32>
    %158 = arith.mulf %145, %157 : vector<16x128xf32>
    %159 = arith.truncf %158 : vector<16x128xf32> to vector<16x128xbf16>
    %160 = arith.index_cast %c0_i32 : i32 to index
    %c0_45 = arith.constant 0 : index
    %c0_46 = arith.constant 0 : index
    %161 = vector.load %arg13[%160, %c0_45, %c0_46] : memref<2x128x32xbf16, #tpu.memory_space<vmem>>, vector<1x128x32xbf16>
    %162 = vector.shape_cast %161 : vector<1x128x32xbf16> to vector<128x32xbf16>
    %cst_47 = arith.constant dense<0.000000e+00> : vector<16x32xf32>
    %163 = tpu.matmul %159, %162, %cst_47 {dimension_numbers = #tpu.dot_dimension_numbers<[1], [0], [0], [1], [0, 0, 1, 1], [], []>} : vector<16x128xbf16>, vector<128x32xbf16>, vector<16x32xf32> -> vector<16x32xf32>
    %164 = arith.index_cast %c0_i32 : i32 to index
    %c0_48 = arith.constant 0 : index
    %c0_49 = arith.constant 0 : index
    %165 = vector.load %arg14[%164, %c0_48, %c0_49] : memref<2x1x32xf32, #tpu.memory_space<vmem>>, vector<1x1x32xf32>
    %166 = vector.shape_cast %165 : vector<1x1x32xf32> to vector<1x32xf32>
    %167 = vector.broadcast %166 : vector<1x32xf32> to vector<16x32xf32>
    %168 = arith.addf %163, %167 : vector<16x32xf32>
    %169 = arith.addf %107, %168 : vector<16x32xf32>
    %c1_i32 = arith.constant 1 : i32
    %170 = arith.index_cast %c1_i32 : i32 to index
    %c0_50 = arith.constant 0 : index
    %c0_51 = arith.constant 0 : index
    %171 = vector.load %arg3[%170, %c0_50, %c0_51] : memref<2x1x32xf32, #tpu.memory_space<vmem>>, vector<1x1x32xf32>
    %172 = vector.shape_cast %171 : vector<1x1x32xf32> to vector<1x32xf32>
    %173 = arith.index_cast %c1_i32 : i32 to index
    %c0_52 = arith.constant 0 : index
    %c0_53 = arith.constant 0 : index
    %174 = vector.load %arg4[%173, %c0_52, %c0_53] : memref<2x1x32xf32, #tpu.memory_space<vmem>>, vector<1x1x32xf32>
    %175 = vector.shape_cast %174 : vector<1x1x32xf32> to vector<1x32xf32>
    %cst_54 = arith.constant dense<0.000000e+00> : vector<16xf32>
    %176 = vector.multi_reduction <add>, %169, %cst_54 [1] : vector<16x32xf32> to vector<16xf32>
    %177 = vector.shape_cast %176 : vector<16xf32> to vector<16x1xf32>
    %cst_55 = arith.constant 3.200000e+01 : f32
    %178 = vector.broadcast %cst_55 : f32 to vector<16x1xf32>
    %179 = arith.divf %177, %178 : vector<16x1xf32>
    %180 = vector.broadcast %179 : vector<16x1xf32> to vector<16x32xf32>
    %181 = arith.subf %169, %180 : vector<16x32xf32>
    %182 = arith.mulf %181, %181 : vector<16x32xf32>
    %cst_56 = arith.constant dense<0.000000e+00> : vector<16xf32>
    %183 = vector.multi_reduction <add>, %182, %cst_56 [1] : vector<16x32xf32> to vector<16xf32>
    %184 = vector.shape_cast %183 : vector<16xf32> to vector<16x1xf32>
    %cst_57 = arith.constant 3.200000e+01 : f32
    %185 = vector.broadcast %cst_57 : f32 to vector<16x1xf32>
    %186 = arith.divf %184, %185 : vector<16x1xf32>
    %187 = vector.broadcast %179 : vector<16x1xf32> to vector<16x32xf32>
    %188 = arith.subf %169, %187 : vector<16x32xf32>
    %cst_58 = arith.constant 9.99999974E-6 : f32
    %189 = vector.broadcast %cst_58 : f32 to vector<16x1xf32>
    %190 = arith.addf %186, %189 : vector<16x1xf32>
    %191 = math.rsqrt %190 : vector<16x1xf32>
    %192 = vector.broadcast %191 : vector<16x1xf32> to vector<16x32xf32>
    %193 = arith.mulf %188, %192 : vector<16x32xf32>
    %194 = vector.broadcast %172 : vector<1x32xf32> to vector<16x32xf32>
    %195 = arith.mulf %193, %194 : vector<16x32xf32>
    %196 = vector.broadcast %175 : vector<1x32xf32> to vector<16x32xf32>
    %197 = arith.addf %195, %196 : vector<16x32xf32>
    %198 = arith.truncf %197 : vector<16x32xf32> to vector<16x32xbf16>
    %199 = arith.index_cast %c1_i32 : i32 to index
    %c0_59 = arith.constant 0 : index
    %c0_60 = arith.constant 0 : index
    %200 = vector.load %arg5[%199, %c0_59, %c0_60] : memref<2x32x96xbf16, #tpu.memory_space<vmem>>, vector<1x32x96xbf16>
    %201 = vector.shape_cast %200 : vector<1x32x96xbf16> to vector<32x96xbf16>
    %cst_61 = arith.constant dense<0.000000e+00> : vector<16x96xf32>
    %202 = tpu.matmul %198, %201, %cst_61 {dimension_numbers = #tpu.dot_dimension_numbers<[1], [0], [0], [1], [0, 0, 1, 1], [], []>} : vector<16x32xbf16>, vector<32x96xbf16>, vector<16x96xf32> -> vector<16x96xf32>
    %203 = arith.index_cast %c1_i32 : i32 to index
    %c0_62 = arith.constant 0 : index
    %c0_63 = arith.constant 0 : index
    %204 = vector.load %arg6[%203, %c0_62, %c0_63] : memref<2x1x96xf32, #tpu.memory_space<vmem>>, vector<1x1x96xf32>
    %205 = vector.shape_cast %204 : vector<1x1x96xf32> to vector<1x96xf32>
    %206 = vector.broadcast %205 : vector<1x96xf32> to vector<16x96xf32>
    %207 = arith.addf %202, %206 : vector<16x96xf32>
    %208 = vector.extract_strided_slice %207 {offsets = [0, 0], sizes = [16, 32], strides = [1, 1]} : vector<16x96xf32> to vector<16x32xf32>
    %209 = arith.truncf %208 : vector<16x32xf32> to vector<16x32xbf16>
    %210 = vector.shape_cast %209 : vector<16x32xbf16> to vector<2x8x32xbf16>
    %211 = vector.extract_strided_slice %210 {offsets = [0, 0, 0], sizes = [2, 8, 8], strides = [1, 1, 1]} : vector<2x8x32xbf16> to vector<2x8x8xbf16>
    %212 = vector.extract_strided_slice %210 {offsets = [0, 0, 8], sizes = [2, 8, 8], strides = [1, 1, 1]} : vector<2x8x32xbf16> to vector<2x8x8xbf16>
    %213 = vector.extract_strided_slice %210 {offsets = [0, 0, 16], sizes = [2, 8, 8], strides = [1, 1, 1]} : vector<2x8x32xbf16> to vector<2x8x8xbf16>
    %214 = vector.extract_strided_slice %210 {offsets = [0, 0, 24], sizes = [2, 8, 8], strides = [1, 1, 1]} : vector<2x8x32xbf16> to vector<2x8x8xbf16>
    %215 = tpu.concatenate %211, %212, %213, %214 in 0 : vector<2x8x8xbf16>, vector<2x8x8xbf16>, vector<2x8x8xbf16>, vector<2x8x8xbf16> -> vector<8x8x8xbf16>
    %216 = vector.extract_strided_slice %207 {offsets = [0, 32], sizes = [16, 32], strides = [1, 1]} : vector<16x96xf32> to vector<16x32xf32>
    %217 = arith.truncf %216 : vector<16x32xf32> to vector<16x32xbf16>
    %218 = vector.shape_cast %217 : vector<16x32xbf16> to vector<2x8x32xbf16>
    %219 = vector.extract_strided_slice %218 {offsets = [0, 0, 0], sizes = [2, 8, 8], strides = [1, 1, 1]} : vector<2x8x32xbf16> to vector<2x8x8xbf16>
    %220 = vector.extract_strided_slice %218 {offsets = [0, 0, 8], sizes = [2, 8, 8], strides = [1, 1, 1]} : vector<2x8x32xbf16> to vector<2x8x8xbf16>
    %221 = vector.extract_strided_slice %218 {offsets = [0, 0, 16], sizes = [2, 8, 8], strides = [1, 1, 1]} : vector<2x8x32xbf16> to vector<2x8x8xbf16>
    %222 = vector.extract_strided_slice %218 {offsets = [0, 0, 24], sizes = [2, 8, 8], strides = [1, 1, 1]} : vector<2x8x32xbf16> to vector<2x8x8xbf16>
    %223 = tpu.concatenate %219, %220, %221, %222 in 0 : vector<2x8x8xbf16>, vector<2x8x8xbf16>, vector<2x8x8xbf16>, vector<2x8x8xbf16> -> vector<8x8x8xbf16>
    %224 = vector.extract_strided_slice %207 {offsets = [0, 64], sizes = [16, 32], strides = [1, 1]} : vector<16x96xf32> to vector<16x32xf32>
    %225 = arith.truncf %224 : vector<16x32xf32> to vector<16x32xbf16>
    %226 = vector.shape_cast %225 : vector<16x32xbf16> to vector<2x8x32xbf16>
    %227 = vector.extract_strided_slice %226 {offsets = [0, 0, 0], sizes = [2, 8, 8], strides = [1, 1, 1]} : vector<2x8x32xbf16> to vector<2x8x8xbf16>
    %228 = vector.extract_strided_slice %226 {offsets = [0, 0, 8], sizes = [2, 8, 8], strides = [1, 1, 1]} : vector<2x8x32xbf16> to vector<2x8x8xbf16>
    %229 = vector.extract_strided_slice %226 {offsets = [0, 0, 16], sizes = [2, 8, 8], strides = [1, 1, 1]} : vector<2x8x32xbf16> to vector<2x8x8xbf16>
    %230 = vector.extract_strided_slice %226 {offsets = [0, 0, 24], sizes = [2, 8, 8], strides = [1, 1, 1]} : vector<2x8x32xbf16> to vector<2x8x8xbf16>
    %231 = tpu.concatenate %227, %228, %229, %230 in 0 : vector<2x8x8xbf16>, vector<2x8x8xbf16>, vector<2x8x8xbf16>, vector<2x8x8xbf16> -> vector<8x8x8xbf16>
    "tpu.trace_start"() <{level = 10 : i32, message = "bqd,bkd->bqk"}> : () -> ()
    %cst_64 = arith.constant dense<0.000000e+00> : vector<8x8x8xf32>
    %232 = tpu.matmul %215, %223, %cst_64 {dimension_numbers = #tpu.dot_dimension_numbers<[2], [2], [1], [1], [0, 0, 0, 1, 1, 1], [0], [0]>} : vector<8x8x8xbf16>, vector<8x8x8xbf16>, vector<8x8x8xf32> -> vector<8x8x8xf32>
    "tpu.trace_stop"() : () -> ()
    %cst_65 = arith.constant 0.353553385 : f32
    %233 = vector.broadcast %cst_65 : f32 to vector<8x8x8xf32>
    %234 = arith.mulf %232, %233 : vector<8x8x8xf32>
    %235 = arith.addf %234, %4 : vector<8x8x8xf32>
    %cst_66 = arith.constant dense<0xFF800000> : vector<8x8xf32>
    %236 = vector.multi_reduction <maximumf>, %235, %cst_66 [2] : vector<8x8x8xf32> to vector<8x8xf32>
    %237 = vector.shape_cast %236 : vector<8x8xf32> to vector<8x8x1xf32>
    %238 = vector.broadcast %237 : vector<8x8x1xf32> to vector<8x8x8xf32>
    %239 = arith.subf %235, %238 : vector<8x8x8xf32>
    %240 = math.exp %239 : vector<8x8x8xf32>
    %cst_67 = arith.constant dense<0.000000e+00> : vector<8x8xf32>
    %241 = vector.multi_reduction <add>, %240, %cst_67 [2] : vector<8x8x8xf32> to vector<8x8xf32>
    %242 = vector.shape_cast %241 : vector<8x8xf32> to vector<8x8x1xf32>
    %243 = vector.broadcast %242 : vector<8x8x1xf32> to vector<8x8x8xf32>
    %244 = arith.divf %240, %243 : vector<8x8x8xf32>
    %245 = arith.truncf %244 : vector<8x8x8xf32> to vector<8x8x8xbf16>
    "tpu.trace_start"() <{level = 10 : i32, message = "bqk,bkd->bqd"}> : () -> ()
    %cst_68 = arith.constant dense<0.000000e+00> : vector<8x8x8xf32>
    %246 = tpu.matmul %245, %231, %cst_68 {dimension_numbers = #tpu.dot_dimension_numbers<[2], [1], [1], [2], [0, 0, 0, 1, 1, 2], [0], [0]>} : vector<8x8x8xbf16>, vector<8x8x8xbf16>, vector<8x8x8xf32> -> vector<8x8x8xf32>
    "tpu.trace_stop"() : () -> ()
    %247 = vector.shape_cast %246 : vector<8x8x8xf32> to vector<4x2x8x8xf32>
    %248 = vector.extract_strided_slice %247 {offsets = [0, 0, 0, 0], sizes = [1, 2, 8, 8], strides = [1, 1, 1, 1]} : vector<4x2x8x8xf32> to vector<1x2x8x8xf32>
    %249 = vector.shape_cast %248 : vector<1x2x8x8xf32> to vector<2x8x8xf32>
    %250 = vector.shape_cast %249 : vector<2x8x8xf32> to vector<16x8xf32>
    %251 = vector.extract_strided_slice %247 {offsets = [1, 0, 0, 0], sizes = [1, 2, 8, 8], strides = [1, 1, 1, 1]} : vector<4x2x8x8xf32> to vector<1x2x8x8xf32>
    %252 = vector.shape_cast %251 : vector<1x2x8x8xf32> to vector<2x8x8xf32>
    %253 = vector.shape_cast %252 : vector<2x8x8xf32> to vector<16x8xf32>
    %254 = vector.extract_strided_slice %247 {offsets = [2, 0, 0, 0], sizes = [1, 2, 8, 8], strides = [1, 1, 1, 1]} : vector<4x2x8x8xf32> to vector<1x2x8x8xf32>
    %255 = vector.shape_cast %254 : vector<1x2x8x8xf32> to vector<2x8x8xf32>
    %256 = vector.shape_cast %255 : vector<2x8x8xf32> to vector<16x8xf32>
    %257 = vector.extract_strided_slice %247 {offsets = [3, 0, 0, 0], sizes = [1, 2, 8, 8], strides = [1, 1, 1, 1]} : vector<4x2x8x8xf32> to vector<1x2x8x8xf32>
    %258 = vector.shape_cast %257 : vector<1x2x8x8xf32> to vector<2x8x8xf32>
    %259 = vector.shape_cast %258 : vector<2x8x8xf32> to vector<16x8xf32>
    %260 = tpu.concatenate %250, %253, %256, %259 in 1 : vector<16x8xf32>, vector<16x8xf32>, vector<16x8xf32>, vector<16x8xf32> -> vector<16x32xf32>
    %261 = arith.truncf %260 : vector<16x32xf32> to vector<16x32xbf16>
    %262 = arith.index_cast %c1_i32 : i32 to index
    %c0_69 = arith.constant 0 : index
    %c0_70 = arith.constant 0 : index
    %263 = vector.load %arg7[%262, %c0_69, %c0_70] : memref<2x32x32xbf16, #tpu.memory_space<vmem>>, vector<1x32x32xbf16>
    %264 = vector.shape_cast %263 : vector<1x32x32xbf16> to vector<32x32xbf16>
    %cst_71 = arith.constant dense<0.000000e+00> : vector<16x32xf32>
    %265 = tpu.matmul %261, %264, %cst_71 {dimension_numbers = #tpu.dot_dimension_numbers<[1], [0], [0], [1], [0, 0, 1, 1], [], []>} : vector<16x32xbf16>, vector<32x32xbf16>, vector<16x32xf32> -> vector<16x32xf32>
    %266 = arith.index_cast %c1_i32 : i32 to index
    %c0_72 = arith.constant 0 : index
    %c0_73 = arith.constant 0 : index
    %267 = vector.load %arg8[%266, %c0_72, %c0_73] : memref<2x1x32xf32, #tpu.memory_space<vmem>>, vector<1x1x32xf32>
    %268 = vector.shape_cast %267 : vector<1x1x32xf32> to vector<1x32xf32>
    %269 = vector.broadcast %268 : vector<1x32xf32> to vector<16x32xf32>
    %270 = arith.addf %265, %269 : vector<16x32xf32>
    %271 = arith.addf %169, %270 : vector<16x32xf32>
    %272 = arith.index_cast %c1_i32 : i32 to index
    %c0_74 = arith.constant 0 : index
    %c0_75 = arith.constant 0 : index
    %273 = vector.load %arg9[%272, %c0_74, %c0_75] : memref<2x1x32xf32, #tpu.memory_space<vmem>>, vector<1x1x32xf32>
    %274 = vector.shape_cast %273 : vector<1x1x32xf32> to vector<1x32xf32>
    %275 = arith.index_cast %c1_i32 : i32 to index
    %c0_76 = arith.constant 0 : index
    %c0_77 = arith.constant 0 : index
    %276 = vector.load %arg10[%275, %c0_76, %c0_77] : memref<2x1x32xf32, #tpu.memory_space<vmem>>, vector<1x1x32xf32>
    %277 = vector.shape_cast %276 : vector<1x1x32xf32> to vector<1x32xf32>
    %cst_78 = arith.constant dense<0.000000e+00> : vector<16xf32>
    %278 = vector.multi_reduction <add>, %271, %cst_78 [1] : vector<16x32xf32> to vector<16xf32>
    %279 = vector.shape_cast %278 : vector<16xf32> to vector<16x1xf32>
    %cst_79 = arith.constant 3.200000e+01 : f32
    %280 = vector.broadcast %cst_79 : f32 to vector<16x1xf32>
    %281 = arith.divf %279, %280 : vector<16x1xf32>
    %282 = vector.broadcast %281 : vector<16x1xf32> to vector<16x32xf32>
    %283 = arith.subf %271, %282 : vector<16x32xf32>
    %284 = arith.mulf %283, %283 : vector<16x32xf32>
    %cst_80 = arith.constant dense<0.000000e+00> : vector<16xf32>
    %285 = vector.multi_reduction <add>, %284, %cst_80 [1] : vector<16x32xf32> to vector<16xf32>
    %286 = vector.shape_cast %285 : vector<16xf32> to vector<16x1xf32>
    %cst_81 = arith.constant 3.200000e+01 : f32
    %287 = vector.broadcast %cst_81 : f32 to vector<16x1xf32>
    %288 = arith.divf %286, %287 : vector<16x1xf32>
    %289 = vector.broadcast %281 : vector<16x1xf32> to vector<16x32xf32>
    %290 = arith.subf %271, %289 : vector<16x32xf32>
    %cst_82 = arith.constant 9.99999974E-6 : f32
    %291 = vector.broadcast %cst_82 : f32 to vector<16x1xf32>
    %292 = arith.addf %288, %291 : vector<16x1xf32>
    %293 = math.rsqrt %292 : vector<16x1xf32>
    %294 = vector.broadcast %293 : vector<16x1xf32> to vector<16x32xf32>
    %295 = arith.mulf %290, %294 : vector<16x32xf32>
    %296 = vector.broadcast %274 : vector<1x32xf32> to vector<16x32xf32>
    %297 = arith.mulf %295, %296 : vector<16x32xf32>
    %298 = vector.broadcast %277 : vector<1x32xf32> to vector<16x32xf32>
    %299 = arith.addf %297, %298 : vector<16x32xf32>
    %300 = arith.truncf %299 : vector<16x32xf32> to vector<16x32xbf16>
    %301 = arith.index_cast %c1_i32 : i32 to index
    %c0_83 = arith.constant 0 : index
    %c0_84 = arith.constant 0 : index
    %302 = vector.load %arg11[%301, %c0_83, %c0_84] : memref<2x32x128xbf16, #tpu.memory_space<vmem>>, vector<1x32x128xbf16>
    %303 = vector.shape_cast %302 : vector<1x32x128xbf16> to vector<32x128xbf16>
    %cst_85 = arith.constant dense<0.000000e+00> : vector<16x128xf32>
    %304 = tpu.matmul %300, %303, %cst_85 {dimension_numbers = #tpu.dot_dimension_numbers<[1], [0], [0], [1], [0, 0, 1, 1], [], []>} : vector<16x32xbf16>, vector<32x128xbf16>, vector<16x128xf32> -> vector<16x128xf32>
    %305 = arith.index_cast %c1_i32 : i32 to index
    %c0_86 = arith.constant 0 : index
    %c0_87 = arith.constant 0 : index
    %306 = vector.load %arg12[%305, %c0_86, %c0_87] : memref<2x1x128xf32, #tpu.memory_space<vmem>>, vector<1x1x128xf32>
    %307 = vector.shape_cast %306 : vector<1x1x128xf32> to vector<1x128xf32>
    %308 = vector.broadcast %307 : vector<1x128xf32> to vector<16x128xf32>
    %309 = arith.addf %304, %308 : vector<16x128xf32>
    %310 = arith.mulf %309, %309 : vector<16x128xf32>
    %311 = arith.mulf %309, %310 : vector<16x128xf32>
    %cst_88 = arith.constant 4.471500e-02 : f32
    %312 = vector.broadcast %cst_88 : f32 to vector<16x128xf32>
    %313 = arith.mulf %312, %311 : vector<16x128xf32>
    %314 = arith.addf %309, %313 : vector<16x128xf32>
    %cst_89 = arith.constant 0.797884583 : f32
    %315 = vector.broadcast %cst_89 : f32 to vector<16x128xf32>
    %316 = arith.mulf %315, %314 : vector<16x128xf32>
    %317 = math.tanh %316 : vector<16x128xf32>
    %cst_90 = arith.constant 1.000000e+00 : f32
    %318 = vector.broadcast %cst_90 : f32 to vector<16x128xf32>
    %319 = arith.addf %318, %317 : vector<16x128xf32>
    %cst_91 = arith.constant 5.000000e-01 : f32
    %320 = vector.broadcast %cst_91 : f32 to vector<16x128xf32>
    %321 = arith.mulf %320, %319 : vector<16x128xf32>
    %322 = arith.mulf %309, %321 : vector<16x128xf32>
    %323 = arith.truncf %322 : vector<16x128xf32> to vector<16x128xbf16>
    %324 = arith.index_cast %c1_i32 : i32 to index
    %c0_92 = arith.constant 0 : index
    %c0_93 = arith.constant 0 : index
    %325 = vector.load %arg13[%324, %c0_92, %c0_93] : memref<2x128x32xbf16, #tpu.memory_space<vmem>>, vector<1x128x32xbf16>
    %326 = vector.shape_cast %325 : vector<1x128x32xbf16> to vector<128x32xbf16>
    %cst_94 = arith.constant dense<0.000000e+00> : vector<16x32xf32>
    %327 = tpu.matmul %323, %326, %cst_94 {dimension_numbers = #tpu.dot_dimension_numbers<[1], [0], [0], [1], [0, 0, 1, 1], [], []>} : vector<16x128xbf16>, vector<128x32xbf16>, vector<16x32xf32> -> vector<16x32xf32>
    %328 = arith.index_cast %c1_i32 : i32 to index
    %c0_95 = arith.constant 0 : index
    %c0_96 = arith.constant 0 : index
    %329 = vector.load %arg14[%328, %c0_95, %c0_96] : memref<2x1x32xf32, #tpu.memory_space<vmem>>, vector<1x1x32xf32>
    %330 = vector.shape_cast %329 : vector<1x1x32xf32> to vector<1x32xf32>
    %331 = vector.broadcast %330 : vector<1x32xf32> to vector<16x32xf32>
    %332 = arith.addf %327, %331 : vector<16x32xf32>
    %333 = arith.addf %271, %332 : vector<16x32xf32>
    %c2_i32 = arith.constant 2 : i32
    %c0_97 = arith.constant 0 : index
    %c0_98 = arith.constant 0 : index
    %334 = vector.load %arg15[%c0_97, %c0_98] : memref<1x32xf32, #tpu.memory_space<vmem>>, vector<1x32xf32>
    %c0_99 = arith.constant 0 : index
    %c0_100 = arith.constant 0 : index
    %335 = vector.load %arg16[%c0_99, %c0_100] : memref<1x32xf32, #tpu.memory_space<vmem>>, vector<1x32xf32>
    %cst_101 = arith.constant dense<0.000000e+00> : vector<16xf32>
    %336 = vector.multi_reduction <add>, %333, %cst_101 [1] : vector<16x32xf32> to vector<16xf32>
    %337 = vector.shape_cast %336 : vector<16xf32> to vector<16x1xf32>
    %cst_102 = arith.constant 3.200000e+01 : f32
    %338 = vector.broadcast %cst_102 : f32 to vector<16x1xf32>
    %339 = arith.divf %337, %338 : vector<16x1xf32>
    %340 = vector.broadcast %339 : vector<16x1xf32> to vector<16x32xf32>
    %341 = arith.subf %333, %340 : vector<16x32xf32>
    %342 = arith.mulf %341, %341 : vector<16x32xf32>
    %cst_103 = arith.constant dense<0.000000e+00> : vector<16xf32>
    %343 = vector.multi_reduction <add>, %342, %cst_103 [1] : vector<16x32xf32> to vector<16xf32>
    %344 = vector.shape_cast %343 : vector<16xf32> to vector<16x1xf32>
    %cst_104 = arith.constant 3.200000e+01 : f32
    %345 = vector.broadcast %cst_104 : f32 to vector<16x1xf32>
    %346 = arith.divf %344, %345 : vector<16x1xf32>
    %347 = vector.broadcast %339 : vector<16x1xf32> to vector<16x32xf32>
    %348 = arith.subf %333, %347 : vector<16x32xf32>
    %cst_105 = arith.constant 9.99999974E-6 : f32
    %349 = vector.broadcast %cst_105 : f32 to vector<16x1xf32>
    %350 = arith.addf %346, %349 : vector<16x1xf32>
    %351 = math.rsqrt %350 : vector<16x1xf32>
    %352 = vector.broadcast %351 : vector<16x1xf32> to vector<16x32xf32>
    %353 = arith.mulf %348, %352 : vector<16x32xf32>
    %354 = vector.broadcast %334 : vector<1x32xf32> to vector<16x32xf32>
    %355 = arith.mulf %353, %354 : vector<16x32xf32>
    %356 = vector.broadcast %335 : vector<1x32xf32> to vector<16x32xf32>
    %357 = arith.addf %355, %356 : vector<16x32xf32>
    %358 = arith.truncf %357 : vector<16x32xf32> to vector<16x32xbf16>
    %c0_106 = arith.constant 0 : index
    %c0_107 = arith.constant 0 : index
    %359 = vector.load %arg17[%c0_106, %c0_107] : memref<32x128xbf16, #tpu.memory_space<vmem>>, vector<32x128xbf16>
    %cst_108 = arith.constant dense<0.000000e+00> : vector<16x128xf32>
    %360 = tpu.matmul %358, %359, %cst_108 {dimension_numbers = #tpu.dot_dimension_numbers<[1], [0], [0], [1], [0, 0, 1, 1], [], []>} : vector<16x32xbf16>, vector<32x128xbf16>, vector<16x128xf32> -> vector<16x128xf32>
    %c0_109 = arith.constant 0 : index
    %c0_110 = arith.constant 0 : index
    %361 = vector.load %arg18[%c0_109, %c0_110] : memref<16x128xf32, #tpu.memory_space<vmem>>, vector<16x128xf32>
    tpu.vector_store %arg18[%c0_109, %c0_110], %360 {strides = array<i32>} : memref<16x128xf32, #tpu.memory_space<vmem>>, vector<16x128xf32>,
    return
  }
  func.func @transform_0(%arg0: i32) -> (i32, i32) {
    %c0_i32 = arith.constant 0 : i32
    %c0_i32_0 = arith.constant 0 : i32
    return %arg0, %c0_i32 : i32, i32
  }
  func.func @transform_1(%arg0: i32) -> (i32, i32, i32) {
    %c0_i32 = arith.constant 0 : i32
    %c0_i32_0 = arith.constant 0 : i32
    %c0_i32_1 = arith.constant 0 : i32
    return %arg0, %c0_i32, %c0_i32_0 : i32, i32, i32
  }
  func.func @transform_2(%arg0: i32) -> (i32, i32, i32) {
    %c0_i32 = arith.constant 0 : i32
    %c0_i32_0 = arith.constant 0 : i32
    %c0_i32_1 = arith.constant 0 : i32
    %c0_i32_2 = arith.constant 0 : i32
    return %c0_i32, %c0_i32_0, %c0_i32_1 : i32, i32, i32
  }
  func.func @transform_3(%arg0: i32) -> (i32, i32, i32) {
    %c0_i32 = arith.constant 0 : i32
    %c0_i32_0 = arith.constant 0 : i32
    %c0_i32_1 = arith.constant 0 : i32
    %c0_i32_2 = arith.constant 0 : i32
    return %c0_i32, %c0_i32_0, %c0_i32_1 : i32, i32, i32
  }
  func.func @transform_4(%arg0: i32) -> (i32, i32, i32) {
    %c0_i32 = arith.constant 0 : i32
    %c0_i32_0 = arith.constant 0 : i32
    %c0_i32_1 = arith.constant 0 : i32
    %c0_i32_2 = arith.constant 0 : i32
    return %c0_i32, %c0_i32_0, %c0_i32_1 : i32, i32, i32
  }
  func.func @transform_5(%arg0: i32) -> (i32, i32, i32) {
    %c0_i32 = arith.constant 0 : i32
    %c0_i32_0 = arith.constant 0 : i32
    %c0_i32_1 = arith.constant 0 : i32
    %c0_i32_2 = arith.constant 0 : i32
    return %c0_i32, %c0_i32_0, %c0_i32_1 : i32, i32, i32
  }
  func.func @transform_6(%arg0: i32) -> (i32, i32, i32) {
    %c0_i32 = arith.constant 0 : i32
    %c0_i32_0 = arith.constant 0 : i32
    %c0_i32_1 = arith.constant 0 : i32
    %c0_i32_2 = arith.constant 0 : i32
    return %c0_i32, %c0_i32_0, %c0_i32_1 : i32, i32, i32
  }
  func.func @transform_7(%arg0: i32) -> (i32, i32, i32) {
    %c0_i32 = arith.constant 0 : i32
    %c0_i32_0 = arith.constant 0 : i32
    %c0_i32_1 = arith.constant 0 : i32
    %c0_i32_2 = arith.constant 0 : i32
    return %c0_i32, %c0_i32_0, %c0_i32_1 : i32, i32, i32
  }
  func.func @transform_8(%arg0: i32) -> (i32, i32, i32) {
    %c0_i32 = arith.constant 0 : i32
    %c0_i32_0 = arith.constant 0 : i32
    %c0_i32_1 = arith.constant 0 : i32
    %c0_i32_2 = arith.constant 0 : i32
    return %c0_i32, %c0_i32_0, %c0_i32_1 : i32, i32, i32
  }
  func.func @transform_9(%arg0: i32) -> (i32, i32, i32) {
    %c0_i32 = arith.constant 0 : i32
    %c0_i32_0 = arith.constant 0 : i32
    %c0_i32_1 = arith.constant 0 : i32
    %c0_i32_2 = arith.constant 0 : i32
    return %c0_i32, %c0_i32_0, %c0_i32_1 : i32, i32, i32
  }
  func.func @transform_10(%arg0: i32) -> (i32, i32, i32) {
    %c0_i32 = arith.constant 0 : i32
    %c0_i32_0 = arith.constant 0 : i32
    %c0_i32_1 = arith.constant 0 : i32
    %c0_i32_2 = arith.constant 0 : i32
    return %c0_i32, %c0_i32_0, %c0_i32_1 : i32, i32, i32
  }
  func.func @transform_11(%arg0: i32) -> (i32, i32, i32) {
    %c0_i32 = arith.constant 0 : i32
    %c0_i32_0 = arith.constant 0 : i32
    %c0_i32_1 = arith.constant 0 : i32
    %c0_i32_2 = arith.constant 0 : i32
    return %c0_i32, %c0_i32_0, %c0_i32_1 : i32, i32, i32
  }
  func.func @transform_12(%arg0: i32) -> (i32, i32, i32) {
    %c0_i32 = arith.constant 0 : i32
    %c0_i32_0 = arith.constant 0 : i32
    %c0_i32_1 = arith.constant 0 : i32
    %c0_i32_2 = arith.constant 0 : i32
    return %c0_i32, %c0_i32_0, %c0_i32_1 : i32, i32, i32
  }
  func.func @transform_13(%arg0: i32) -> (i32, i32, i32) {
    %c0_i32 = arith.constant 0 : i32
    %c0_i32_0 = arith.constant 0 : i32
    %c0_i32_1 = arith.constant 0 : i32
    %c0_i32_2 = arith.constant 0 : i32
    return %c0_i32, %c0_i32_0, %c0_i32_1 : i32, i32, i32
  }
  func.func @transform_14(%arg0: i32) -> (i32, i32) {
    %c0_i32 = arith.constant 0 : i32
    %c0_i32_0 = arith.constant 0 : i32
    %c0_i32_1 = arith.constant 0 : i32
    return %c0_i32, %c0_i32_0 : i32, i32
  }
  func.func @transform_15(%arg0: i32) -> (i32, i32) {
    %c0_i32 = arith.constant 0 : i32
    %c0_i32_0 = arith.constant 0 : i32
    %c0_i32_1 = arith.constant 0 : i32
    return %c0_i32, %c0_i32_0 : i32, i32
  }
  func.func @transform_16(%arg0: i32) -> (i32, i32) {
    %c0_i32 = arith.constant 0 : i32
    %c0_i32_0 = arith.constant 0 : i32
    %c0_i32_1 = arith.constant 0 : i32
    return %c0_i32, %c0_i32_0 : i32, i32
  }
  func.func @transform_17(%arg0: i32) -> (i32, i32) {
    %c0_i32 = arith.constant 0 : i32
    %c0_i32_0 = arith.constant 0 : i32
    return %arg0, %c0_i32 : i32, i32
  }
}

</mosaic_0001>

<bundles_post_ra>
// kernel: tpu_custom_call.1
= control target key start
LH: loop header
LB: loop body
LE: loop exit
PB: predicated region body
PF: predicated region fallthrough
CT: control target
= control target key end

     0   :  { %s4463_s0 = inlined_call_operand.vmem [shape: f32[16,32], index: 0, kind: input, shape index: {}]   ;;  %s4464_s1 = inlined_call_operand.vmem [shape: f32[2,8,8], index: 1, kind: input, shape index: {}]   ;;  %s4465_s2 = inlined_call_operand.vmem [shape: f32[2,1,32], index: 2, kind: input, shape index: {}]   ;;  %s4466_s3 = inlined_call_operand.vmem [shape: f32[2,1,32], index: 3, kind: input, shape index: {}]   ;;  %s4467_s4 = inlined_call_operand.vmem [shape: bf16[2,32,96], index: 4, kind: input, shape index: {}]   ;;  %s4468_s5 = inlined_call_operand.vmem [shape: f32[2,1,96], index: 5, kind: input, shape index: {}]   ;;  %s4469_s6 = inlined_call_operand.vmem [shape: bf16[2,32,32], index: 6, kind: input, shape index: {}]   ;;  %s4470_s7 = inlined_call_operand.vmem [shape: f32[2,1,32], index: 7, kind: input, shape index: {}]   ;;  %s4471_s8 = inlined_call_operand.vmem [shape: f32[2,1,32], index: 8, kind: input, shape index: {}]   ;;  %s4472_s9 = inlined_call_operand.vmem [shape: f32[2,1,32], index: 9, kind: input, shape index: {}]   ;;  %s4473_s10 = inlined_call_operand.vmem [shape: bf16[2,32,128], index: 10, kind: input, shape index: {}]   ;;  %s4474_s11 = inlined_call_operand.vmem [shape: f32[2,1,128], index: 11, kind: input, shape index: {}]   ;;  %s4475_s12 = inlined_call_operand.vmem [shape: bf16[2,128,32], index: 12, kind: input, shape index: {}]   ;;  %s4476_s13 = inlined_call_operand.vmem [shape: f32[2,1,32], index: 13, kind: input, shape index: {}]   ;;  %s4477_s14 = inlined_call_operand.vmem [shape: f32[1,32], index: 14, kind: input, shape index: {}]   ;;  %s4478_s15 = inlined_call_operand.vmem [shape: f32[1,32], index: 15, kind: input, shape index: {}]   ;;  %s4479_s16 = inlined_call_operand.vmem [shape: bf16[32,128], index: 16, kind: input, shape index: {}]   ;;  %s4480_s17 = inlined_call_operand.hbm [shape: f32[16,128], index: 17, kind: output, shape index: {}]  }
   0x1   :  { %4484 = sst [smem:[#allocation5_spill]] %s4463_s0 }
   0x2   :  { %4485 = sst [smem:[#allocation6_spill]] %s4464_s1 }
   0x3   :  { %s4486_s26 = sld [smem:[#allocation5_spill]]  ;;  %vm64_vm0 = vcmask 261120  }
   0x9   :  { %v3766_v0 = vld [vmem:[%s4486_s26] sm:$0xff]  ;;  %v3771_v1 = vld [vmem:[%s4486_s26 + $0x8] sm:$0xff] }
   0xa   :  { %v65_v2 = vsel %vm64_vm0, %v3766_v0, 0.0  ;;  %v68_v3 = vsel %vm64_vm0, %v3771_v1, 0.0 }
   0xb   :  { %66 = vadd.xlane.f32.xlu0 %v65_v2 }
   0xf   :  { %69 = vadd.xlane.f32.xlu0 %v68_v3 }
  0x10   :  { %22 = vsyncpa [#allocation3], 0  ;;  %v3513_v14 = vld [vmem:[%s4467_s4] sm:$0xff]   ;;  %v3661_v15 = vmov 0.0   ;;  %vm3662_vm1 = vmmov 0   ;;  %v3514_v16 = vld [vmem:[%s4467_s4 + $0x8] sm:$0xff]  }
  0x11   :  { %3183 = vmatprep.subr.bf16.mxu1 %v3661_v15  ;;  %3187 = vmatprep.mubr.msk.bf16.mxu1 %vm3662_vm1, %v3661_v15  ;;  %v2937_v25 = vld [vmem:[%s4465_s2] ss:$0 sm:$0xff]  ;;  %s3663_s24 = smov 120   ;;  %s3664_s25 = smov 104   ;;  %vm196_vm2 = vcmask 64512   ;;  %vm708_vm3 = vcmask 1043456  }
  0x12   :  { %3184 = vmatpush3.bf16.msra.mxu1 %v3513_v14  ;;  %3197 = vmatprep.subr.bf16.mxu0 %v3661_v15  ;;  %v2938_v29 = vld [vmem:[%s4466_s3] ss:$0 sm:$0xff]  ;;  %s3665_s26 = smov 112   ;;  %s3666_s27 = smov 96   ;;  %vm1114_vm4 = vcmask 130048   ;;  %vm1117_vm5 = vcmask 195584  }
  0x13   :  { %3185 = vmatprep.subr.bf16.mxu1 %v3661_v15  ;;  %3199 = vmatprep.mubr.msk.bf16.mxu0 %vm3662_vm1, %v3661_v15  ;;  %v2939_v34 = vld [vmem:[%s4468_s5] ss:$0 sm:$0xff]  ;;  %s4487_s0 = sld [smem:[#allocation6_spill]]  ;;  %s3667_s19 = smov 64  }
  0x14   :  { %s3668_s1 = smov 8   ;;  %s3669_s22 = smov 16  }
  0x15   :  { %s4483_s29 = smov 24   ;;  %s3671_s23 = smov [#allocation2]  }
  0x16   :  { %3186 = vmatpush3.bf16.msra.mxu1 %v3514_v16 }
  0x17   :  { %3191 = vmatprep.subr.bf16.mxu1 %v3661_v15 }
  0x98   :  { %v67_v4 = vpop.xlane.xlu0 %66 }
  0x99   :  { %v72_v5 = vmul.f32 0.03125, %v67_v4 }
  0x9b   :  { %v74_v6 = vsub.f32 %v3766_v0, %v72_v5 }
  0x9c   :  { %v70_v7 = vpop.xlane.xlu0 %69 }
  0x9d   :  { %v73_v8 = vmul.f32 0.03125, %v70_v7  ;;  %v76_v9 = vmul.f32 %v74_v6, %v74_v6 }
  0x9f   :  { %v75_v10 = vsub.f32 %v3771_v1, %v73_v8  ;;  %v78_v11 = vsel %vm64_vm0, %v76_v9, 0.0 }
  0xa0   :  { %79 = vadd.xlane.f32.xlu1 %v78_v11 }
  0xa1   :  { %v77_v12 = vmul.f32 %v75_v10, %v75_v10 }
  0xa3   :  { %v81_v13 = vsel %vm64_vm0, %v77_v12, 0.0 }
  0xa4   :  { %82 = vadd.xlane.f32.xlu1 %v81_v13 }
 0x12d   :  { %v80_v17 = vpop.xlane.xlu1 %79 }
 0x12e   :  { %v84_v18 = vmul.f32 0.03125, %v80_v17 }
 0x130   :  { %v86_v19 = vadd.f32 1e-05, %v84_v18 }
 0x131   :  { %v83_v20 = vpop.xlane.xlu1 %82 }
 0x132   :  { %3543 = vrsqrt.f32 %v86_v19  ;;  %v85_v21 = vmul.f32 0.03125, %v83_v20  ;;  %v59_v19 = vld [vmem:[%s4487_s0 + $0x8] sm:$0xff] }
 0x134   :  { %v87_v22 = vadd.f32 1e-05, %v85_v21 }
 0x136   :  { %3545 = vrsqrt.f32 %v87_v22 }
 0x13c   :  { %v3544_v23 = vpop.eup %3543 }
 0x13d   :  { %v90_v24 = vmul.f32 %v3544_v23, %v74_v6 }
 0x13f   :  { %v98_v28 = vmul.f32 %v2937_v25, %v90_v24 }
 0x140   :  { %v3546_v26 = vpop.eup %3545 }
 0x141   :  { %v91_v27 = vmul.f32 %v3546_v26, %v75_v10  ;;  %v106_v31 = vadd.f32 %v2938_v29, %v98_v28  ;;  %v58_v10 = vld [vmem:[%s4487_s0] sm:$0xff] }
 0x143   :  { %v99_v30 = vmul.f32 %v2937_v25, %v91_v27 }
 0x145   :  { %v107_v32 = vadd.f32 %v2938_v29, %v99_v30 }
 0x147   :  { %v108_v33 = vpack.c.bf16 %v107_v32, %v106_v31 }
 0x149   :  { %3188 = vmatmul.mubr.msk.bf16.vlgmr.msra.gmra.mrb[0].mxu1 %vm64_vm0, %v108_v33 }
 0x14a   :  { %3193 = vmatprep.mubr.msk.bf16.mxu1 %vm3662_vm1, %v3661_v15 }
 0x21c   :  { %v169_v35 = vpop.f32.mrb[0].mxu1 }
 0x21d   :  { %v170_v36 = vadd.f32 %v2939_v34, %v169_v35  ;;  %v3189_v37 = vpop.f32.mrb[1].mxu1 }
 0x21e   :  { %v172_v38 = vpop.f32.mrb[2].mxu1 }
 0x21f   :  { %v3807_v39 = vpack.c.bf16 %v170_v36, %v170_v36  ;;  %v173_v40 = vadd.f32 %v2939_v34, %v172_v38  ;;  %v3190_v41 = vpop.f32.mrb[3].mxu1 }
 0x221   :  { %v3809_v42 = vpack.c.bf16 %v173_v40, %v173_v40  ;;  %182 = vrot.lane.b32.xlu0 %v3807_v39, %s3663_s24 }
 0x223   :  { %184 = vrot.lane.b32.xlu1 %v3809_v42, %s3663_s24 }
 0x225   :  { %190 = vrot.lane.b32.xlu0 %v3807_v39, %s3664_s25 }
 0x227   :  { %186 = vrot.lane.b32.xlu1 %v3807_v39, %s3665_s26 }
 0x229   :  { %194 = vrot.lane.b32.xlu0 %v3807_v39, %s3666_s27 }
 0x22b   :  { %188 = vrot.lane.b32.xlu1 %v3809_v42, %s3665_s26 }
 0x22f   :  { %192 = vrot.lane.b32.xlu1 %v3809_v42, %s3664_s25 }
 0x233   :  { %243 = vrot.lane.b32.xlu1 %v3809_v42, %s3666_s27 }
 0x293   :  { %v183_v43 = vpop.permute.xlu0 %182 }
 0x294   :  { %v3827_v44 = vcombine.low %v183_v43, %v183_v43 }
 0x295   :  { %v185_v45 = vpop.permute.xlu1 %184 }
 0x296   :  { %v3829_v46 = vcombine.low %v185_v45, %v185_v45  ;;  %293 = vrot.lane.b32.xlu0 %v3827_v44, %s3666_s27 }
 0x297   :  { %v191_v47 = vpop.permute.xlu0 %190 }
 0x298   :  { %343 = vrot.lane.b32.xlu1 %v3829_v46, %s3666_s27  ;;  %v3840_v53 = vcombine.low %v191_v47, %v191_v47 }
 0x299   :  { %v187_v48 = vpop.permute.xlu1 %186 }
 0x29a   :  { %v3835_v49 = vcombine.low %v187_v48, %v187_v48 }
 0x29b   :  { %v195_v50 = vpop.permute.xlu0 %194 }
 0x29c   :  { %v201_v51 = vsel %vm196_vm2, %v195_v50, 0  ;;  %393 = vrot.lane.b32.xlu0 %v3835_v49, %s3666_s27 }
 0x29d   :  { %3192 = vmatpush3.bf16.xpose.msra.mxu1 %v201_v51  ;;  %v189_v52 = vpop.permute.xlu1 %188 }
 0x29e   :  { %v3842_v54 = vcombine.low %v189_v52, %v189_v52  ;;  %3203 = vmatprep.subr.bf16.mxu1 %v3661_v15 }
 0x2a0   :  { %493 = vrot.lane.b32.xlu0 %v3840_v53, %s3666_s27  ;;  %443 = vrot.lane.b32.xlu1 %v3842_v54, %s3666_s27 }
 0x2a1   :  { %v193_v55 = vpop.permute.xlu1 %192 }
 0x2a2   :  { %v3849_v56 = vcombine.low %v193_v55, %v193_v55 }
 0x2a4   :  { %3194 = vmatmul.mubr.msk.bf16.vlgmr.msra.gmra.mrb[4].mxu1 %vm196_vm2, %v3807_v39  ;;  %543 = vrot.lane.b32.xlu1 %v3849_v56, %s3666_s27 }
 0x2a5   :  { %v244_v57 = vpop.permute.xlu1 %243  ;;  %3205 = vmatprep.mubr.msk.bf16.mxu1 %vm3662_vm1, %v3661_v15 }
 0x2a6   :  { %v249_v58 = vsel %vm196_vm2, %v244_v57, 0 }
 0x2a7   :  { %3198 = vmatpush3.bf16.xpose.msra.mxu0 %v249_v58 }
 0x2a8   :  { %3209 = vmatprep.subr.bf16.mxu0 %v3661_v15 }
 0x2ae   :  { %3200 = vmatmul.mubr.msk.bf16.vlgmr.msra.gmra.mrb[0].mxu0 %vm196_vm2, %v3809_v42 }
 0x2af   :  { %3211 = vmatprep.mubr.msk.bf16.mxu0 %vm3662_vm1, %v3661_v15 }
 0x308   :  { %v294_v59 = vpop.permute.xlu0 %293 }
 0x309   :  { %v299_v60 = vsel %vm196_vm2, %v294_v59, 0 }
 0x30a   :  { %3204 = vmatpush3.bf16.xpose.msra.mxu1 %v299_v60  ;;  %v344_v61 = vpop.permute.xlu1 %343 }
 0x30b   :  { %v349_v62 = vsel %vm196_vm2, %v344_v61, 0  ;;  %3215 = vmatprep.subr.bf16.mxu1 %v3661_v15 }
 0x30c   :  { %3210 = vmatpush3.bf16.xpose.msra.mxu0 %v349_v62 }
 0x30d   :  { %3221 = vmatprep.subr.bf16.mxu0 %v3661_v15 }
 0x30e   :  { %v394_v63 = vpop.permute.xlu0 %393 }
 0x30f   :  { %v399_v2 = vsel %vm196_vm2, %v394_v63, 0 }
 0x311   :  { %3206 = vmatmul.mubr.msk.bf16.vlgmr.msra.gmra.mrb[8].mxu1 %vm196_vm2, %v183_v43 }
 0x312   :  { %3216 = vmatpush3.bf16.xpose.msra.mxu1 %v399_v2  ;;  %v444_v3 = vpop.permute.xlu1 %443  ;;  %3217 = vmatprep.mubr.msk.bf16.mxu1 %vm3662_vm1, %v3661_v15  ;;  %v494_v5 = vpop.permute.xlu0 %493 }
 0x313   :  { %v449_v4 = vsel %vm196_vm2, %v444_v3, 0  ;;  %3212 = vmatmul.mubr.msk.bf16.vlgmr.msra.gmra.mrb[4].mxu0 %vm196_vm2, %v185_v45  ;;  %3227 = vmatprep.subr.bf16.mxu1 %v3661_v15  ;;  %v499_v7 = vsel %vm196_vm2, %v494_v5, 0 }
 0x314   :  { %3222 = vmatpush3.bf16.xpose.msra.mxu0 %v449_v4  ;;  %3223 = vmatprep.mubr.msk.bf16.mxu0 %vm3662_vm1, %v3661_v15 }
 0x315   :  { %3233 = vmatprep.subr.bf16.mxu0 %v3661_v15 }
 0x316   :  { %v544_v6 = vpop.permute.xlu1 %543 }
 0x317   :  { %v549_v8 = vsel %vm196_vm2, %v544_v6, 0 }
 0x319   :  { %3218 = vmatmul.mubr.msk.bf16.vlgmr.msra.gmra.mrb[12].mxu1 %vm196_vm2, %v187_v48 }
 0x31a   :  { %3228 = vmatpush3.bf16.xpose.msra.mxu1 %v499_v7  ;;  %3229 = vmatprep.mubr.msk.bf16.mxu1 %vm3662_vm1, %v3661_v15 }
 0x31b   :  { %3224 = vmatmul.mubr.msk.bf16.vlgmr.msra.gmra.mrb[8].mxu0 %vm196_vm2, %v189_v52  ;;  %3239 = vmatprep.subr.bf16.mxu1 %v3661_v15 }
 0x31c   :  { %3234 = vmatpush3.bf16.xpose.msra.mxu0 %v549_v8  ;;  %3235 = vmatprep.mubr.msk.bf16.mxu0 %vm3662_vm1, %v3661_v15 }
 0x31d   :  { %3245 = vmatprep.subr.bf16.mxu0 %v3661_v15 }
 0x321   :  { %3230 = vmatmul.mubr.msk.bf16.vlgmr.msra.gmra.mrb[16].mxu1 %vm196_vm2, %v191_v47 }
 0x322   :  { %3241 = vmatprep.mubr.msk.bf16.mxu1 %vm3662_vm1, %v3661_v15 }
 0x323   :  { %3236 = vmatmul.mubr.msk.bf16.vlgmr.msra.gmra.mrb[12].mxu0 %vm196_vm2, %v193_v55 }
 0x324   :  { %3247 = vmatprep.mubr.msk.bf16.mxu0 %vm3662_vm1, %v3661_v15 }
 0x377   :  { %v237_v9 = vpop.f32.mrb[4].mxu1 }
 0x378   :  { %v591_v11 = vmul.f32 0.35355338, %v237_v9  ;;  %v3195_v12 = vpop.f32.mrb[5].mxu1 }
 0x379   :  { %v240_v13 = vpop.f32.mrb[6].mxu1 }
 0x37a   :  { %v3196_v14 = vpop.f32.mrb[7].mxu1  ;;  %v599_v16 = vadd.f32 %v591_v11, %v58_v10 }
 0x37c   :  { %v607_v17 = vsel %vm196_vm2, %v599_v16, -inf }
 0x37d   :  { %608 = vmax.xlane.f32.xlu0 %v607_v17 }
 0x381   :  { %v285_v18 = vpop.f32.mrb[0].mxu0 }
 0x382   :  { %v592_v20 = vmul.f32 0.35355338, %v285_v18  ;;  %v3201_v21 = vpop.f32.mrb[1].mxu0 }
 0x383   :  { %v288_v22 = vpop.f32.mrb[2].mxu0 }
 0x384   :  { %v3202_v23 = vpop.f32.mrb[3].mxu0  ;;  %v3900_v24 = vadd.f32 %v592_v20, %v59_v19 }
 0x386   :  { %v610_v25 = vsel %vm196_vm2, %v3900_v24, -inf }
 0x387   :  { %611 = vmax.xlane.f32.xlu1 %v610_v25 }
 0x3e4   :  { %v335_v26 = vpop.f32.mrb[8].mxu1 }
 0x3e5   :  { %v593_v27 = vmul.f32 0.35355338, %v335_v26  ;;  %v3207_v28 = vpop.f32.mrb[9].mxu1 }
 0x3e6   :  { %v338_v29 = vpop.f32.mrb[10].mxu1  ;;  %v385_v30 = vpop.f32.mrb[4].mxu0 }
 0x3e7   :  { %v594_v31 = vmul.f32 0.35355338, %v385_v30  ;;  %v3208_v32 = vpop.f32.mrb[11].mxu1  ;;  %v3213_v33 = vpop.f32.mrb[5].mxu0  ;;  %v601_v34 = vadd.f32 %v593_v27, %v58_v10 }
 0x3e8   :  { %v388_v35 = vpop.f32.mrb[6].mxu0 }
 0x3e9   :  { %v3214_v36 = vpop.f32.mrb[7].mxu0  ;;  %v613_v37 = vsel %vm196_vm2, %v601_v34, -inf  ;;  %v3905_v38 = vadd.f32 %v594_v31, %v59_v19 }
 0x3ea   :  { %614 = vmax.xlane.f32.xlu0 %v613_v37 }
 0x3eb   :  { %v616_v45 = vsel %vm196_vm2, %v3905_v38, -inf }
 0x3ec   :  { %v435_v40 = vpop.f32.mrb[12].mxu1 }
 0x3ed   :  { %v595_v41 = vmul.f32 0.35355338, %v435_v40  ;;  %v3219_v43 = vpop.f32.mrb[13].mxu1 }
 0x3ee   :  { %v438_v47 = vpop.f32.mrb[14].mxu1  ;;  %v485_v48 = vpop.f32.mrb[8].mxu0  ;;  %617 = vmax.xlane.f32.xlu0 %v616_v45 }
 0x3ef   :  { %v596_v50 = vmul.f32 0.35355338, %v485_v48  ;;  %v3220_v51 = vpop.f32.mrb[15].mxu1  ;;  %v3225_v52 = vpop.f32.mrb[9].mxu0  ;;  %v3909_v55 = vadd.f32 %v595_v41, %v58_v10 }
 0x3f0   :  { %v488_v57 = vpop.f32.mrb[10].mxu0 }
 0x3f1   :  { %v3226_v58 = vpop.f32.mrb[11].mxu0  ;;  %v619_v59 = vsel %vm196_vm2, %v3909_v55, -inf  ;;  %v604_v60 = vadd.f32 %v596_v50, %v59_v19 }
 0x3f2   :  { %620 = vmax.xlane.f32.xlu0 %v619_v59 }
 0x3f3   :  { %v622_v61 = vsel %vm196_vm2, %v604_v60, -inf }
 0x3f4   :  { %v535_v62 = vpop.f32.mrb[16].mxu1  ;;  %623 = vmax.xlane.f32.xlu1 %v622_v61 }
 0x3f5   :  { %v597_v63 = vmul.f32 0.35355338, %v535_v62  ;;  %v3231_v2 = vpop.f32.mrb[17].mxu1 }
 0x3f6   :  { %v538_v3 = vpop.f32.mrb[18].mxu1  ;;  %v585_v4 = vpop.f32.mrb[12].mxu0 }
 0x3f7   :  { %v3232_v5 = vpop.f32.mrb[19].mxu1  ;;  %v3237_v6 = vpop.f32.mrb[13].mxu0  ;;  %v3914_v7 = vadd.f32 %v597_v63, %v58_v10  ;;  %v598_v14 = vmul.f32 0.35355338, %v585_v4 }
 0x3f8   :  { %v588_v8 = vpop.f32.mrb[14].mxu0 }
 0x3f9   :  { %v3238_v9 = vpop.f32.mrb[15].mxu0  ;;  %v625_v11 = vsel %vm196_vm2, %v3914_v7, -inf  ;;  %v606_v17 = vadd.f32 %v598_v14, %v59_v19 }
 0x3fa   :  { %626 = vmax.xlane.f32.xlu0 %v625_v11 }
 0x3fb   :  { %v628_v20 = vsel %vm196_vm2, %v606_v17, -inf }
 0x405   :  { %752 = vrot.lane.b32.xlu1 %v3809_v42, %s3667_s19 }
 0x409   :  { %800 = vrot.lane.b32.xlu1 %v3827_v44, %s3667_s19 }
 0x40a   :  { %v609_v12 = vpop.xlane.xlu0 %608 }
 0x40b   :  { %v631_v13 = vsub.f32 %v599_v16, %v609_v12 }
 0x40d   :  { %v639_v10 = vmul.f32 1.442695, %v631_v13 }
 0x40f   :  { %3547 = vpow2.f32 %v639_v10 }
 0x410   :  { %703 = vrot.lane.b32.xlu0 %v3807_v39, %s3667_s19 }
 0x414   :  { %v612_v44 = vpop.xlane.xlu1 %611 }
 0x415   :  { %v632_v39 = vsub.f32 %v3900_v24, %v612_v44 }
 0x417   :  { %v641_v16 = vmul.f32 1.442695, %v632_v39 }
 0x419   :  { %v3924_v18 = vpop.eup %3547  ;;  %3549 = vpow2.f32 %v641_v16 }
 0x41a   :  { %v655_v42 = vsel %vm196_vm2, %v3924_v18, 0.0 }
 0x423   :  { %v3932_v21 = vpop.eup %3549 }
 0x424   :  { %v658_v19 = vsel %vm196_vm2, %v3932_v21, 0.0 }
 0x42d   :  { %629 = vmax.xlane.f32.xlu1 %v628_v20 }
 0x42f   :  { %656 = vadd.xlane.f32.xlu0 %v655_v42 }
 0x43e   :  { %848 = vrot.lane.b32.xlu1 %v3829_v46, %s3667_s19 }
 0x462   :  { %659 = vadd.xlane.f32.xlu1 %v658_v19 }
 0x473   :  { %944 = vrot.lane.b32.xlu1 %v3842_v54, %s3667_s19 }
 0x477   :  { %v615_v22 = vpop.xlane.xlu0 %614 }
 0x478   :  { %v633_v23 = vsub.f32 %v601_v34, %v615_v22 }
 0x47a   :  { %v643_v25 = vmul.f32 1.442695, %v633_v23 }
 0x47b   :  { %v618_v26 = vpop.xlane.xlu0 %617 }
 0x47c   :  { %3551 = vpow2.f32 %v643_v25  ;;  %v634_v46 = vsub.f32 %v3905_v38, %v618_v26 }
 0x47e   :  { %v645_v28 = vmul.f32 1.442695, %v634_v46 }
 0x47f   :  { %v621_v24 = vpop.xlane.xlu0 %620 }
 0x480   :  { %3553 = vpow2.f32 %v645_v28  ;;  %v635_v43 = vsub.f32 %v3909_v55, %v621_v24 }
 0x481   :  { %v624_v27 = vpop.xlane.xlu1 %623 }
 0x482   :  { %v636_v29 = vsub.f32 %v604_v60, %v624_v27  ;;  %v647_v45 = vmul.f32 1.442695, %v635_v43 }
 0x484   :  { %v649_v34 = vmul.f32 1.442695, %v636_v29 }
 0x485   :  { %v753_v30 = vpop.permute.xlu1 %752 }
 0x486   :  { %v3939_v31 = vpop.eup %3551  ;;  %v758_v32 = vsel %vm708_vm3, %v753_v30, 0  ;;  %3555 = vpow2.f32 %v649_v34 }
 0x487   :  { %3246 = vmatpush3.bf16.msra.mxu0 %v758_v32  ;;  %v627_v33 = vpop.xlane.xlu0 %626  ;;  %v661_v54 = vsel %vm196_vm2, %v3939_v31, 0.0  ;;  %3557 = vpow2.f32 %v647_v45 }
 0x488   :  { %662 = vadd.xlane.f32.xlu0 %v661_v54  ;;  %3257 = vmatprep.subr.bf16.mxu0 %v3661_v15  ;;  %v637_v47 = vsub.f32 %v3914_v7, %v627_v33 }
 0x489   :  { %v801_v50 = vpop.permute.xlu1 %800 }
 0x48a   :  { %v3947_v37 = vpop.eup %3553  ;;  %v651_v48 = vmul.f32 1.442695, %v637_v47  ;;  %v806_v4 = vsel %vm708_vm3, %v801_v50, 0 }
 0x48b   :  { %v704_v35 = vpop.permute.xlu0 %703  ;;  %v664_v38 = vsel %vm196_vm2, %v3947_v37, 0.0 }
 0x48c   :  { %v710_v36 = vsel %vm708_vm3, %v704_v35, 0  ;;  %3559 = vpow2.f32 %v651_v48 }
 0x48d   :  { %3240 = vmatpush3.bf16.msra.mxu1 %v710_v36 }
 0x48e   :  { %3251 = vmatprep.subr.bf16.mxu1 %v3661_v15 }
 0x490   :  { %v3951_v40 = vpop.eup %3555 }
 0x491   :  { %v670_v41 = vsel %vm196_vm2, %v3951_v40, 0.0  ;;  %v3959_v51 = vpop.eup %3557 }
 0x492   :  { %v667_v59 = vsel %vm196_vm2, %v3959_v51, 0.0 }
 0x496   :  { %v3963_v60 = vpop.eup %3559 }
 0x497   :  { %665 = vadd.xlane.f32.xlu1 %v664_v38  ;;  %v673_v55 = vsel %vm196_vm2, %v3963_v60, 0.0 }
 0x49b   :  { %671 = vadd.xlane.f32.xlu1 %v670_v41 }
 0x49e   :  { %896 = vrot.lane.b32.xlu0 %v3835_v49, %s3667_s19 }
 0x4ba   :  { %v630_v52 = vpop.xlane.xlu1 %629 }
 0x4bb   :  { %v638_v57 = vsub.f32 %v606_v17, %v630_v52 }
 0x4bc   :  { %v657_v58 = vpop.xlane.xlu0 %656 }
 0x4bd   :  { %v653_v49 = vmul.f32 1.442695, %v638_v57  ;;  %3561 = vrcp.f32 %v657_v58  ;;  %668 = vadd.xlane.f32.xlu0 %v667_v59 }
 0x4be   :  { %v849_v5 = vpop.permute.xlu1 %848 }
 0x4bf   :  { %3563 = vpow2.f32 %v653_v49  ;;  %v854_v11 = vsel %vm708_vm3, %v849_v5, 0 }
 0x4c1   :  { %674 = vadd.xlane.f32.xlu0 %v673_v55 }
 0x4c7   :  { %v3562_v61 = vpop.eup %3561 }
 0x4c8   :  { %v680_v62 = vmul.f32 %v3562_v61, %v3924_v18 }
 0x4c9   :  { %v3968_v63 = vpop.eup %3563 }
 0x4ca   :  { %v676_v2 = vsel %vm196_vm2, %v3968_v63, 0.0  ;;  %v695_v3 = vpack.c.bf16 %v680_v62, %v680_v62 }
 0x4cb   :  { %677 = vadd.xlane.f32.xlu1 %v676_v2 }
 0x4cc   :  { %3242 = vmatmul.mubr.msk.bf16.vlgmr.msra.gmra.mrb[20].mxu1 %vm196_vm2, %v695_v3  ;;  %v3515_v3 = vld [vmem:[%s4469_s6] sm:$0xff]  }
 0x4cd   :  { %3252 = vmatpush3.bf16.msra.mxu1 %v806_v4  ;;  %3253 = vmatprep.mubr.msk.bf16.mxu1 %vm3662_vm1, %v3661_v15 }
 0x4ce   :  { %3263 = vmatprep.subr.bf16.mxu1 %v3661_v15 }
 0x4d7   :  { %992 = vrot.lane.b32.xlu0 %v3840_v53, %s3667_s19 }
 0x4dc   :  { %1040 = vrot.lane.b32.xlu1 %v3849_v56, %s3667_s19 }
 0x4ef   :  { %v660_v6 = vpop.xlane.xlu1 %659 }
 0x4f0   :  { %3565 = vrcp.f32 %v660_v6 }
 0x4f3   :  { %v945_v12 = vpop.permute.xlu1 %944 }
 0x4fa   :  { %v3566_v7 = vpop.eup %3565 }
 0x4fb   :  { %v682_v8 = vmul.f32 %v3566_v7, %v3932_v21  ;;  %v950_v21 = vsel %vm708_vm3, %v945_v12, 0 }
 0x4fd   :  { %v696_v9 = vpack.c.bf16 %v682_v8, %v682_v8 }
 0x4ff   :  { %3248 = vmatmul.mubr.msk.bf16.vlgmr.msra.gmra.mrb[16].mxu0 %vm196_vm2, %v696_v9  ;;  %v3516_v9 = vld [vmem:[%s4469_s6 + $0x8] sm:$0xff]  }
 0x500   :  { %3258 = vmatpush3.bf16.msra.mxu0 %v854_v11  ;;  %3259 = vmatprep.mubr.msk.bf16.mxu0 %vm3662_vm1, %v3661_v15 }
 0x501   :  { %3269 = vmatprep.subr.bf16.mxu0 %v3661_v15 }
 0x515   :  { %v663_v53 = vpop.xlane.xlu0 %662 }
 0x516   :  { %3567 = vrcp.f32 %v663_v53 }
 0x519   :  { %v897_v10 = vpop.permute.xlu0 %896 }
 0x51a   :  { %v902_v18 = vsel %vm708_vm3, %v897_v10, 0 }
 0x520   :  { %v3568_v56 = vpop.eup %3567 }
 0x521   :  { %v684_v13 = vmul.f32 %v3568_v56, %v3939_v31 }
 0x523   :  { %v697_v14 = vpack.c.bf16 %v684_v13, %v684_v13 }
 0x524   :  { %v666_v17 = vpop.xlane.xlu1 %665 }
 0x525   :  { %3569 = vrcp.f32 %v666_v17  ;;  %3254 = vmatmul.mubr.msk.bf16.vlgmr.msra.gmra.mrb[24].mxu1 %vm196_vm2, %v697_v14 }
 0x526   :  { %3264 = vmatpush3.bf16.msra.mxu1 %v902_v18  ;;  %3265 = vmatprep.mubr.msk.bf16.mxu1 %vm3662_vm1, %v3661_v15 }
 0x527   :  { %3275 = vmatprep.subr.bf16.mxu1 %v3661_v15 }
 0x528   :  { %v672_v20 = vpop.xlane.xlu1 %671 }
 0x529   :  { %3571 = vrcp.f32 %v672_v20 }
 0x52f   :  { %v3570_v42 = vpop.eup %3569 }
 0x530   :  { %v686_v44 = vmul.f32 %v3570_v42, %v3947_v37 }
 0x532   :  { %v698_v39 = vpack.c.bf16 %v686_v44, %v686_v44 }
 0x533   :  { %v3572_v16 = vpop.eup %3571 }
 0x534   :  { %3260 = vmatmul.mubr.msk.bf16.vlgmr.msra.gmra.mrb[20].mxu0 %vm196_vm2, %v698_v39  ;;  %v690_v19 = vmul.f32 %v3572_v16, %v3951_v40 }
 0x535   :  { %3270 = vmatpush3.bf16.msra.mxu0 %v950_v21  ;;  %3271 = vmatprep.mubr.msk.bf16.mxu0 %vm3662_vm1, %v3661_v15 }
 0x536   :  { %3281 = vmatprep.subr.bf16.mxu0 %v3661_v15  ;;  %v700_v22 = vpack.c.bf16 %v690_v19, %v690_v19 }
 0x53c   :  { %3272 = vmatmul.mubr.msk.bf16.vlgmr.msra.gmra.mrb[24].mxu0 %vm196_vm2, %v700_v22 }
 0x53d   :  { %3283 = vmatprep.mubr.msk.bf16.mxu0 %vm3662_vm1, %v3661_v15 }
 0x54a   :  { %v669_v23 = vpop.xlane.xlu0 %668 }
 0x54b   :  { %3573 = vrcp.f32 %v669_v23 }
 0x54e   :  { %v675_v25 = vpop.xlane.xlu0 %674 }
 0x54f   :  { %3575 = vrcp.f32 %v675_v25 }
 0x552   :  { %v993_v27 = vpop.permute.xlu0 %992 }
 0x553   :  { %v998_v30 = vsel %vm708_vm3, %v993_v27, 0 }
 0x555   :  { %v3574_v26 = vpop.eup %3573 }
 0x556   :  { %v688_v46 = vmul.f32 %v3574_v26, %v3959_v51 }
 0x558   :  { %v678_v24 = vpop.xlane.xlu1 %677  ;;  %v699_v28 = vpack.c.bf16 %v688_v46, %v688_v46 }
 0x559   :  { %v3576_v29 = vpop.eup %3575  ;;  %3577 = vrcp.f32 %v678_v24 }
 0x55a   :  { %3266 = vmatmul.mubr.msk.bf16.vlgmr.msra.gmra.mrb[28].mxu1 %vm196_vm2, %v699_v28  ;;  %v692_v31 = vmul.f32 %v3576_v29, %v3963_v60 }
 0x55b   :  { %3276 = vmatpush3.bf16.msra.mxu1 %v998_v30  ;;  %3277 = vmatprep.mubr.msk.bf16.mxu1 %vm3662_vm1, %v3661_v15  ;;  %v2967_v30 = vld [vmem:[%s4470_s7] ss:$0 sm:$0xff] }
 0x55c   :  { %v1041_v32 = vpop.permute.xlu1 %1040  ;;  %3287 = vmatprep.subr.bf16.mxu1 %v3661_v15  ;;  %v701_v54 = vpack.c.bf16 %v692_v31, %v692_v31 }
 0x55d   :  { %v1046_v33 = vsel %vm708_vm3, %v1041_v32, 0 }
 0x55e   :  { %3282 = vmatpush3.bf16.msra.mxu0 %v1046_v33 }
 0x55f   :  { %3295 = vmatprep.subr.bf16.mxu0 %v3661_v15 }
 0x562   :  { %3278 = vmatmul.mubr.msk.bf16.vlgmr.msra.gmra.mrb[32].mxu1 %vm196_vm2, %v701_v54 }
 0x563   :  { %v3578_v34 = vpop.eup %3577  ;;  %3291 = vmatprep.mubr.msk.bf16.mxu1 %vm3662_vm1, %v3661_v15  ;;  %3288 = vmatpush3.bf16.msra.mxu1 %v3515_v3  ;;  %v2971_v3 = vld [vmem:[%s4471_s8] ss:$0 sm:$0xff] }
 0x564   :  { %v694_v35 = vmul.f32 %v3578_v34, %v3968_v63  ;;  %3289 = vmatprep.subr.bf16.mxu1 %v3661_v15 }
 0x566   :  { %v702_v36 = vpack.c.bf16 %v694_v35, %v694_v35 }
 0x567   :  { %3290 = vmatpush3.bf16.msra.mxu1 %v3516_v9 }
 0x568   :  { %3284 = vmatmul.mubr.msk.bf16.vlgmr.msra.gmra.mrb[28].mxu0 %vm196_vm2, %v702_v36  ;;  %3303 = vmatprep.subr.bf16.mxu1 %v3661_v15 }
 0x569   :  { %3299 = vmatprep.mubr.msk.bf16.mxu0 %vm3662_vm1, %v3661_v15 }
 0x59f   :  { %v746_v37 = vpop.f32.mrb[20].mxu1 }
 0x5a0   :  { %v3243_v38 = vpop.f32.mrb[21].mxu1 }
 0x5a1   :  { %v749_v40 = vpop.f32.mrb[22].mxu1 }
 0x5a2   :  { %v3244_v41 = vpop.f32.mrb[23].mxu1 }
 0x5d2   :  { %v794_v43 = vpop.f32.mrb[16].mxu0 }
 0x5d3   :  { %v3249_v45 = vpop.f32.mrb[17].mxu0 }
 0x5d4   :  { %v797_v47 = vpop.f32.mrb[18].mxu0 }
 0x5d5   :  { %v3250_v48 = vpop.f32.mrb[19].mxu0 }
 0x5f8   :  { %v842_v50 = vpop.f32.mrb[24].mxu1 }
 0x5f9   :  { %v3255_v51 = vpop.f32.mrb[25].mxu1 }
 0x5fa   :  { %v845_v52 = vpop.f32.mrb[26].mxu1 }
 0x5fb   :  { %v3256_v57 = vpop.f32.mrb[27].mxu1 }
 0x5fc   :  { %v3517_v57 = vld [vmem:[%s4473_s10] sm:$0xff]  }
 0x5fd   :  { %3296 = vmatpush3.bf16.msra.mxu0 %v3517_v57 }
 0x5fe   :  { %3297 = vmatprep.subr.bf16.mxu0 %v3661_v15 }
 0x607   :  { %v890_v58 = vpop.f32.mrb[20].mxu0 }
 0x608   :  { %v3483_v59 = vpack.i.bf16 %v890_v58, %v842_v50  ;;  %v3261_v60 = vpop.f32.mrb[21].mxu0  ;;  %v3518_v58 = vld [vmem:[%s4473_s10 + $0x8] sm:$0xff]  }
 0x609   :  { %v893_v49 = vpop.f32.mrb[22].mxu0  ;;  %3298 = vmatpush3.bf16.msra.mxu0 %v3518_v58 }
 0x60a   :  { %v3262_v55 = vpop.f32.mrb[23].mxu0  ;;  %3484 = vrot.lane.b32.xlu0 %v3483_v59, %s3668_s1  ;;  %3323 = vmatprep.subr.bf16.mxu0 %v3661_v15 }
 0x60f   :  { %v986_v61 = vpop.f32.mrb[24].mxu0 }
 0x610   :  { %v3273_v62 = vpop.f32.mrb[25].mxu0 }
 0x611   :  { %v989_v63 = vpop.f32.mrb[26].mxu0 }
 0x612   :  { %v3274_v2 = vpop.f32.mrb[27].mxu0 }
 0x62d   :  { %v938_v4 = vpop.f32.mrb[28].mxu1 }
 0x62e   :  { %v3488_v5 = vpack.i.bf16 %v986_v61, %v938_v4  ;;  %v3267_v6 = vpop.f32.mrb[29].mxu1 }
 0x62f   :  { %v941_v7 = vpop.f32.mrb[30].mxu1 }
 0x630   :  { %3489 = vrot.lane.b32.xlu1 %v3488_v5, %s3669_s22  ;;  %v3268_v8 = vpop.f32.mrb[31].mxu1  ;;  %v2972_v7 = vld [vmem:[%s4472_s9] ss:$0 sm:$0xff] }
 0x635   :  { %v1034_v11 = vpop.f32.mrb[32].mxu1 }
 0x636   :  { %v3279_v53 = vpop.f32.mrb[33].mxu1 }
 0x637   :  { %v1037_v56 = vpop.f32.mrb[34].mxu1 }
 0x638   :  { %v3280_v12 = vpop.f32.mrb[35].mxu1  ;;  %v3519_v56 = vld [vmem:[%s4475_s12] sm:$0xff]  }
 0x639   :  { %v3520_v12 = vld [vmem:[%s4475_s12 + $0x8] sm:$0xff]  }
 0x63b   :  { %v1082_v13 = vpop.f32.mrb[28].mxu0 }
 0x63c   :  { %v3493_v10 = vpack.i.bf16 %v1082_v13, %v1034_v11  ;;  %v3285_v14 = vpop.f32.mrb[29].mxu0  ;;  %v3521_v13 = vld [vmem:[%s4475_s12 + $0x10] sm:$0xff]  }
 0x63d   :  { %v1085_v17 = vpop.f32.mrb[30].mxu0  ;;  %v3523_v14 = vld [vmem:[%s4475_s12 + $0x20] sm:$0xff]  }
 0x63e   :  { %v3286_v18 = vpop.f32.mrb[31].mxu0  ;;  %3494 = vrot.lane.b32.xlu0 %v3493_v10, %s4483_s29  ;;  %v3522_v10 = vld [vmem:[%s4475_s12 + $0x18] sm:$0xff]   ;;  %v3524_v17 = vld [vmem:[%s4475_s12 + $0x28] sm:$0xff]  }
 0x63f   :  { %v3525_v18 = vld [vmem:[%s4475_s12 + $0x30] sm:$0xff]  }
 0x67c   :  { %v3485_v20 = vpop.permute.xlu0 %3484 }
 0x67d   :  { %v3487_v44 = vunpack.i.h.bf16 %v3485_v20  ;;  %v3486_v39 = vunpack.i.l.bf16 %v3485_v20  ;;  %v3526_v20 = vld [vmem:[%s4475_s12 + $0x38] sm:$0xff]  }
 0x67f   :  { %v1113_v22 = vsel %vm196_vm2, %v794_v43, %v3487_v44  ;;  %v1112_v23 = vsel %vm196_vm2, %v746_v37, %v3486_v39 }
 0x6a2   :  { %v3490_v42 = vpop.permute.xlu1 %3489 }
 0x6a3   :  { %v3492_v16 = vunpack.i.h.bf16 %v3490_v42  ;;  %v3491_v21 = vunpack.i.l.bf16 %v3490_v42  ;;  %v2973_v42 = vld [vmem:[%s4474_s11] ss:$0 sm:$0xff] }
 0x6a5   :  { %v1115_v46 = vsel %vm1114_vm4, %v1112_v23, %v3491_v21  ;;  %v1116_v27 = vsel %vm1114_vm4, %v1113_v22, %v3492_v16 }
 0x6b0   :  { %v3495_v19 = vpop.permute.xlu0 %3494 }
 0x6b1   :  { %v3497_v25 = vunpack.i.h.bf16 %v3495_v19  ;;  %v3496_v26 = vunpack.i.l.bf16 %v3495_v19 }
 0x6b3   :  { %v1118_v24 = vsel %vm1117_vm5, %v1115_v46, %v3496_v26  ;;  %v1119_v28 = vsel %vm1117_vm5, %v1116_v27, %v3497_v25 }
 0x6b4   :  { %v1120_v29 = vpack.c.bf16 %v1119_v28, %v1118_v24 }
 0x6b6   :  { %3292 = vmatmul.mubr.msk.bf16.vlgmr.msra.gmra.mrb[36].mxu1 %vm64_vm0, %v1120_v29 }
 0x6b7   :  { %3319 = vmatprep.mubr.msk.bf16.mxu1 %vm3662_vm1, %v3661_v15  ;;  %3304 = vmatpush3.bf16.msra.mxu1 %v3519_v56 }
 0x6b8   :  { %3305 = vmatprep.subr.bf16.mxu1 %v3661_v15 }
 0x6bb   :  { %3306 = vmatpush3.bf16.msra.mxu1 %v3520_v12  ;;  %v2988_v12 = vld [vmem:[%s4465_s2 + $0x1] ss:$0 sm:$0xff] }
 0x6bc   :  { %3307 = vmatprep.subr.bf16.mxu1 %v3661_v15 }
 0x6bf   :  { %3308 = vmatpush3.bf16.msra.mxu1 %v3521_v13 }
 0x6c0   :  { %3309 = vmatprep.subr.bf16.mxu1 %v3661_v15 }
 0x6c3   :  { %3310 = vmatpush3.bf16.msra.mxu1 %v3522_v10 }
 0x6c4   :  { %3311 = vmatprep.subr.bf16.mxu1 %v3661_v15 }
 0x6c7   :  { %3312 = vmatpush3.bf16.msra.mxu1 %v3523_v14 }
 0x6c8   :  { %3313 = vmatprep.subr.bf16.mxu1 %v3661_v15 }
 0x6cb   :  { %3314 = vmatpush3.bf16.msra.mxu1 %v3524_v17 }
 0x6cc   :  { %3315 = vmatprep.subr.bf16.mxu1 %v3661_v15 }
 0x6cf   :  { %3316 = vmatpush3.bf16.msra.mxu1 %v3525_v18  ;;  %v2989_v18 = vld [vmem:[%s4466_s3 + $0x1] ss:$0 sm:$0xff] }
 0x6d0   :  { %3317 = vmatprep.subr.bf16.mxu1 %v3661_v15 }
 0x6d3   :  { %3318 = vmatpush3.bf16.msra.mxu1 %v3526_v20 }
 0x6d4   :  { %3349 = vmatprep.subr.bf16.mxu1 %v3661_v15 }
 0x789   :  { %v1181_v31 = vpop.f32.mrb[36].mxu1 }
 0x78a   :  { %v1182_v32 = vadd.f32 %v2967_v30, %v1181_v31  ;;  %v3293_v33 = vpop.f32.mrb[37].mxu1 }
 0x78b   :  { %v1184_v54 = vpop.f32.mrb[38].mxu1 }
 0x78c   :  { %v4043_v34 = vadd.f32 %v1182_v32, %v3766_v0  ;;  %v1185_v35 = vadd.f32 %v2967_v30, %v1184_v54  ;;  %v3294_v36 = vpop.f32.mrb[39].mxu1 }
 0x78e   :  { %v4046_v37 = vadd.f32 %v1185_v35, %v3771_v1  ;;  %v1192_v38 = vsel %vm64_vm0, %v4043_v34, 0.0 }
 0x78f   :  { %1193 = vadd.xlane.f32.xlu1 %v1192_v38 }
 0x790   :  { %v1195_v40 = vsel %vm64_vm0, %v4046_v37, 0.0 }
 0x791   :  { %1196 = vadd.xlane.f32.xlu0 %v1195_v40 }
 0x81c   :  { %v1194_v41 = vpop.xlane.xlu1 %1193 }
 0x81d   :  { %v1198_v43 = vmul.f32 0.03125, %v1194_v41 }
 0x81e   :  { %v1197_v45 = vpop.xlane.xlu0 %1196 }
 0x81f   :  { %v1200_v47 = vsub.f32 %v4043_v34, %v1198_v43  ;;  %v1199_v0 = vmul.f32 0.03125, %v1197_v45  ;;  %v2977_v45 = vld [vmem:[%s4476_s13] ss:$0 sm:$0xff] }
 0x821   :  { %v1201_v48 = vsub.f32 %v4046_v37, %v1199_v0  ;;  %v1202_v50 = vmul.f32 %v1200_v47, %v1200_v47 }
 0x823   :  { %v1204_v1 = vsel %vm64_vm0, %v1202_v50, 0.0  ;;  %v1203_v51 = vmul.f32 %v1201_v48, %v1201_v48 }
 0x824   :  { %1205 = vadd.xlane.f32.xlu0 %v1204_v1 }
 0x825   :  { %v1207_v52 = vsel %vm64_vm0, %v1203_v51, 0.0 }
 0x828   :  { %1208 = vadd.xlane.f32.xlu0 %v1207_v52 }
 0x8b1   :  { %v1206_v59 = vpop.xlane.xlu0 %1205 }
 0x8b2   :  { %v1210_v60 = vmul.f32 0.03125, %v1206_v59 }
 0x8b4   :  { %v1212_v49 = vadd.f32 1e-05, %v1210_v60 }
 0x8b5   :  { %v1209_v55 = vpop.xlane.xlu0 %1208 }
 0x8b6   :  { %3579 = vrsqrt.f32 %v1212_v49  ;;  %v1211_v61 = vmul.f32 0.03125, %v1209_v55 }
 0x8b8   :  { %v1213_v62 = vadd.f32 1e-05, %v1211_v61 }
 0x8ba   :  { %3581 = vrsqrt.f32 %v1213_v62 }
 0x8c0   :  { %v3580_v63 = vpop.eup %3579 }
 0x8c1   :  { %v1216_v2 = vmul.f32 %v3580_v63, %v1200_v47 }
 0x8c3   :  { %v1224_v5 = vmul.f32 %v2971_v3, %v1216_v2 }
 0x8c4   :  { %v3582_v4 = vpop.eup %3581 }
 0x8c5   :  { %v1217_v6 = vmul.f32 %v3582_v4, %v1201_v48  ;;  %v1232_v9 = vadd.f32 %v2972_v7, %v1224_v5  ;;  %v3527_v4 = vld [vmem:[%s4467_s4 + $0x10] sm:$0xff]   ;;  %v3528_v5 = vld [vmem:[%s4467_s4 + $0x18] sm:$0xff]  }
 0x8c7   :  { %v1225_v8 = vmul.f32 %v2971_v3, %v1217_v6 }
 0x8c9   :  { %v1233_v11 = vadd.f32 %v2972_v7, %v1225_v8 }
 0x8cb   :  { %v1234_v53 = vpack.c.bf16 %v1233_v11, %v1232_v9 }
 0x8cd   :  { %3300 = vmatmul.mubr.msk.bf16.vlgmr.msra.gmra.mrb[32].mxu0 %vm64_vm0, %v1234_v53 }
 0x8ce   :  { %3327 = vmatprep.mubr.msk.bf16.mxu0 %vm3662_vm1, %v3661_v15  ;;  %3324 = vmatpush3.bf16.msra.mxu0 %v3527_v4 }
 0x8cf   :  { %3325 = vmatprep.subr.bf16.mxu0 %v3661_v15 }
 0x8d2   :  { %3326 = vmatpush3.bf16.msra.mxu0 %v3528_v5 }
 0x8d3   :  { %3331 = vmatprep.subr.bf16.mxu0 %v3661_v15 }
 0x9a0   :  { %v1295_v44 = vpop.f32.mrb[32].mxu0 }
 0x9a1   :  { %v1296_v39 = vadd.f32 %v2973_v42, %v1295_v44  ;;  %v3301_v16 = vpop.f32.mrb[33].mxu0 }
 0x9a2   :  { %v1298_v21 = vpop.f32.mrb[34].mxu0  ;;  %v2995_v16 = vld [vmem:[%s4468_s5 + $0x1] ss:$0 sm:$0xff] }
 0x9a3   :  { %v1302_v19 = vmul.f32 %v1296_v39, %v1296_v39  ;;  %v1299_v22 = vadd.f32 %v2973_v42, %v1298_v21  ;;  %v3302_v23 = vpop.f32.mrb[35].mxu0 }
 0x9a5   :  { %v1304_v25 = vmul.f32 %v1302_v19, %v1296_v39  ;;  %v1303_v26 = vmul.f32 %v1299_v22, %v1299_v22 }
 0x9a7   :  { %v1306_v46 = vmul.f32 0.044715, %v1304_v25  ;;  %v1305_v27 = vmul.f32 %v1303_v26, %v1299_v22 }
 0x9a9   :  { %v1308_v24 = vadd.f32 %v1306_v46, %v1296_v39  ;;  %v1307_v28 = vmul.f32 0.044715, %v1305_v27 }
 0x9ab   :  { %v1310_v29 = vmul.f32 0.7978846, %v1308_v24  ;;  %v1309_v30 = vadd.f32 %v1307_v28, %v1299_v22 }
 0x9ad   :  { %3583 = vtanh.f32 %v1310_v29  ;;  %v1311_v31 = vmul.f32 0.7978846, %v1309_v30 }
 0x9af   :  { %3585 = vtanh.f32 %v1311_v31 }
 0x9b7   :  { %v3584_v32 = vpop.eup %3583 }
 0x9b8   :  { %v1314_v33 = vadd.f32 1.0, %v3584_v32 }
 0x9b9   :  { %v3586_v54 = vpop.eup %3585 }
 0x9ba   :  { %v1316_v35 = vmul.f32 0.5, %v1314_v33  ;;  %v1315_v36 = vadd.f32 1.0, %v3586_v54 }
 0x9bc   :  { %v1317_v38 = vmul.f32 0.5, %v1315_v36  ;;  %v1318_v40 = vmul.f32 %v1316_v35, %v1296_v39 }
 0x9be   :  { %v1319_v41 = vmul.f32 %v1317_v38, %v1299_v22 }
 0x9c0   :  { %v1320_v43 = vpack.c.bf16 %v1319_v41, %v1318_v40 }
 0x9c2   :  { %3320 = vmatmul.mubr.bf16.vlgmr.msra.gmra.mrb[40].mxu1 %v1320_v43 }
 0x9c3   :  { %3351 = vmatprep.mubr.msk.bf16.mxu1 %vm3662_vm1, %v3661_v15 }
 0xa95   :  { %v1426_v47 = vpop.f32.mrb[40].mxu1 }
 0xa96   :  { %v1427_v0 = vadd.f32 %v2977_v45, %v1426_v47  ;;  %v3321_v48 = vpop.f32.mrb[41].mxu1 }
 0xa97   :  { %v1429_v50 = vpop.f32.mrb[42].mxu1 }
 0xa98   :  { %v4114_v1 = vadd.f32 %v1427_v0, %v4043_v34  ;;  %v1430_v51 = vadd.f32 %v2977_v45, %v1429_v50  ;;  %v3322_v52 = vpop.f32.mrb[43].mxu1 }
 0xa9a   :  { %v4117_v57 = vadd.f32 %v1430_v51, %v4046_v37  ;;  %v1439_v58 = vsel %vm64_vm0, %v4114_v1, 0.0 }
 0xa9b   :  { %1440 = vadd.xlane.f32.xlu1 %v1439_v58 }
 0xa9c   :  { %v1442_v59 = vsel %vm64_vm0, %v4117_v57, 0.0 }
 0xa9d   :  { %1443 = vadd.xlane.f32.xlu0 %v1442_v59 }
 0xb28   :  { %v1441_v60 = vpop.xlane.xlu1 %1440 }
 0xb29   :  { %v1445_v49 = vmul.f32 0.03125, %v1441_v60 }
 0xb2a   :  { %v1444_v55 = vpop.xlane.xlu0 %1443 }
 0xb2b   :  { %v1447_v61 = vsub.f32 %v4114_v1, %v1445_v49  ;;  %v1446_v34 = vmul.f32 0.03125, %v1444_v55 }
 0xb2d   :  { %v1448_v62 = vsub.f32 %v4117_v57, %v1446_v34  ;;  %v1449_v63 = vmul.f32 %v1447_v61, %v1447_v61 }
 0xb2f   :  { %v1451_v37 = vsel %vm64_vm0, %v1449_v63, 0.0  ;;  %v1450_v2 = vmul.f32 %v1448_v62, %v1448_v62 }
 0xb30   :  { %1452 = vadd.xlane.f32.xlu1 %v1451_v37 }
 0xb31   :  { %v1454_v3 = vsel %vm64_vm0, %v1450_v2, 0.0 }
 0xb32   :  { %1455 = vadd.xlane.f32.xlu0 %v1454_v3 }
 0xbbd   :  { %v1453_v6 = vpop.xlane.xlu1 %1452 }
 0xbbe   :  { %v1457_v7 = vmul.f32 0.03125, %v1453_v6  ;;  %v3635_v6 = vld [vmem:[%s4487_s0] sm:$0xff] }
 0xbbf   :  { %v1456_v8 = vpop.xlane.xlu0 %1455 }
 0xbc0   :  { %v1459_v9 = vadd.f32 1e-05, %v1457_v7  ;;  %v1458_v11 = vmul.f32 0.03125, %v1456_v8 }
 0xbc2   :  { %3587 = vrsqrt.f32 %v1459_v9  ;;  %v1460_v53 = vadd.f32 1e-05, %v1458_v11 }
 0xbc4   :  { %3589 = vrsqrt.f32 %v1460_v53 }
 0xbcc   :  { %v3588_v56 = vpop.eup %3587 }
 0xbcd   :  { %v1463_v13 = vmul.f32 %v3588_v56, %v1447_v61 }
 0xbce   :  { %v3590_v10 = vpop.eup %3589 }
 0xbcf   :  { %v1471_v14 = vmul.f32 %v2988_v12, %v1463_v13  ;;  %v1464_v17 = vmul.f32 %v3590_v10, %v1448_v62  ;;  %v3636_v13 = vld [vmem:[%s4487_s0 + $0x8] sm:$0xff] }
 0xbd1   :  { %v1472_v20 = vmul.f32 %v2988_v12, %v1464_v17  ;;  %v1479_v42 = vadd.f32 %v2989_v18, %v1471_v14 }
 0xbd3   :  { %v1480_v44 = vadd.f32 %v2989_v18, %v1472_v20 }
 0xbd5   :  { %v1481_v39 = vpack.c.bf16 %v1480_v44, %v1479_v42 }
 0xbd7   :  { %3328 = vmatmul.mubr.msk.bf16.vlgmr.msra.gmra.mrb[36].mxu0 %vm64_vm0, %v1481_v39 }
 0xbd8   :  { %3333 = vmatprep.mubr.msk.bf16.mxu0 %vm3662_vm1, %v3661_v15 }
 0xcaa   :  { %v1544_v21 = vpop.f32.mrb[36].mxu0 }
 0xcab   :  { %v1545_v19 = vadd.f32 %v2995_v16, %v1544_v21  ;;  %v3329_v22 = vpop.f32.mrb[37].mxu0 }
 0xcac   :  { %v1547_v23 = vpop.f32.mrb[38].mxu0 }
 0xcad   :  { %v3078_v25 = vpack.c.bf16 %v1545_v19, %v1545_v19  ;;  %v1548_v26 = vadd.f32 %v2995_v16, %v1547_v23  ;;  %v3330_v46 = vpop.f32.mrb[39].mxu0 }
 0xcaf   :  { %v4147_v27 = vpack.c.bf16 %v1548_v26, %v1548_v26  ;;  %1557 = vrot.lane.b32.xlu1 %v3078_v25, %s3663_s24 }
 0xcb1   :  { %1559 = vrot.lane.b32.xlu0 %v4147_v27, %s3663_s24 }
 0xcb3   :  { %1561 = vrot.lane.b32.xlu1 %v3078_v25, %s3665_s26 }
 0xcb5   :  { %1567 = vrot.lane.b32.xlu0 %v4147_v27, %s3664_s25 }
 0xcb7   :  { %1563 = vrot.lane.b32.xlu1 %v4147_v27, %s3665_s26 }
 0xcb9   :  { %1617 = vrot.lane.b32.xlu0 %v4147_v27, %s3666_s27 }
 0xcbb   :  { %1565 = vrot.lane.b32.xlu1 %v3078_v25, %s3664_s25 }
 0xcbf   :  { %1569 = vrot.lane.b32.xlu1 %v3078_v25, %s3666_s27 }
 0xd21   :  { %v1558_v24 = vpop.permute.xlu1 %1557 }
 0xd22   :  { %v4161_v28 = vcombine.low %v1558_v24, %v1558_v24 }
 0xd23   :  { %v1560_v29 = vpop.permute.xlu0 %1559 }
 0xd24   :  { %v4163_v30 = vcombine.low %v1560_v29, %v1560_v29  ;;  %1667 = vrot.lane.b32.xlu1 %v4161_v28, %s3666_s27 }
 0xd25   :  { %v1562_v31 = vpop.permute.xlu1 %1561 }
 0xd26   :  { %v4167_v32 = vcombine.low %v1562_v31, %v1562_v31  ;;  %1717 = vrot.lane.b32.xlu0 %v4163_v30, %s3666_s27 }
 0xd27   :  { %v1568_v35 = vpop.permute.xlu0 %1567 }
 0xd28   :  { %1767 = vrot.lane.b32.xlu1 %v4167_v32, %s3666_s27  ;;  %v4177_v38 = vcombine.low %v1568_v35, %v1568_v35 }
 0xd29   :  { %v1564_v33 = vpop.permute.xlu1 %1563 }
 0xd2a   :  { %v4173_v54 = vcombine.low %v1564_v33, %v1564_v33 }
 0xd2b   :  { %v1618_v45 = vpop.permute.xlu0 %1617 }
 0xd2c   :  { %1817 = vrot.lane.b32.xlu0 %v4173_v54, %s3666_s27  ;;  %v1623_v47 = vsel %vm196_vm2, %v1618_v45, 0 }
 0xd2d   :  { %v1566_v36 = vpop.permute.xlu1 %1565 }
 0xd2e   :  { %v4179_v40 = vcombine.low %v1566_v36, %v1566_v36 }
 0xd30   :  { %1867 = vrot.lane.b32.xlu1 %v4179_v40, %s3666_s27  ;;  %1917 = vrot.lane.b32.xlu0 %v4177_v38, %s3666_s27 }
 0xd31   :  { %v1570_v41 = vpop.permute.xlu1 %1569 }
 0xd32   :  { %v1575_v43 = vsel %vm196_vm2, %v1570_v41, 0 }
 0xd33   :  { %3332 = vmatpush3.bf16.xpose.msra.mxu0 %v1575_v43 }
 0xd34   :  { %2077 = vrot.lane.b32.xlu1 %v3078_v25, %s3667_s19  ;;  %3337 = vmatprep.subr.bf16.mxu0 %v3661_v15 }
 0xd3a   :  { %3334 = vmatmul.mubr.msk.bf16.vlgmr.msra.gmra.mrb[40].mxu0 %vm196_vm2, %v3078_v25 }
 0xd3b   :  { %3338 = vmatpush3.bf16.xpose.msra.mxu0 %v1623_v47  ;;  %3339 = vmatprep.mubr.msk.bf16.mxu0 %vm3662_vm1, %v3661_v15 }
 0xd3c   :  { %3343 = vmatprep.subr.bf16.mxu0 %v3661_v15 }
 0xd42   :  { %3340 = vmatmul.mubr.msk.bf16.vlgmr.msra.gmra.mrb[44].mxu0 %vm196_vm2, %v4147_v27 }
 0xd43   :  { %3345 = vmatprep.mubr.msk.bf16.mxu0 %vm3662_vm1, %v3661_v15 }
 0xd96   :  { %v1668_v0 = vpop.permute.xlu1 %1667 }
 0xd97   :  { %v1673_v48 = vsel %vm196_vm2, %v1668_v0, 0 }
 0xd98   :  { %3344 = vmatpush3.bf16.xpose.msra.mxu0 %v1673_v48  ;;  %v1718_v50 = vpop.permute.xlu0 %1717 }
 0xd99   :  { %v1723_v51 = vsel %vm196_vm2, %v1718_v50, 0  ;;  %3355 = vmatprep.subr.bf16.mxu0 %v3661_v15 }
 0xd9a   :  { %3350 = vmatpush3.bf16.xpose.msra.mxu1 %v1723_v51  ;;  %v1768_v52 = vpop.permute.xlu1 %1767 }
 0xd9b   :  { %3361 = vmatprep.subr.bf16.mxu1 %v3661_v15  ;;  %v1773_v59 = vsel %vm196_vm2, %v1768_v52, 0 }
 0xd9e   :  { %v1818_v58 = vpop.permute.xlu0 %1817 }
 0xd9f   :  { %3346 = vmatmul.mubr.msk.bf16.vlgmr.msra.gmra.mrb[48].mxu0 %vm196_vm2, %v1558_v24  ;;  %v1823_v60 = vsel %vm196_vm2, %v1818_v58, 0 }
 0xda0   :  { %3356 = vmatpush3.bf16.xpose.msra.mxu0 %v1773_v59  ;;  %3357 = vmatprep.mubr.msk.bf16.mxu0 %vm3662_vm1, %v3661_v15 }
 0xda1   :  { %3352 = vmatmul.mubr.msk.bf16.vlgmr.msra.gmra.mrb[44].mxu1 %vm196_vm2, %v1560_v29  ;;  %3367 = vmatprep.subr.bf16.mxu0 %v3661_v15 }
 0xda2   :  { %3362 = vmatpush3.bf16.xpose.msra.mxu1 %v1823_v60  ;;  %3363 = vmatprep.mubr.msk.bf16.mxu1 %vm3662_vm1, %v3661_v15  ;;  %v1868_v49 = vpop.permute.xlu1 %1867  ;;  %v1918_v55 = vpop.permute.xlu0 %1917 }
 0xda3   :  { %3373 = vmatprep.subr.bf16.mxu1 %v3661_v15  ;;  %v1873_v61 = vsel %vm196_vm2, %v1868_v49, 0  ;;  %v1923_v34 = vsel %vm196_vm2, %v1918_v55, 0 }
 0xda6   :  { %v2078_v62 = vpop.permute.xlu1 %2077 }
 0xda7   :  { %3358 = vmatmul.mubr.msk.bf16.vlgmr.msra.gmra.mrb[52].mxu0 %vm196_vm2, %v1562_v31  ;;  %v2083_v63 = vsel %vm708_vm3, %v2078_v62, 0 }
 0xda8   :  { %3368 = vmatpush3.bf16.xpose.msra.mxu0 %v1873_v61  ;;  %3369 = vmatprep.mubr.msk.bf16.mxu0 %vm3662_vm1, %v3661_v15 }
 0xda9   :  { %3364 = vmatmul.mubr.msk.bf16.vlgmr.msra.gmra.mrb[48].mxu1 %vm196_vm2, %v1564_v33  ;;  %3379 = vmatprep.subr.bf16.mxu0 %v3661_v15 }
 0xdaa   :  { %3374 = vmatpush3.bf16.xpose.msra.mxu1 %v1923_v34  ;;  %3375 = vmatprep.mubr.msk.bf16.mxu1 %vm3662_vm1, %v3661_v15 }
 0xdab   :  { %3385 = vmatprep.subr.bf16.mxu1 %v3661_v15 }
 0xdaf   :  { %3370 = vmatmul.mubr.msk.bf16.vlgmr.msra.gmra.mrb[56].mxu0 %vm196_vm2, %v1566_v36 }
 0xdb0   :  { %3380 = vmatpush3.bf16.msra.mxu0 %v2083_v63  ;;  %3381 = vmatprep.mubr.msk.bf16.mxu0 %vm3662_vm1, %v3661_v15 }
 0xdb1   :  { %3376 = vmatmul.mubr.msk.bf16.vlgmr.msra.gmra.mrb[52].mxu1 %vm196_vm2, %v1568_v35  ;;  %3391 = vmatprep.subr.bf16.mxu0 %v3661_v15 }
 0xdb2   :  { %3387 = vmatprep.mubr.msk.bf16.mxu1 %vm3662_vm1, %v3661_v15 }
 0xe0d   :  { %v1611_v37 = vpop.f32.mrb[40].mxu0 }
 0xe0e   :  { %v1965_v2 = vmul.f32 0.35355338, %v1611_v37  ;;  %v3335_v3 = vpop.f32.mrb[41].mxu0 }
 0xe0f   :  { %v1614_v4 = vpop.f32.mrb[42].mxu0 }
 0xe10   :  { %v3336_v5 = vpop.f32.mrb[43].mxu0  ;;  %v4232_v7 = vadd.f32 %v3635_v6, %v1965_v2 }
 0xe12   :  { %v1981_v8 = vsel %vm196_vm2, %v4232_v7, -inf }
 0xe13   :  { %1982 = vmax.xlane.f32.xlu1 %v1981_v8 }
 0xe15   :  { %v1659_v9 = vpop.f32.mrb[44].mxu0 }
 0xe16   :  { %v1966_v11 = vmul.f32 0.35355338, %v1659_v9  ;;  %v3341_v53 = vpop.f32.mrb[45].mxu0 }
 0xe17   :  { %v1662_v56 = vpop.f32.mrb[46].mxu0 }
 0xe18   :  { %v3342_v12 = vpop.f32.mrb[47].mxu0  ;;  %v1974_v10 = vadd.f32 %v3636_v13, %v1966_v11 }
 0xe1a   :  { %v1984_v14 = vsel %vm196_vm2, %v1974_v10, -inf }
 0xe1b   :  { %1985 = vmax.xlane.f32.xlu0 %v1984_v14 }
 0xe72   :  { %v1709_v17 = vpop.f32.mrb[48].mxu0 }
 0xe73   :  { %v1967_v18 = vmul.f32 0.35355338, %v1709_v17  ;;  %v3347_v20 = vpop.f32.mrb[49].mxu0 }
 0xe74   :  { %v1712_v42 = vpop.f32.mrb[50].mxu0  ;;  %v1759_v44 = vpop.f32.mrb[44].mxu1 }
 0xe75   :  { %v1968_v39 = vmul.f32 0.35355338, %v1759_v44  ;;  %v3348_v16 = vpop.f32.mrb[51].mxu0  ;;  %v3353_v21 = vpop.f32.mrb[45].mxu1  ;;  %v1975_v19 = vadd.f32 %v3635_v6, %v1967_v18 }
 0xe76   :  { %v1762_v22 = vpop.f32.mrb[46].mxu1 }
 0xe77   :  { %v3354_v23 = vpop.f32.mrb[47].mxu1  ;;  %v1987_v25 = vsel %vm196_vm2, %v1975_v19, -inf  ;;  %v1976_v26 = vadd.f32 %v3636_v13, %v1968_v39 }
 0xe78   :  { %1988 = vmax.xlane.f32.xlu0 %v1987_v25 }
 0xe79   :  { %v1990_v31 = vsel %vm196_vm2, %v1976_v26, -inf }
 0xe7a   :  { %v1809_v46 = vpop.f32.mrb[52].mxu0 }
 0xe7b   :  { %v1969_v24 = vmul.f32 0.35355338, %v1809_v46  ;;  %v3359_v29 = vpop.f32.mrb[53].mxu0 }
 0xe7c   :  { %v1812_v33 = vpop.f32.mrb[54].mxu0  ;;  %1991 = vmax.xlane.f32.xlu0 %v1990_v31  ;;  %v1859_v35 = vpop.f32.mrb[48].mxu1 }
 0xe7d   :  { %v1970_v36 = vmul.f32 0.35355338, %v1859_v35  ;;  %v3360_v41 = vpop.f32.mrb[55].mxu0  ;;  %v3365_v43 = vpop.f32.mrb[49].mxu1  ;;  %v1977_v45 = vadd.f32 %v3635_v6, %v1969_v24 }
 0xe7e   :  { %v1862_v47 = vpop.f32.mrb[50].mxu1 }
 0xe7f   :  { %v3366_v0 = vpop.f32.mrb[51].mxu1  ;;  %v1993_v48 = vsel %vm196_vm2, %v1977_v45, -inf  ;;  %v4243_v50 = vadd.f32 %v3636_v13, %v1970_v36 }
 0xe80   :  { %1994 = vmax.xlane.f32.xlu1 %v1993_v48 }
 0xe81   :  { %v1996_v51 = vsel %vm196_vm2, %v4243_v50, -inf }
 0xe82   :  { %v1909_v52 = vpop.f32.mrb[56].mxu0  ;;  %1997 = vmax.xlane.f32.xlu0 %v1996_v51 }
 0xe83   :  { %v1971_v58 = vmul.f32 0.35355338, %v1909_v52  ;;  %v3371_v59 = vpop.f32.mrb[57].mxu0 }
 0xe84   :  { %v1912_v60 = vpop.f32.mrb[58].mxu0  ;;  %v1959_v49 = vpop.f32.mrb[52].mxu1 }
 0xe85   :  { %v1972_v55 = vmul.f32 0.35355338, %v1959_v49  ;;  %v3372_v61 = vpop.f32.mrb[59].mxu0  ;;  %v3377_v34 = vpop.f32.mrb[53].mxu1  ;;  %v1979_v62 = vadd.f32 %v3635_v6, %v1971_v58 }
 0xe86   :  { %v1962_v63 = vpop.f32.mrb[54].mxu1 }
 0xe87   :  { %v3378_v37 = vpop.f32.mrb[55].mxu1  ;;  %v1999_v2 = vsel %vm196_vm2, %v1979_v62, -inf  ;;  %v1980_v3 = vadd.f32 %v3636_v13, %v1972_v55 }
 0xe88   :  { %2000 = vmax.xlane.f32.xlu1 %v1999_v2 }
 0xe89   :  { %v2002_v4 = vsel %vm196_vm2, %v1980_v3, -inf }
 0xe8a   :  { %2003 = vmax.xlane.f32.xlu0 %v2002_v4 }
 0xe99   :  { %2173 = vrot.lane.b32.xlu1 %v4161_v28, %s3667_s19 }
 0xe9d   :  { %2221 = vrot.lane.b32.xlu1 %v4163_v30, %s3667_s19 }
 0xea0   :  { %2125 = vrot.lane.b32.xlu0 %v4147_v27, %s3667_s19  ;;  %v1983_v5 = vpop.xlane.xlu1 %1982 }
 0xea1   :  { %v2005_v9 = vsub.f32 %v4232_v7, %v1983_v5 }
 0xea3   :  { %v2013_v53 = vmul.f32 1.442695, %v2005_v9 }
 0xea8   :  { %v1986_v6 = vpop.xlane.xlu0 %1985 }
 0xea9   :  { %v2006_v8 = vsub.f32 %v1974_v10, %v1986_v6 }
 0xeab   :  { %v2015_v11 = vmul.f32 1.442695, %v2006_v8 }
 0xead   :  { %3591 = vpow2.f32 %v2015_v11 }
 0xeae   :  { %3593 = vpow2.f32 %v2013_v53 }
 0xeb7   :  { %v3592_v56 = vpop.eup %3591 }
 0xeb8   :  { %v4256_v12 = vpop.eup %3593  ;;  %v2032_v28 = vsel %vm196_vm2, %v3592_v56, 0.0 }
 0xeb9   :  { %v2029_v30 = vsel %vm196_vm2, %v4256_v12, 0.0 }
 0xebf   :  { %2033 = vadd.xlane.f32.xlu0 %v2032_v28 }
 0xec1   :  { %2030 = vadd.xlane.f32.xlu1 %v2029_v30 }
 0xed2   :  { %2269 = vrot.lane.b32.xlu1 %v4167_v32, %s3667_s19 }
 0xf05   :  { %v1989_v27 = vpop.xlane.xlu0 %1988 }
 0xf06   :  { %v2007_v13 = vsub.f32 %v1975_v19, %v1989_v27 }
 0xf08   :  { %v2017_v7 = vmul.f32 1.442695, %v2007_v13 }
 0xf09   :  { %v1992_v10 = vpop.xlane.xlu0 %1991 }
 0xf0a   :  { %3595 = vpow2.f32 %v2017_v7  ;;  %v2008_v14 = vsub.f32 %v1976_v26, %v1992_v10 }
 0xf0c   :  { %v2019_v17 = vmul.f32 1.442695, %v2008_v14 }
 0xf0d   :  { %v1995_v18 = vpop.xlane.xlu1 %1994 }
 0xf0e   :  { %3597 = vpow2.f32 %v2019_v17  ;;  %v2009_v20 = vsub.f32 %v1977_v45, %v1995_v18 }
 0xf0f   :  { %v1998_v44 = vpop.xlane.xlu0 %1997 }
 0xf10   :  { %v2021_v42 = vmul.f32 1.442695, %v2009_v20  ;;  %v2010_v35 = vsub.f32 %v4243_v50, %v1998_v44 }
 0xf12   :  { %3599 = vpow2.f32 %v2021_v42  ;;  %v2023_v36 = vmul.f32 1.442695, %v2010_v35 }
 0xf14   :  { %v4263_v39 = vpop.eup %3595 }
 0xf15   :  { %v2001_v16 = vpop.xlane.xlu1 %2000  ;;  %v2035_v21 = vsel %vm196_vm2, %v4263_v39, 0.0 }
 0xf16   :  { %v2011_v32 = vsub.f32 %v1979_v62, %v2001_v16  ;;  %2036 = vadd.xlane.f32.xlu1 %v2035_v21 }
 0xf17   :  { %v2004_v19 = vpop.xlane.xlu0 %2003 }
 0xf18   :  { %v4267_v22 = vpop.eup %3597  ;;  %v2025_v23 = vmul.f32 1.442695, %v2011_v32  ;;  %v2012_v41 = vsub.f32 %v1980_v3, %v2004_v19 }
 0xf19   :  { %v2038_v25 = vsel %vm196_vm2, %v4267_v22, 0.0  ;;  %v2174_v45 = vpop.permute.xlu1 %2173 }
 0xf1a   :  { %3601 = vpow2.f32 %v2025_v23  ;;  %2039 = vadd.xlane.f32.xlu0 %v2038_v25  ;;  %v2027_v43 = vmul.f32 1.442695, %v2012_v41  ;;  %v2179_v34 = vsel %vm708_vm3, %v2174_v45, 0 }
 0xf1b   :  { %v2126_v26 = vpop.permute.xlu0 %2125  ;;  %3603 = vpow2.f32 %v2023_v36 }
 0xf1c   :  { %v4271_v46 = vpop.eup %3599  ;;  %v2131_v24 = vsel %vm708_vm3, %v2126_v26, 0  ;;  %3605 = vpow2.f32 %v2027_v43 }
 0xf1d   :  { %3386 = vmatpush3.bf16.msra.mxu1 %v2131_v24  ;;  %v2041_v29 = vsel %vm196_vm2, %v4271_v46, 0.0  ;;  %v2222_v47 = vpop.permute.xlu1 %2221 }
 0xf1e   :  { %2042 = vadd.xlane.f32.xlu1 %v2041_v29  ;;  %3397 = vmatprep.subr.bf16.mxu1 %v3661_v15  ;;  %v2227_v55 = vsel %vm708_vm3, %v2222_v47, 0 }
 0xf24   :  { %v4277_v31 = vpop.eup %3601 }
 0xf25   :  { %v2047_v33 = vsel %vm196_vm2, %v4277_v31, 0.0  ;;  %v4286_v0 = vpop.eup %3603 }
 0xf26   :  { %2048 = vadd.xlane.f32.xlu1 %v2047_v33  ;;  %v4290_v52 = vpop.eup %3605 }
 0xf30   :  { %2317 = vrot.lane.b32.xlu0 %v4173_v54, %s3667_s19  ;;  %v2044_v54 = vsel %vm196_vm2, %v4286_v0, 0.0 }
 0xf37   :  { %2365 = vrot.lane.b32.xlu1 %v4179_v40, %s3667_s19  ;;  %v2050_v40 = vsel %vm196_vm2, %v4290_v52, 0.0 }
 0xf4c   :  { %v2034_v48 = vpop.xlane.xlu0 %2033 }
 0xf4d   :  { %3607 = vrcp.f32 %v2034_v48 }
 0xf4e   :  { %v2031_v51 = vpop.xlane.xlu1 %2030 }
 0xf4f   :  { %3609 = vrcp.f32 %v2031_v51  ;;  %2045 = vadd.xlane.f32.xlu0 %v2044_v54 }
 0xf52   :  { %v2270_v62 = vpop.permute.xlu1 %2269 }
 0xf53   :  { %2051 = vadd.xlane.f32.xlu0 %v2050_v40  ;;  %v2275_v8 = vsel %vm708_vm3, %v2270_v62, 0 }
 0xf57   :  { %v3608_v50 = vpop.eup %3607 }
 0xf58   :  { %v2056_v58 = vmul.f32 %v3608_v50, %v3592_v56 }
 0xf59   :  { %v3610_v59 = vpop.eup %3609 }
 0xf5a   :  { %v2054_v60 = vmul.f32 %v3610_v59, %v4256_v12  ;;  %v2070_v49 = vpack.c.bf16 %v2056_v58, %v2056_v58 }
 0xf5c   :  { %3388 = vmatmul.mubr.msk.bf16.vlgmr.msra.gmra.mrb[56].mxu1 %vm196_vm2, %v2070_v49  ;;  %v2069_v61 = vpack.c.bf16 %v2054_v60, %v2054_v60  ;;  %v3529_v49 = vld [vmem:[%s4469_s6 + $0x10] sm:$0xff]  }
 0xf5d   :  { %3398 = vmatpush3.bf16.msra.mxu1 %v2227_v55  ;;  %3399 = vmatprep.mubr.msk.bf16.mxu1 %vm3662_vm1, %v3661_v15  ;;  %v3530_v55 = vld [vmem:[%s4469_s6 + $0x18] sm:$0xff]  }
 0xf5e   :  { %3382 = vmatmul.mubr.msk.bf16.vlgmr.msra.gmra.mrb[60].mxu0 %vm196_vm2, %v2069_v61  ;;  %3409 = vmatprep.subr.bf16.mxu1 %v3661_v15 }
 0xf5f   :  { %3392 = vmatpush3.bf16.msra.mxu0 %v2179_v34  ;;  %3393 = vmatprep.mubr.msk.bf16.mxu0 %vm3662_vm1, %v3661_v15 }
 0xf60   :  { %3403 = vmatprep.subr.bf16.mxu0 %v3661_v15 }
 0xf69   :  { %2413 = vrot.lane.b32.xlu0 %v4177_v38, %s3667_s19  ;;  %s4488_s19 = smov 24  }
 0xfa3   :  { %v2037_v63 = vpop.xlane.xlu1 %2036 }
 0xfa4   :  { %3611 = vrcp.f32 %v2037_v63 }
 0xfa7   :  { %v2040_v37 = vpop.xlane.xlu0 %2039 }
 0xfa8   :  { %3613 = vrcp.f32 %v2040_v37 }
 0xfab   :  { %v2043_v2 = vpop.xlane.xlu1 %2042  ;;  %v2318_v38 = vpop.permute.xlu0 %2317 }
 0xfac   :  { %3615 = vrcp.f32 %v2043_v2  ;;  %v2323_v28 = vsel %vm708_vm3, %v2318_v38, 0 }
 0xfae   :  { %v3612_v3 = vpop.eup %3611 }
 0xfaf   :  { %v2058_v4 = vmul.f32 %v3612_v3, %v4263_v39 }
 0xfb1   :  { %v2071_v5 = vpack.c.bf16 %v2058_v4, %v2058_v4 }
 0xfb2   :  { %v3614_v6 = vpop.eup %3613 }
 0xfb3   :  { %v2060_v9 = vmul.f32 %v3614_v6, %v4267_v22  ;;  %3394 = vmatmul.mubr.msk.bf16.vlgmr.msra.gmra.mrb[64].mxu0 %vm196_vm2, %v2071_v5  ;;  %v2049_v11 = vpop.xlane.xlu1 %2048 }
 0xfb4   :  { %3404 = vmatpush3.bf16.msra.mxu0 %v2275_v8  ;;  %3617 = vrcp.f32 %v2049_v11  ;;  %3405 = vmatprep.mubr.msk.bf16.mxu0 %vm3662_vm1, %v3661_v15 }
 0xfb5   :  { %v2072_v53 = vpack.c.bf16 %v2060_v9, %v2060_v9  ;;  %3415 = vmatprep.subr.bf16.mxu0 %v3661_v15 }
 0xfb6   :  { %v3616_v56 = vpop.eup %3615 }
 0xfb7   :  { %v2062_v12 = vmul.f32 %v3616_v56, %v4271_v46  ;;  %3400 = vmatmul.mubr.msk.bf16.vlgmr.msra.gmra.mrb[60].mxu1 %vm196_vm2, %v2072_v53  ;;  %v2366_v30 = vpop.permute.xlu1 %2365 }
 0xfb8   :  { %3410 = vmatpush3.bf16.msra.mxu1 %v2323_v28  ;;  %3411 = vmatprep.mubr.msk.bf16.mxu1 %vm3662_vm1, %v3661_v15  ;;  %v2371_v13 = vsel %vm708_vm3, %v2366_v30, 0 }
 0xfb9   :  { %v2073_v27 = vpack.c.bf16 %v2062_v12, %v2062_v12  ;;  %3421 = vmatprep.subr.bf16.mxu1 %v3661_v15 }
 0xfbb   :  { %3406 = vmatmul.mubr.msk.bf16.vlgmr.msra.gmra.mrb[68].mxu0 %vm196_vm2, %v2073_v27 }
 0xfbc   :  { %3416 = vmatpush3.bf16.msra.mxu0 %v2371_v13  ;;  %3417 = vmatprep.mubr.msk.bf16.mxu0 %vm3662_vm1, %v3661_v15 }
 0xfbd   :  { %3427 = vmatprep.subr.bf16.mxu0 %v3661_v15 }
 0xfbe   :  { %v3618_v7 = vpop.eup %3617 }
 0xfbf   :  { %v2066_v10 = vmul.f32 %v3618_v7, %v4277_v31 }
 0xfc1   :  { %v2075_v14 = vpack.c.bf16 %v2066_v10, %v2066_v10 }
 0xfc3   :  { %3418 = vmatmul.mubr.msk.bf16.vlgmr.msra.gmra.mrb[72].mxu0 %vm196_vm2, %v2075_v14 }
 0xfc4   :  { %3431 = vmatprep.mubr.msk.bf16.mxu0 %vm3662_vm1, %v3661_v15  ;;  %3428 = vmatpush3.bf16.msra.mxu0 %v3529_v49  ;;  %v3035_v49 = vld [vmem:[%s4472_s9 + $0x1] ss:$0 sm:$0xff] }
 0xfc5   :  { %3429 = vmatprep.subr.bf16.mxu0 %v3661_v15 }
 0xfc8   :  { %3430 = vmatpush3.bf16.msra.mxu0 %v3530_v55 }
 0xfc9   :  { %3443 = vmatprep.subr.bf16.mxu0 %v3661_v15 }
 0xfdc   :  { %v2046_v17 = vpop.xlane.xlu0 %2045 }
 0xfdd   :  { %3619 = vrcp.f32 %v2046_v17 }
 0xfe0   :  { %v2052_v18 = vpop.xlane.xlu0 %2051 }
 0xfe1   :  { %3621 = vrcp.f32 %v2052_v18 }
 0xfe4   :  { %v2414_v44 = vpop.permute.xlu0 %2413 }
 0xfe5   :  { %v2419_v21 = vsel %vm708_vm3, %v2414_v44, 0 }
 0xfe7   :  { %v3620_v20 = vpop.eup %3619 }
 0xfe8   :  { %v2064_v42 = vmul.f32 %v3620_v20, %v4286_v0  ;;  %v3028_v20 = vld [vmem:[%s4470_s7 + $0x1] ss:$0 sm:$0xff] }
 0xfea   :  { %v2074_v39 = vpack.c.bf16 %v2064_v42, %v2064_v42 }
 0xfeb   :  { %v3622_v16 = vpop.eup %3621 }
 0xfec   :  { %3412 = vmatmul.mubr.msk.bf16.vlgmr.msra.gmra.mrb[64].mxu1 %vm196_vm2, %v2074_v39  ;;  %v2068_v32 = vmul.f32 %v3622_v16, %v4290_v52 }
 0xfed   :  { %3422 = vmatpush3.bf16.msra.mxu1 %v2419_v21  ;;  %3423 = vmatprep.mubr.msk.bf16.mxu1 %vm3662_vm1, %v3661_v15 }
 0xfee   :  { %3435 = vmatprep.subr.bf16.mxu1 %v3661_v15  ;;  %v2076_v19 = vpack.c.bf16 %v2068_v32, %v2068_v32 }
 0xff4   :  { %3424 = vmatmul.mubr.msk.bf16.vlgmr.msra.gmra.mrb[68].mxu1 %vm196_vm2, %v2076_v19 }
 0xff5   :  { %3439 = vmatprep.mubr.msk.bf16.mxu1 %vm3662_vm1, %v3661_v15 }
0x102f   :  { %v2167_v22 = vpop.f32.mrb[56].mxu1 }
0x1030   :  { %v3389_v23 = vpop.f32.mrb[57].mxu1 }
0x1031   :  { %v2119_v25 = vpop.f32.mrb[60].mxu0  ;;  %v2170_v26 = vpop.f32.mrb[58].mxu1 }
0x1032   :  { %v3383_v46 = vpop.f32.mrb[61].mxu0  ;;  %v3390_v24 = vpop.f32.mrb[59].mxu1 }
0x1033   :  { %v2122_v29 = vpop.f32.mrb[62].mxu0 }
0x1034   :  { %v3384_v31 = vpop.f32.mrb[63].mxu0 }
0x1086   :  { %v2215_v33 = vpop.f32.mrb[64].mxu0 }
0x1087   :  { %v3395_v35 = vpop.f32.mrb[65].mxu0 }
0x1088   :  { %v2218_v36 = vpop.f32.mrb[66].mxu0 }
0x1089   :  { %v3396_v41 = vpop.f32.mrb[67].mxu0 }
0x108a   :  { %v2263_v43 = vpop.f32.mrb[60].mxu1  ;;  %v3531_v41 = vld [vmem:[%s4473_s10 + $0x10] sm:$0xff]  }
0x108b   :  { %v3498_v45 = vpack.i.bf16 %v2263_v43, %v2215_v33  ;;  %v3401_v47 = vpop.f32.mrb[61].mxu1  ;;  %3436 = vmatpush3.bf16.msra.mxu1 %v3531_v41  ;;  %v3532_v43 = vld [vmem:[%s4473_s10 + $0x18] sm:$0xff]  }
0x108c   :  { %v2266_v0 = vpop.f32.mrb[62].mxu1  ;;  %3437 = vmatprep.subr.bf16.mxu1 %v3661_v15 }
0x108d   :  { %3499 = vrot.lane.b32.xlu1 %v3498_v45, %s3668_s1  ;;  %v3402_v48 = vpop.f32.mrb[63].mxu1 }
0x108e   :  { %v2311_v51 = vpop.f32.mrb[68].mxu0 }
0x108f   :  { %v3407_v54 = vpop.f32.mrb[69].mxu0  ;;  %3438 = vmatpush3.bf16.msra.mxu1 %v3532_v43 }
0x1090   :  { %v2314_v52 = vpop.f32.mrb[70].mxu0  ;;  %3463 = vmatprep.subr.bf16.mxu1 %v3661_v15 }
0x1091   :  { %v3408_v40 = vpop.f32.mrb[71].mxu0 }
0x1096   :  { %v2407_v50 = vpop.f32.mrb[72].mxu0 }
0x1097   :  { %v3419_v58 = vpop.f32.mrb[73].mxu0 }
0x1098   :  { %v2410_v59 = vpop.f32.mrb[74].mxu0 }
0x1099   :  { %v3420_v60 = vpop.f32.mrb[75].mxu0 }
0x10bf   :  { %v2359_v61 = vpop.f32.mrb[64].mxu1 }
0x10c0   :  { %v3503_v34 = vpack.i.bf16 %v2359_v61, %v2311_v51  ;;  %v3413_v62 = vpop.f32.mrb[65].mxu1 }
0x10c1   :  { %v2362_v63 = vpop.f32.mrb[66].mxu1 }
0x10c2   :  { %3504 = vrot.lane.b32.xlu0 %v3503_v34, %s3669_s22  ;;  %v3414_v37 = vpop.f32.mrb[67].mxu1  ;;  %v3533_v63 = vld [vmem:[%s4475_s12 + $0x40] sm:$0xff]  }
0x10c3   :  { %v3534_v37 = vld [vmem:[%s4475_s12 + $0x48] sm:$0xff]  }
0x10c7   :  { %v2455_v2 = vpop.f32.mrb[68].mxu1 }
0x10c8   :  { %v3508_v3 = vpack.i.bf16 %v2455_v2, %v2407_v50  ;;  %v3425_v4 = vpop.f32.mrb[69].mxu1  ;;  %v3034_v50 = vld [vmem:[%s4471_s8 + $0x1] ss:$0 sm:$0xff]  ;;  %v3535_v2 = vld [vmem:[%s4475_s12 + $0x50] sm:$0xff]   ;;  %s2926_s8 = sshll.u32 %s3671_s23, 4  ;;  %s2927_s8 = int_to_ptr.vmem [resolvable:$true] %s2926_s8 }
0x10c9   :  { %v2458_v5 = vpop.f32.mrb[70].mxu1  ;;  %v3537_v4 = vld [vmem:[%s4475_s12 + $0x60] sm:$0xff]   ;;  %p3642_p1 = scmp.lt.s32.totalorder %s2927_s8, %s2927_s8 }
0x10ca   :  { %3509 = vrot.lane.b32.xlu1 %v3508_v3, %s4488_s19  ;;  %v3426_v6 = vpop.f32.mrb[71].mxu1  ;;  %v3536_v3 = vld [vmem:[%s4475_s12 + $0x58] sm:$0xff]   ;;  %v3538_v5 = vld [vmem:[%s4475_s12 + $0x68] sm:$0xff]  }
0x10cb   :  { %v3539_v6 = vld [vmem:[%s4475_s12 + $0x70] sm:$0xff]  }
0x10ff   :  { %v3500_v8 = vpop.permute.xlu1 %3499 }
0x1100   :  { %v3502_v11 = vunpack.i.h.bf16 %v3500_v8  ;;  %v3501_v38 = vunpack.i.l.bf16 %v3500_v8  ;;  %v3540_v8 = vld [vmem:[%s4475_s12 + $0x78] sm:$0xff]  }
0x1102   :  { %v2486_v28 = vsel %vm196_vm2, %v2167_v22, %v3502_v11  ;;  %v2485_v30 = vsel %vm196_vm2, %v2119_v25, %v3501_v38 }
0x1134   :  { %v3505_v9 = vpop.permute.xlu0 %3504 }
0x1135   :  { %v3507_v53 = vunpack.i.h.bf16 %v3505_v9  ;;  %v3506_v56 = vunpack.i.l.bf16 %v3505_v9  ;;  %v3041_v9 = vld [vmem:[%s4474_s11 + $0x1] ss:$0 sm:$0xff] }
0x1137   :  { %v2488_v7 = vsel %vm1114_vm4, %v2486_v28, %v3507_v53  ;;  %v2487_v10 = vsel %vm1114_vm4, %v2485_v30, %v3506_v56 }
0x113c   :  { %v3510_v12 = vpop.permute.xlu1 %3509 }
0x113d   :  { %v3512_v27 = vunpack.i.h.bf16 %v3510_v12  ;;  %v3511_v13 = vunpack.i.l.bf16 %v3510_v12 }
0x113f   :  { %v2490_v14 = vsel %vm1117_vm5, %v2488_v7, %v3512_v27  ;;  %v2489_v17 = vsel %vm1117_vm5, %v2487_v10, %v3511_v13 }
0x1140   :  { %v2491_v18 = vpack.c.bf16 %v2490_v14, %v2489_v17 }
0x1142   :  { %3432 = vmatmul.mubr.msk.bf16.vlgmr.msra.gmra.mrb[76].mxu0 %vm64_vm0, %v2491_v18 }
0x1143   :  { %3459 = vmatprep.mubr.msk.bf16.mxu0 %vm3662_vm1, %v3661_v15  ;;  %3444 = vmatpush3.bf16.msra.mxu0 %v3533_v63 }
0x1144   :  { %3445 = vmatprep.subr.bf16.mxu0 %v3661_v15 }
0x1147   :  { %3446 = vmatpush3.bf16.msra.mxu0 %v3534_v37  ;;  %v3071_v37 = vld [vmem:[%s4477_s14] ss:$0 sm:$0xff]  ;;  %s3637_s14 = scalar_lea.vmem %s2927_s8, 256 }
0x1148   :  { %3447 = vmatprep.subr.bf16.mxu0 %v3661_v15  ;;  %p3638_p0 = scmp.ne.s32.totalorder %s2927_s8, %s3637_s14  ;;  %p3643_p2 = scmp.lt.s32.totalorder %s3637_s14, %s3637_s14 }
0x114a   :  { %p3644_p3 = por %p3643_p2, %p3642_p1 }
0x114b   :  { %3448 = vmatpush3.bf16.msra.mxu0 %v3535_v2 }
0x114c   :  { %3449 = vmatprep.subr.bf16.mxu0 %v3661_v15  ;;  %p3645_p4 = pnand %p3644_p3, %p3638_p0 }
0x114f   :  { %3450 = vmatpush3.bf16.msra.mxu0 %v3536_v3 }
0x1150   :  { %3451 = vmatprep.subr.bf16.mxu0 %v3661_v15 }
0x1153   :  { %3452 = vmatpush3.bf16.msra.mxu0 %v3537_v4 }
0x1154   :  { %3453 = vmatprep.subr.bf16.mxu0 %v3661_v15 }
0x1157   :  { %3454 = vmatpush3.bf16.msra.mxu0 %v3538_v5 }
0x1158   :  { %3455 = vmatprep.subr.bf16.mxu0 %v3661_v15 }
0x115b   :  { %3456 = vmatpush3.bf16.msra.mxu0 %v3539_v6 }
0x115c   :  { %3457 = vmatprep.subr.bf16.mxu0 %v3661_v15 }
0x115f   :  { %3458 = vmatpush3.bf16.msra.mxu0 %v3540_v8 }
0x1215   :  { %v2554_v42 = vpop.f32.mrb[76].mxu0 }
0x1216   :  { %v2555_v44 = vadd.f32 %v3028_v20, %v2554_v42  ;;  %v3433_v39 = vpop.f32.mrb[77].mxu0 }
0x1217   :  { %v2557_v16 = vpop.f32.mrb[78].mxu0 }
0x1218   :  { %v4363_v21 = vadd.f32 %v2555_v44, %v4114_v1  ;;  %v2558_v32 = vadd.f32 %v3028_v20, %v2557_v16  ;;  %v3434_v19 = vpop.f32.mrb[79].mxu0 }
0x121a   :  { %v4366_v22 = vadd.f32 %v2558_v32, %v4117_v57  ;;  %v2567_v23 = vsel %vm64_vm0, %v4363_v21, 0.0 }
0x121b   :  { %2568 = vadd.xlane.f32.xlu0 %v2567_v23 }
0x121c   :  { %v2570_v25 = vsel %vm64_vm0, %v4366_v22, 0.0 }
0x121d   :  { %2571 = vadd.xlane.f32.xlu1 %v2570_v25 }
0x12a8   :  { %v2569_v26 = vpop.xlane.xlu0 %2568 }
0x12a9   :  { %v2573_v46 = vmul.f32 0.03125, %v2569_v26 }
0x12aa   :  { %v2572_v24 = vpop.xlane.xlu1 %2571 }
0x12ab   :  { %v2575_v29 = vsub.f32 %v4363_v21, %v2573_v46  ;;  %v2574_v1 = vmul.f32 0.03125, %v2572_v24  ;;  %v3062_v24 = vld [vmem:[%s4476_s13 + $0x1] ss:$0 sm:$0xff] }
0x12ad   :  { %v2576_v31 = vsub.f32 %v4366_v22, %v2574_v1  ;;  %v2577_v33 = vmul.f32 %v2575_v29, %v2575_v29 }
0x12af   :  { %v2579_v57 = vsel %vm64_vm0, %v2577_v33, 0.0  ;;  %v2578_v35 = vmul.f32 %v2576_v31, %v2576_v31 }
0x12b0   :  { %2580 = vadd.xlane.f32.xlu0 %v2579_v57 }
0x12b1   :  { %v2582_v36 = vsel %vm64_vm0, %v2578_v35, 0.0 }
0x12b4   :  { %2583 = vadd.xlane.f32.xlu0 %v2582_v36 }
0x133d   :  { %v2581_v45 = vpop.xlane.xlu0 %2580 }
0x133e   :  { %v2585_v47 = vmul.f32 0.03125, %v2581_v45 }
0x1340   :  { %v2587_v0 = vadd.f32 1e-05, %v2585_v47 }
0x1341   :  { %v2584_v48 = vpop.xlane.xlu0 %2583 }
0x1342   :  { %3623 = vrsqrt.f32 %v2587_v0  ;;  %v2586_v51 = vmul.f32 0.03125, %v2584_v48 }
0x1344   :  { %v2588_v54 = vadd.f32 1e-05, %v2586_v51 }
0x1346   :  { %3625 = vrsqrt.f32 %v2588_v54 }
0x134c   :  { %v3624_v52 = vpop.eup %3623 }
0x134d   :  { %v2591_v40 = vmul.f32 %v3624_v52, %v2575_v29 }
0x134f   :  { %v2599_v59 = vmul.f32 %v3034_v50, %v2591_v40 }
0x1350   :  { %v3626_v58 = vpop.eup %3625 }
0x1351   :  { %v2592_v60 = vmul.f32 %v3626_v58, %v2576_v31  ;;  %v2607_v61 = vadd.f32 %v3035_v49, %v2599_v59  ;;  %v3542_v59 = vld [vmem:[%s4479_s16 + $0x8] sm:$0xff]  }
0x1353   :  { %v2600_v55 = vmul.f32 %v3034_v50, %v2592_v60 }
0x1355   :  { %v2608_v34 = vadd.f32 %v3035_v49, %v2600_v55 }
0x1357   :  { %v2609_v62 = vpack.c.bf16 %v2608_v34, %v2607_v61 }
0x1359   :  { %3440 = vmatmul.mubr.msk.bf16.vlgmr.msra.gmra.mrb[72].mxu1 %vm64_vm0, %v2609_v62 }
0x135a   :  { %3467 = vmatprep.mubr.msk.bf16.mxu1 %vm3662_vm1, %v3661_v15 }
0x142c   :  { %v2672_v11 = vpop.f32.mrb[72].mxu1 }
0x142d   :  { %v2673_v38 = vadd.f32 %v3041_v9, %v2672_v11  ;;  %v3441_v53 = vpop.f32.mrb[73].mxu1 }
0x142e   :  { %v2675_v56 = vpop.f32.mrb[74].mxu1 }
0x142f   :  { %v2679_v12 = vmul.f32 %v2673_v38, %v2673_v38  ;;  %v2676_v28 = vadd.f32 %v3041_v9, %v2675_v56  ;;  %v3442_v30 = vpop.f32.mrb[75].mxu1 }
0x1431   :  { %v2681_v27 = vmul.f32 %v2679_v12, %v2673_v38  ;;  %v2680_v13 = vmul.f32 %v2676_v28, %v2676_v28 }
0x1433   :  { %v2683_v7 = vmul.f32 0.044715, %v2681_v27  ;;  %v2682_v10 = vmul.f32 %v2680_v13, %v2676_v28 }
0x1435   :  { %v2685_v14 = vadd.f32 %v2683_v7, %v2673_v38  ;;  %v2684_v17 = vmul.f32 0.044715, %v2682_v10 }
0x1437   :  { %v2687_v18 = vmul.f32 0.7978846, %v2685_v14  ;;  %v2686_v20 = vadd.f32 %v2684_v17, %v2676_v28 }
0x1439   :  { %3627 = vtanh.f32 %v2687_v18  ;;  %v2688_v42 = vmul.f32 0.7978846, %v2686_v20 }
0x143b   :  { %3629 = vtanh.f32 %v2688_v42 }
0x1443   :  { %v3628_v44 = vpop.eup %3627 }
0x1444   :  { %v2691_v39 = vadd.f32 1.0, %v3628_v44 }
0x1445   :  { %v3630_v16 = vpop.eup %3629 }
0x1446   :  { %v2693_v32 = vmul.f32 0.5, %v2691_v39  ;;  %v2692_v19 = vadd.f32 1.0, %v3630_v16 }
0x1448   :  { %v2694_v23 = vmul.f32 0.5, %v2692_v19  ;;  %v2695_v25 = vmul.f32 %v2693_v32, %v2673_v38 }
0x144a   :  { %v2696_v26 = vmul.f32 %v2694_v23, %v2676_v28 }
0x144c   :  { %v2697_v46 = vpack.c.bf16 %v2696_v26, %v2695_v25 }
0x144e   :  { %3460 = vmatmul.mubr.bf16.vlgmr.msra.gmra.mrb[80].mxu0 %v2697_v46 }
0x1521   :  { %v2805_v29 = vpop.f32.mrb[80].mxu0 }
0x1522   :  { %v2806_v1 = vadd.f32 %v3062_v24, %v2805_v29  ;;  %v3461_v31 = vpop.f32.mrb[81].mxu0 }
0x1523   :  { %v2808_v33 = vpop.f32.mrb[82].mxu0 }
0x1524   :  { %v2812_v57 = vadd.f32 %v2806_v1, %v4363_v21  ;;  %v2809_v35 = vadd.f32 %v3062_v24, %v2808_v33  ;;  %v3462_v36 = vpop.f32.mrb[83].mxu0 }
0x1526   :  { %v2813_v41 = vadd.f32 %v2809_v35, %v4366_v22  ;;  %v2816_v43 = vsel %vm64_vm0, %v2812_v57, 0.0  ;;  %v3541_v22 = vld [vmem:[%s4479_s16] sm:$0xff]  }
0x1527   :  { %2817 = vadd.xlane.f32.xlu0 %v2816_v43  ;;  %3464 = vmatpush3.bf16.msra.mxu1 %v3541_v22 }
0x1528   :  { %v2819_v45 = vsel %vm64_vm0, %v2813_v41, 0.0  ;;  %3465 = vmatprep.subr.bf16.mxu1 %v3661_v15  ;;  %v3072_v15 = vld [vmem:[%s4478_s15] ss:$0 sm:$0xff] }
0x1529   :  { %2820 = vadd.xlane.f32.xlu1 %v2819_v45 }
0x152b   :  { %3466 = vmatpush3.bf16.msra.mxu1 %v3542_v59 }
0x15b4   :  { %v2818_v47 = vpop.xlane.xlu0 %2817 }
0x15b5   :  { %v2822_v0 = vmul.f32 0.03125, %v2818_v47 }
0x15b6   :  { %v2821_v48 = vpop.xlane.xlu1 %2820 }
0x15b7   :  { %v2824_v51 = vsub.f32 %v2812_v57, %v2822_v0  ;;  %v2823_v54 = vmul.f32 0.03125, %v2821_v48 }
0x15b9   :  { %v2825_v52 = vsub.f32 %v2813_v41, %v2823_v54  ;;  %v2826_v40 = vmul.f32 %v2824_v51, %v2824_v51 }
0x15bb   :  { %v2828_v50 = vsel %vm64_vm0, %v2826_v40, 0.0  ;;  %v2827_v21 = vmul.f32 %v2825_v52, %v2825_v52 }
0x15bc   :  { %2829 = vadd.xlane.f32.xlu0 %v2828_v50 }
0x15bd   :  { %v2831_v58 = vsel %vm64_vm0, %v2827_v21, 0.0 }
0x15be   :  { %2832 = vadd.xlane.f32.xlu1 %v2831_v58 }
0x1649   :  { %v2830_v60 = vpop.xlane.xlu0 %2829 }
0x164a   :  { %v2834_v49 = vmul.f32 0.03125, %v2830_v60 }
0x164b   :  { %v2833_v55 = vpop.xlane.xlu1 %2832 }
0x164c   :  { %v2836_v61 = vadd.f32 1e-05, %v2834_v49  ;;  %v2835_v34 = vmul.f32 0.03125, %v2833_v55 }
0x164e   :  { %3631 = vrsqrt.f32 %v2836_v61  ;;  %v2837_v62 = vadd.f32 1e-05, %v2835_v34 }
0x1650   :  { %3633 = vrsqrt.f32 %v2837_v62 }
0x1658   :  { %v3632_v63 = vpop.eup %3631 }
0x1659   :  { %v2840_v2 = vmul.f32 %v3632_v63, %v2824_v51 }
0x165a   :  { %v3634_v3 = vpop.eup %3633 }
0x165b   :  { %v2848_v4 = vmul.f32 %v3071_v37, %v2840_v2  ;;  %v2841_v5 = vmul.f32 %v3634_v3, %v2825_v52 }
0x165d   :  { %v2849_v6 = vmul.f32 %v3071_v37, %v2841_v5  ;;  %v2856_v8 = vadd.f32 %v3072_v15, %v2848_v4 }
0x165f   :  { %v2857_v9 = vadd.f32 %v3072_v15, %v2849_v6 }
0x1661   :  { %v2858_v11 = vpack.c.bf16 %v2857_v9, %v2856_v8 }
0x1663   :  { %3468 = vmatmul.mubr.msk.bf16.vlgmr.msra.gmra.mrb[76].mxu1 %vm64_vm0, %v2858_v11 }
0x1736   :  { %v2912_v38 = vpop.f32.mrb[76].mxu1 }
0x1737   :  { %2919 = vst [vmem:[#allocation2] sm:$0xff] %v2912_v38  ;;  %v3469_v53 = vpop.f32.mrb[77].mxu1 }
0x1738   :  { %v2915_v56 = vpop.f32.mrb[78].mxu1 }
0x1739   :  { %2920 = vst [vmem:[#allocation2 + $0x8] sm:$0xff] %v2915_v56  ;;  %v3470_v12 = vpop.f32.mrb[79].mxu1 }
0x173a   :  { %3648 = shalt.err (!%p3645_p4)
}
0x173b   :  { %s3649_s9 = scalar_lea.hbm %s4480_s17, 256 }
0x173c   :  { %p3650_p5 = scmp.ne.s32.totalorder %s4480_s17, %s3649_s9  ;;  %p3653_p6 = scmp.lt.u32.totalorder %s3649_s9, %s4480_s17 }
0x173e   :  { %p3655_p7 = pnand %p3653_p6, %p3650_p5 }
0x1740   :  { %3658 = shalt.err (!%p3655_p7)
}
0x1741   :  { %s3672_s26 = smov 128  }
0x1742   :  { %2932 = dma.vmem_to_hbm [thread:$0]  %s2927_s8, 256, %s4480_s17, [#allocation3], %s3672_s26, %s3672_s26, %s3668_s1  }
0x1743   :  { %3659 = dma.done.wait [#allocation3], 256  }
0x1744   :  { %3660 = vsyncadd [#allocation3], 4294967040 }
0x1745   :  { %2936 = vsyncpa [#allocation3], 1 }

// kernel: tpu_custom_call.1
= control target key start
LH: loop header
LB: loop body
LE: loop exit
PB: predicated region body
PF: predicated region fallthrough
CT: control target
= control target key end

     0   :  { %s4463_s0 = inlined_call_operand.vmem [shape: f32[16,32], index: 0, kind: input, shape index: {}]   ;;  %s4464_s1 = inlined_call_operand.vmem [shape: f32[2,8,8], index: 1, kind: input, shape index: {}]   ;;  %s4465_s2 = inlined_call_operand.vmem [shape: f32[2,1,32], index: 2, kind: input, shape index: {}]   ;;  %s4466_s3 = inlined_call_operand.vmem [shape: f32[2,1,32], index: 3, kind: input, shape index: {}]   ;;  %s4467_s4 = inlined_call_operand.vmem [shape: bf16[2,32,96], index: 4, kind: input, shape index: {}]   ;;  %s4468_s5 = inlined_call_operand.vmem [shape: f32[2,1,96], index: 5, kind: input, shape index: {}]   ;;  %s4469_s6 = inlined_call_operand.vmem [shape: bf16[2,32,32], index: 6, kind: input, shape index: {}]   ;;  %s4470_s7 = inlined_call_operand.vmem [shape: f32[2,1,32], index: 7, kind: input, shape index: {}]   ;;  %s4471_s8 = inlined_call_operand.vmem [shape: f32[2,1,32], index: 8, kind: input, shape index: {}]   ;;  %s4472_s9 = inlined_call_operand.vmem [shape: f32[2,1,32], index: 9, kind: input, shape index: {}]   ;;  %s4473_s10 = inlined_call_operand.vmem [shape: bf16[2,32,128], index: 10, kind: input, shape index: {}]   ;;  %s4474_s11 = inlined_call_operand.vmem [shape: f32[2,1,128], index: 11, kind: input, shape index: {}]   ;;  %s4475_s12 = inlined_call_operand.vmem [shape: bf16[2,128,32], index: 12, kind: input, shape index: {}]   ;;  %s4476_s13 = inlined_call_operand.vmem [shape: f32[2,1,32], index: 13, kind: input, shape index: {}]   ;;  %s4477_s14 = inlined_call_operand.vmem [shape: f32[1,32], index: 14, kind: input, shape index: {}]   ;;  %s4478_s15 = inlined_call_operand.vmem [shape: f32[1,32], index: 15, kind: input, shape index: {}]   ;;  %s4479_s16 = inlined_call_operand.vmem [shape: bf16[32,128], index: 16, kind: input, shape index: {}]   ;;  %s4480_s17 = inlined_call_operand.hbm [shape: f32[16,128], index: 17, kind: output, shape index: {}]  }
   0x1   :  { %4484 = sst [smem:[#allocation5_spill]] %s4463_s0 }
   0x2   :  { %4485 = sst [smem:[#allocation6_spill]] %s4464_s1 }
   0x3   :  { %s4486_s26 = sld [smem:[#allocation5_spill]]  ;;  %vm64_vm0 = vcmask 261120  }
   0x9   :  { %v3766_v0 = vld [vmem:[%s4486_s26] sm:$0xff]  ;;  %v3771_v1 = vld [vmem:[%s4486_s26 + $0x8] sm:$0xff] }
   0xa   :  { %v65_v2 = vsel %vm64_vm0, %v3766_v0, 0.0  ;;  %v68_v3 = vsel %vm64_vm0, %v3771_v1, 0.0 }
   0xb   :  { %66 = vadd.xlane.f32.xlu0 %v65_v2 }
   0xf   :  { %69 = vadd.xlane.f32.xlu0 %v68_v3 }
  0x10   :  { %22 = vsyncpa [#allocation3], 0  ;;  %v3513_v14 = vld [vmem:[%s4467_s4] sm:$0xff]   ;;  %v3661_v15 = vmov 0.0   ;;  %vm3662_vm1 = vmmov 0   ;;  %v3514_v16 = vld [vmem:[%s4467_s4 + $0x8] sm:$0xff]  }
  0x11   :  { %3183 = vmatprep.subr.bf16.mxu1 %v3661_v15  ;;  %3187 = vmatprep.mubr.msk.bf16.mxu1 %vm3662_vm1, %v3661_v15  ;;  %v2937_v25 = vld [vmem:[%s4465_s2] ss:$0 sm:$0xff]  ;;  %s3663_s24 = smov 120   ;;  %s3664_s25 = smov 104   ;;  %vm196_vm2 = vcmask 64512   ;;  %vm708_vm3 = vcmask 1043456  }
  0x12   :  { %3184 = vmatpush3.bf16.msra.mxu1 %v3513_v14  ;;  %3197 = vmatprep.subr.bf16.mxu0 %v3661_v15  ;;  %v2938_v29 = vld [vmem:[%s4466_s3] ss:$0 sm:$0xff]  ;;  %s3665_s26 = smov 112   ;;  %s3666_s27 = smov 96   ;;  %vm1114_vm4 = vcmask 130048   ;;  %vm1117_vm5 = vcmask 195584  }
  0x13   :  { %3185 = vmatprep.subr.bf16.mxu1 %v3661_v15  ;;  %3199 = vmatprep.mubr.msk.bf16.mxu0 %vm3662_vm1, %v3661_v15  ;;  %v2939_v34 = vld [vmem:[%s4468_s5] ss:$0 sm:$0xff]  ;;  %s4487_s0 = sld [smem:[#allocation6_spill]]  ;;  %s3667_s19 = smov 64  }
  0x14   :  { %s3668_s1 = smov 8   ;;  %s3669_s22 = smov 16  }
  0x15   :  { %s4483_s29 = smov 24   ;;  %s3671_s23 = smov [#allocation2]  }
  0x16   :  { %3186 = vmatpush3.bf16.msra.mxu1 %v3514_v16 }
  0x17   :  { %3191 = vmatprep.subr.bf16.mxu1 %v3661_v15 }
  0x98   :  { %v67_v4 = vpop.xlane.xlu0 %66 }
  0x99   :  { %v72_v5 = vmul.f32 0.03125, %v67_v4 }
  0x9b   :  { %v74_v6 = vsub.f32 %v3766_v0, %v72_v5 }
  0x9c   :  { %v70_v7 = vpop.xlane.xlu0 %69 }
  0x9d   :  { %v73_v8 = vmul.f32 0.03125, %v70_v7  ;;  %v76_v9 = vmul.f32 %v74_v6, %v74_v6 }
  0x9f   :  { %v75_v10 = vsub.f32 %v3771_v1, %v73_v8  ;;  %v78_v11 = vsel %vm64_vm0, %v76_v9, 0.0 }
  0xa0   :  { %79 = vadd.xlane.f32.xlu1 %v78_v11 }
  0xa1   :  { %v77_v12 = vmul.f32 %v75_v10, %v75_v10 }
  0xa3   :  { %v81_v13 = vsel %vm64_vm0, %v77_v12, 0.0 }
  0xa4   :  { %82 = vadd.xlane.f32.xlu1 %v81_v13 }
 0x12d   :  { %v80_v17 = vpop.xlane.xlu1 %79 }
 0x12e   :  { %v84_v18 = vmul.f32 0.03125, %v80_v17 }
 0x130   :  { %v86_v19 = vadd.f32 1e-05, %v84_v18 }
 0x131   :  { %v83_v20 = vpop.xlane.xlu1 %82 }
 0x132   :  { %3543 = vrsqrt.f32 %v86_v19  ;;  %v85_v21 = vmul.f32 0.03125, %v83_v20  ;;  %v59_v19 = vld [vmem:[%s4487_s0 + $0x8] sm:$0xff] }
 0x134   :  { %v87_v22 = vadd.f32 1e-05, %v85_v21 }
 0x136   :  { %3545 = vrsqrt.f32 %v87_v22 }
 0x13c   :  { %v3544_v23 = vpop.eup %3543 }
 0x13d   :  { %v90_v24 = vmul.f32 %v3544_v23, %v74_v6 }
 0x13f   :  { %v98_v28 = vmul.f32 %v2937_v25, %v90_v24 }
 0x140   :  { %v3546_v26 = vpop.eup %3545 }
 0x141   :  { %v91_v27 = vmul.f32 %v3546_v26, %v75_v10  ;;  %v106_v31 = vadd.f32 %v2938_v29, %v98_v28  ;;  %v58_v10 = vld [vmem:[%s4487_s0] sm:$0xff] }
 0x143   :  { %v99_v30 = vmul.f32 %v2937_v25, %v91_v27 }
 0x145   :  { %v107_v32 = vadd.f32 %v2938_v29, %v99_v30 }
 0x147   :  { %v108_v33 = vpack.c.bf16 %v107_v32, %v106_v31 }
 0x149   :  { %3188 = vmatmul.mubr.msk.bf16.vlgmr.msra.gmra.mrb[0].mxu1 %vm64_vm0, %v108_v33 }
 0x14a   :  { %3193 = vmatprep.mubr.msk.bf16.mxu1 %vm3662_vm1, %v3661_v15 }
 0x21c   :  { %v169_v35 = vpop.f32.mrb[0].mxu1 }
 0x21d   :  { %v170_v36 = vadd.f32 %v2939_v34, %v169_v35  ;;  %v3189_v37 = vpop.f32.mrb[1].mxu1 }
 0x21e   :  { %v172_v38 = vpop.f32.mrb[2].mxu1 }
 0x21f   :  { %v3807_v39 = vpack.c.bf16 %v170_v36, %v170_v36  ;;  %v173_v40 = vadd.f32 %v2939_v34, %v172_v38  ;;  %v3190_v41 = vpop.f32.mrb[3].mxu1 }
 0x221   :  { %v3809_v42 = vpack.c.bf16 %v173_v40, %v173_v40  ;;  %182 = vrot.lane.b32.xlu0 %v3807_v39, %s3663_s24 }
 0x223   :  { %184 = vrot.lane.b32.xlu1 %v3809_v42, %s3663_s24 }
 0x225   :  { %190 = vrot.lane.b32.xlu0 %v3807_v39, %s3664_s25 }
 0x227   :  { %186 = vrot.lane.b32.xlu1 %v3807_v39, %s3665_s26 }
 0x229   :  { %194 = vrot.lane.b32.xlu0 %v3807_v39, %s3666_s27 }
 0x22b   :  { %188 = vrot.lane.b32.xlu1 %v3809_v42, %s3665_s26 }
 0x22f   :  { %192 = vrot.lane.b32.xlu1 %v3809_v42, %s3664_s25 }
 0x233   :  { %243 = vrot.lane.b32.xlu1 %v3809_v42, %s3666_s27 }
 0x293   :  { %v183_v43 = vpop.permute.xlu0 %182 }
 0x294   :  { %v3827_v44 = vcombine.low %v183_v43, %v183_v43 }
 0x295   :  { %v185_v45 = vpop.permute.xlu1 %184 }
 0x296   :  { %v3829_v46 = vcombine.low %v185_v45, %v185_v45  ;;  %293 = vrot.lane.b32.xlu0 %v3827_v44, %s3666_s27 }
 0x297   :  { %v191_v47 = vpop.permute.xlu0 %190 }
 0x298   :  { %343 = vrot.lane.b32.xlu1 %v3829_v46, %s3666_s27  ;;  %v3840_v53 = vcombine.low %v191_v47, %v191_v47 }
 0x299   :  { %v187_v48 = vpop.permute.xlu1 %186 }
 0x29a   :  { %v3835_v49 = vcombine.low %v187_v48, %v187_v48 }
 0x29b   :  { %v195_v50 = vpop.permute.xlu0 %194 }
 0x29c   :  { %v201_v51 = vsel %vm196_vm2, %v195_v50, 0  ;;  %393 = vrot.lane.b32.xlu0 %v3835_v49, %s3666_s27 }
 0x29d   :  { %3192 = vmatpush3.bf16.xpose.msra.mxu1 %v201_v51  ;;  %v189_v52 = vpop.permute.xlu1 %188 }
 0x29e   :  { %v3842_v54 = vcombine.low %v189_v52, %v189_v52  ;;  %3203 = vmatprep.subr.bf16.mxu1 %v3661_v15 }
 0x2a0   :  { %493 = vrot.lane.b32.xlu0 %v3840_v53, %s3666_s27  ;;  %443 = vrot.lane.b32.xlu1 %v3842_v54, %s3666_s27 }
 0x2a1   :  { %v193_v55 = vpop.permute.xlu1 %192 }
 0x2a2   :  { %v3849_v56 = vcombine.low %v193_v55, %v193_v55 }
 0x2a4   :  { %3194 = vmatmul.mubr.msk.bf16.vlgmr.msra.gmra.mrb[4].mxu1 %vm196_vm2, %v3807_v39  ;;  %543 = vrot.lane.b32.xlu1 %v3849_v56, %s3666_s27 }
 0x2a5   :  { %v244_v57 = vpop.permute.xlu1 %243  ;;  %3205 = vmatprep.mubr.msk.bf16.mxu1 %vm3662_vm1, %v3661_v15 }
 0x2a6   :  { %v249_v58 = vsel %vm196_vm2, %v244_v57, 0 }
 0x2a7   :  { %3198 = vmatpush3.bf16.xpose.msra.mxu0 %v249_v58 }
 0x2a8   :  { %3209 = vmatprep.subr.bf16.mxu0 %v3661_v15 }
 0x2ae   :  { %3200 = vmatmul.mubr.msk.bf16.vlgmr.msra.gmra.mrb[0].mxu0 %vm196_vm2, %v3809_v42 }
 0x2af   :  { %3211 = vmatprep.mubr.msk.bf16.mxu0 %vm3662_vm1, %v3661_v15 }
 0x308   :  { %v294_v59 = vpop.permute.xlu0 %293 }
 0x309   :  { %v299_v60 = vsel %vm196_vm2, %v294_v59, 0 }
 0x30a   :  { %3204 = vmatpush3.bf16.xpose.msra.mxu1 %v299_v60  ;;  %v344_v61 = vpop.permute.xlu1 %343 }
 0x30b   :  { %v349_v62 = vsel %vm196_vm2, %v344_v61, 0  ;;  %3215 = vmatprep.subr.bf16.mxu1 %v3661_v15 }
 0x30c   :  { %3210 = vmatpush3.bf16.xpose.msra.mxu0 %v349_v62 }
 0x30d   :  { %3221 = vmatprep.subr.bf16.mxu0 %v3661_v15 }
 0x30e   :  { %v394_v63 = vpop.permute.xlu0 %393 }
 0x30f   :  { %v399_v2 = vsel %vm196_vm2, %v394_v63, 0 }
 0x311   :  { %3206 = vmatmul.mubr.msk.bf16.vlgmr.msra.gmra.mrb[8].mxu1 %vm196_vm2, %v183_v43 }
 0x312   :  { %3216 = vmatpush3.bf16.xpose.msra.mxu1 %v399_v2  ;;  %v444_v3 = vpop.permute.xlu1 %443  ;;  %3217 = vmatprep.mubr.msk.bf16.mxu1 %vm3662_vm1, %v3661_v15  ;;  %v494_v5 = vpop.permute.xlu0 %493 }
 0x313   :  { %v449_v4 = vsel %vm196_vm2, %v444_v3, 0  ;;  %3212 = vmatmul.mubr.msk.bf16.vlgmr.msra.gmra.mrb[4].mxu0 %vm196_vm2, %v185_v45  ;;  %3227 = vmatprep.subr.bf16.mxu1 %v3661_v15  ;;  %v499_v7 = vsel %vm196_vm2, %v494_v5, 0 }
 0x314   :  { %3222 = vmatpush3.bf16.xpose.msra.mxu0 %v449_v4  ;;  %3223 = vmatprep.mubr.msk.bf16.mxu0 %vm3662_vm1, %v3661_v15 }
 0x315   :  { %3233 = vmatprep.subr.bf16.mxu0 %v3661_v15 }
 0x316   :  { %v544_v6 = vpop.permute.xlu1 %543 }
 0x317   :  { %v549_v8 = vsel %vm196_vm2, %v544_v6, 0 }
 0x319   :  { %3218 = vmatmul.mubr.msk.bf16.vlgmr.msra.gmra.mrb[12].mxu1 %vm196_vm2, %v187_v48 }
 0x31a   :  { %3228 = vmatpush3.bf16.xpose.msra.mxu1 %v499_v7  ;;  %3229 = vmatprep.mubr.msk.bf16.mxu1 %vm3662_vm1, %v3661_v15 }
 0x31b   :  { %3224 = vmatmul.mubr.msk.bf16.vlgmr.msra.gmra.mrb[8].mxu0 %vm196_vm2, %v189_v52  ;;  %3239 = vmatprep.subr.bf16.mxu1 %v3661_v15 }
 0x31c   :  { %3234 = vmatpush3.bf16.xpose.msra.mxu0 %v549_v8  ;;  %3235 = vmatprep.mubr.msk.bf16.mxu0 %vm3662_vm1, %v3661_v15 }
 0x31d   :  { %3245 = vmatprep.subr.bf16.mxu0 %v3661_v15 }
 0x321   :  { %3230 = vmatmul.mubr.msk.bf16.vlgmr.msra.gmra.mrb[16].mxu1 %vm196_vm2, %v191_v47 }
 0x322   :  { %3241 = vmatprep.mubr.msk.bf16.mxu1 %vm3662_vm1, %v3661_v15 }
 0x323   :  { %3236 = vmatmul.mubr.msk.bf16.vlgmr.msra.gmra.mrb[12].mxu0 %vm196_vm2, %v193_v55 }
 0x324   :  { %3247 = vmatprep.mubr.msk.bf16.mxu0 %vm3662_vm1, %v3661_v15 }
 0x377   :  { %v237_v9 = vpop.f32.mrb[4].mxu1 }
 0x378   :  { %v591_v11 = vmul.f32 0.35355338, %v237_v9  ;;  %v3195_v12 = vpop.f32.mrb[5].mxu1 }
 0x379   :  { %v240_v13 = vpop.f32.mrb[6].mxu1 }
 0x37a   :  { %v3196_v14 = vpop.f32.mrb[7].mxu1  ;;  %v599_v16 = vadd.f32 %v591_v11, %v58_v10 }
 0x37c   :  { %v607_v17 = vsel %vm196_vm2, %v599_v16, -inf }
 0x37d   :  { %608 = vmax.xlane.f32.xlu0 %v607_v17 }
 0x381   :  { %v285_v18 = vpop.f32.mrb[0].mxu0 }
 0x382   :  { %v592_v20 = vmul.f32 0.35355338, %v285_v18  ;;  %v3201_v21 = vpop.f32.mrb[1].mxu0 }
 0x383   :  { %v288_v22 = vpop.f32.mrb[2].mxu0 }
 0x384   :  { %v3202_v23 = vpop.f32.mrb[3].mxu0  ;;  %v3900_v24 = vadd.f32 %v592_v20, %v59_v19 }
 0x386   :  { %v610_v25 = vsel %vm196_vm2, %v3900_v24, -inf }
 0x387   :  { %611 = vmax.xlane.f32.xlu1 %v610_v25 }
 0x3e4   :  { %v335_v26 = vpop.f32.mrb[8].mxu1 }
 0x3e5   :  { %v593_v27 = vmul.f32 0.35355338, %v335_v26  ;;  %v3207_v28 = vpop.f32.mrb[9].mxu1 }
 0x3e6   :  { %v338_v29 = vpop.f32.mrb[10].mxu1  ;;  %v385_v30 = vpop.f32.mrb[4].mxu0 }
 0x3e7   :  { %v594_v31 = vmul.f32 0.35355338, %v385_v30  ;;  %v3208_v32 = vpop.f32.mrb[11].mxu1  ;;  %v3213_v33 = vpop.f32.mrb[5].mxu0  ;;  %v601_v34 = vadd.f32 %v593_v27, %v58_v10 }
 0x3e8   :  { %v388_v35 = vpop.f32.mrb[6].mxu0 }
 0x3e9   :  { %v3214_v36 = vpop.f32.mrb[7].mxu0  ;;  %v613_v37 = vsel %vm196_vm2, %v601_v34, -inf  ;;  %v3905_v38 = vadd.f32 %v594_v31, %v59_v19 }
 0x3ea   :  { %614 = vmax.xlane.f32.xlu0 %v613_v37 }
 0x3eb   :  { %v616_v45 = vsel %vm196_vm2, %v3905_v38, -inf }
 0x3ec   :  { %v435_v40 = vpop.f32.mrb[12].mxu1 }
 0x3ed   :  { %v595_v41 = vmul.f32 0.35355338, %v435_v40  ;;  %v3219_v43 = vpop.f32.mrb[13].mxu1 }
 0x3ee   :  { %v438_v47 = vpop.f32.mrb[14].mxu1  ;;  %v485_v48 = vpop.f32.mrb[8].mxu0  ;;  %617 = vmax.xlane.f32.xlu0 %v616_v45 }
 0x3ef   :  { %v596_v50 = vmul.f32 0.35355338, %v485_v48  ;;  %v3220_v51 = vpop.f32.mrb[15].mxu1  ;;  %v3225_v52 = vpop.f32.mrb[9].mxu0  ;;  %v3909_v55 = vadd.f32 %v595_v41, %v58_v10 }
 0x3f0   :  { %v488_v57 = vpop.f32.mrb[10].mxu0 }
 0x3f1   :  { %v3226_v58 = vpop.f32.mrb[11].mxu0  ;;  %v619_v59 = vsel %vm196_vm2, %v3909_v55, -inf  ;;  %v604_v60 = vadd.f32 %v596_v50, %v59_v19 }
 0x3f2   :  { %620 = vmax.xlane.f32.xlu0 %v619_v59 }
 0x3f3   :  { %v622_v61 = vsel %vm196_vm2, %v604_v60, -inf }
 0x3f4   :  { %v535_v62 = vpop.f32.mrb[16].mxu1  ;;  %623 = vmax.xlane.f32.xlu1 %v622_v61 }
 0x3f5   :  { %v597_v63 = vmul.f32 0.35355338, %v535_v62  ;;  %v3231_v2 = vpop.f32.mrb[17].mxu1 }
 0x3f6   :  { %v538_v3 = vpop.f32.mrb[18].mxu1  ;;  %v585_v4 = vpop.f32.mrb[12].mxu0 }
 0x3f7   :  { %v3232_v5 = vpop.f32.mrb[19].mxu1  ;;  %v3237_v6 = vpop.f32.mrb[13].mxu0  ;;  %v3914_v7 = vadd.f32 %v597_v63, %v58_v10  ;;  %v598_v14 = vmul.f32 0.35355338, %v585_v4 }
 0x3f8   :  { %v588_v8 = vpop.f32.mrb[14].mxu0 }
 0x3f9   :  { %v3238_v9 = vpop.f32.mrb[15].mxu0  ;;  %v625_v11 = vsel %vm196_vm2, %v3914_v7, -inf  ;;  %v606_v17 = vadd.f32 %v598_v14, %v59_v19 }
 0x3fa   :  { %626 = vmax.xlane.f32.xlu0 %v625_v11 }
 0x3fb   :  { %v628_v20 = vsel %vm196_vm2, %v606_v17, -inf }
 0x405   :  { %752 = vrot.lane.b32.xlu1 %v3809_v42, %s3667_s19 }
 0x409   :  { %800 = vrot.lane.b32.xlu1 %v3827_v44, %s3667_s19 }
 0x40a   :  { %v609_v12 = vpop.xlane.xlu0 %608 }
 0x40b   :  { %v631_v13 = vsub.f32 %v599_v16, %v609_v12 }
 0x40d   :  { %v639_v10 = vmul.f32 1.442695, %v631_v13 }
 0x40f   :  { %3547 = vpow2.f32 %v639_v10 }
 0x410   :  { %703 = vrot.lane.b32.xlu0 %v3807_v39, %s3667_s19 }
 0x414   :  { %v612_v44 = vpop.xlane.xlu1 %611 }
 0x415   :  { %v632_v39 = vsub.f32 %v3900_v24, %v612_v44 }
 0x417   :  { %v641_v16 = vmul.f32 1.442695, %v632_v39 }
 0x419   :  { %v3924_v18 = vpop.eup %3547  ;;  %3549 = vpow2.f32 %v641_v16 }
 0x41a   :  { %v655_v42 = vsel %vm196_vm2, %v3924_v18, 0.0 }
 0x423   :  { %v3932_v21 = vpop.eup %3549 }
 0x424   :  { %v658_v19 = vsel %vm196_vm2, %v3932_v21, 0.0 }
 0x42d   :  { %629 = vmax.xlane.f32.xlu1 %v628_v20 }
 0x42f   :  { %656 = vadd.xlane.f32.xlu0 %v655_v42 }
 0x43e   :  { %848 = vrot.lane.b32.xlu1 %v3829_v46, %s3667_s19 }
 0x462   :  { %659 = vadd.xlane.f32.xlu1 %v658_v19 }
 0x473   :  { %944 = vrot.lane.b32.xlu1 %v3842_v54, %s3667_s19 }
 0x477   :  { %v615_v22 = vpop.xlane.xlu0 %614 }
 0x478   :  { %v633_v23 = vsub.f32 %v601_v34, %v615_v22 }
 0x47a   :  { %v643_v25 = vmul.f32 1.442695, %v633_v23 }
 0x47b   :  { %v618_v26 = vpop.xlane.xlu0 %617 }
 0x47c   :  { %3551 = vpow2.f32 %v643_v25  ;;  %v634_v46 = vsub.f32 %v3905_v38, %v618_v26 }
 0x47e   :  { %v645_v28 = vmul.f32 1.442695, %v634_v46 }
 0x47f   :  { %v621_v24 = vpop.xlane.xlu0 %620 }
 0x480   :  { %3553 = vpow2.f32 %v645_v28  ;;  %v635_v43 = vsub.f32 %v3909_v55, %v621_v24 }
 0x481   :  { %v624_v27 = vpop.xlane.xlu1 %623 }
 0x482   :  { %v636_v29 = vsub.f32 %v604_v60, %v624_v27  ;;  %v647_v45 = vmul.f32 1.442695, %v635_v43 }
 0x484   :  { %v649_v34 = vmul.f32 1.442695, %v636_v29 }
 0x485   :  { %v753_v30 = vpop.permute.xlu1 %752 }
 0x486   :  { %v3939_v31 = vpop.eup %3551  ;;  %v758_v32 = vsel %vm708_vm3, %v753_v30, 0  ;;  %3555 = vpow2.f32 %v649_v34 }
 0x487   :  { %3246 = vmatpush3.bf16.msra.mxu0 %v758_v32  ;;  %v627_v33 = vpop.xlane.xlu0 %626  ;;  %v661_v54 = vsel %vm196_vm2, %v3939_v31, 0.0  ;;  %3557 = vpow2.f32 %v647_v45 }
 0x488   :  { %662 = vadd.xlane.f32.xlu0 %v661_v54  ;;  %3257 = vmatprep.subr.bf16.mxu0 %v3661_v15  ;;  %v637_v47 = vsub.f32 %v3914_v7, %v627_v33 }
 0x489   :  { %v801_v50 = vpop.permute.xlu1 %800 }
 0x48a   :  { %v3947_v37 = vpop.eup %3553  ;;  %v651_v48 = vmul.f32 1.442695, %v637_v47  ;;  %v806_v4 = vsel %vm708_vm3, %v801_v50, 0 }
 0x48b   :  { %v704_v35 = vpop.permute.xlu0 %703  ;;  %v664_v38 = vsel %vm196_vm2, %v3947_v37, 0.0 }
 0x48c   :  { %v710_v36 = vsel %vm708_vm3, %v704_v35, 0  ;;  %3559 = vpow2.f32 %v651_v48 }
 0x48d   :  { %3240 = vmatpush3.bf16.msra.mxu1 %v710_v36 }
 0x48e   :  { %3251 = vmatprep.subr.bf16.mxu1 %v3661_v15 }
 0x490   :  { %v3951_v40 = vpop.eup %3555 }
 0x491   :  { %v670_v41 = vsel %vm196_vm2, %v3951_v40, 0.0  ;;  %v3959_v51 = vpop.eup %3557 }
 0x492   :  { %v667_v59 = vsel %vm196_vm2, %v3959_v51, 0.0 }
 0x496   :  { %v3963_v60 = vpop.eup %3559 }
 0x497   :  { %665 = vadd.xlane.f32.xlu1 %v664_v38  ;;  %v673_v55 = vsel %vm196_vm2, %v3963_v60, 0.0 }
 0x49b   :  { %671 = vadd.xlane.f32.xlu1 %v670_v41 }
 0x49e   :  { %896 = vrot.lane.b32.xlu0 %v3835_v49, %s3667_s19 }
 0x4ba   :  { %v630_v52 = vpop.xlane.xlu1 %629 }
 0x4bb   :  { %v638_v57 = vsub.f32 %v606_v17, %v630_v52 }
 0x4bc   :  { %v657_v58 = vpop.xlane.xlu0 %656 }
 0x4bd   :  { %v653_v49 = vmul.f32 1.442695, %v638_v57  ;;  %3561 = vrcp.f32 %v657_v58  ;;  %668 = vadd.xlane.f32.xlu0 %v667_v59 }
 0x4be   :  { %v849_v5 = vpop.permute.xlu1 %848 }
 0x4bf   :  { %3563 = vpow2.f32 %v653_v49  ;;  %v854_v11 = vsel %vm708_vm3, %v849_v5, 0 }
 0x4c1   :  { %674 = vadd.xlane.f32.xlu0 %v673_v55 }
 0x4c7   :  { %v3562_v61 = vpop.eup %3561 }
 0x4c8   :  { %v680_v62 = vmul.f32 %v3562_v61, %v3924_v18 }
 0x4c9   :  { %v3968_v63 = vpop.eup %3563 }
 0x4ca   :  { %v676_v2 = vsel %vm196_vm2, %v3968_v63, 0.0  ;;  %v695_v3 = vpack.c.bf16 %v680_v62, %v680_v62 }
 0x4cb   :  { %677 = vadd.xlane.f32.xlu1 %v676_v2 }
 0x4cc   :  { %3242 = vmatmul.mubr.msk.bf16.vlgmr.msra.gmra.mrb[20].mxu1 %vm196_vm2, %v695_v3  ;;  %v3515_v3 = vld [vmem:[%s4469_s6] sm:$0xff]  }
 0x4cd   :  { %3252 = vmatpush3.bf16.msra.mxu1 %v806_v4  ;;  %3253 = vmatprep.mubr.msk.bf16.mxu1 %vm3662_vm1, %v3661_v15 }
 0x4ce   :  { %3263 = vmatprep.subr.bf16.mxu1 %v3661_v15 }
 0x4d7   :  { %992 = vrot.lane.b32.xlu0 %v3840_v53, %s3667_s19 }
 0x4dc   :  { %1040 = vrot.lane.b32.xlu1 %v3849_v56, %s3667_s19 }
 0x4ef   :  { %v660_v6 = vpop.xlane.xlu1 %659 }
 0x4f0   :  { %3565 = vrcp.f32 %v660_v6 }
 0x4f3   :  { %v945_v12 = vpop.permute.xlu1 %944 }
 0x4fa   :  { %v3566_v7 = vpop.eup %3565 }
 0x4fb   :  { %v682_v8 = vmul.f32 %v3566_v7, %v3932_v21  ;;  %v950_v21 = vsel %vm708_vm3, %v945_v12, 0 }
 0x4fd   :  { %v696_v9 = vpack.c.bf16 %v682_v8, %v682_v8 }
 0x4ff   :  { %3248 = vmatmul.mubr.msk.bf16.vlgmr.msra.gmra.mrb[16].mxu0 %vm196_vm2, %v696_v9  ;;  %v3516_v9 = vld [vmem:[%s4469_s6 + $0x8] sm:$0xff]  }
 0x500   :  { %3258 = vmatpush3.bf16.msra.mxu0 %v854_v11  ;;  %3259 = vmatprep.mubr.msk.bf16.mxu0 %vm3662_vm1, %v3661_v15 }
 0x501   :  { %3269 = vmatprep.subr.bf16.mxu0 %v3661_v15 }
 0x515   :  { %v663_v53 = vpop.xlane.xlu0 %662 }
 0x516   :  { %3567 = vrcp.f32 %v663_v53 }
 0x519   :  { %v897_v10 = vpop.permute.xlu0 %896 }
 0x51a   :  { %v902_v18 = vsel %vm708_vm3, %v897_v10, 0 }
 0x520   :  { %v3568_v56 = vpop.eup %3567 }
 0x521   :  { %v684_v13 = vmul.f32 %v3568_v56, %v3939_v31 }
 0x523   :  { %v697_v14 = vpack.c.bf16 %v684_v13, %v684_v13 }
 0x524   :  { %v666_v17 = vpop.xlane.xlu1 %665 }
 0x525   :  { %3569 = vrcp.f32 %v666_v17  ;;  %3254 = vmatmul.mubr.msk.bf16.vlgmr.msra.gmra.mrb[24].mxu1 %vm196_vm2, %v697_v14 }
 0x526   :  { %3264 = vmatpush3.bf16.msra.mxu1 %v902_v18  ;;  %3265 = vmatprep.mubr.msk.bf16.mxu1 %vm3662_vm1, %v3661_v15 }
 0x527   :  { %3275 = vmatprep.subr.bf16.mxu1 %v3661_v15 }
 0x528   :  { %v672_v20 = vpop.xlane.xlu1 %671 }
 0x529   :  { %3571 = vrcp.f32 %v672_v20 }
 0x52f   :  { %v3570_v42 = vpop.eup %3569 }
 0x530   :  { %v686_v44 = vmul.f32 %v3570_v42, %v3947_v37 }
 0x532   :  { %v698_v39 = vpack.c.bf16 %v686_v44, %v686_v44 }
 0x533   :  { %v3572_v16 = vpop.eup %3571 }
 0x534   :  { %3260 = vmatmul.mubr.msk.bf16.vlgmr.msra.gmra.mrb[20].mxu0 %vm196_vm2, %v698_v39  ;;  %v690_v19 = vmul.f32 %v3572_v16, %v3951_v40 }
 0x535   :  { %3270 = vmatpush3.bf16.msra.mxu0 %v950_v21  ;;  %3271 = vmatprep.mubr.msk.bf16.mxu0 %vm3662_vm1, %v3661_v15 }
 0x536   :  { %3281 = vmatprep.subr.bf16.mxu0 %v3661_v15  ;;  %v700_v22 = vpack.c.bf16 %v690_v19, %v690_v19 }
 0x53c   :  { %3272 = vmatmul.mubr.msk.bf16.vlgmr.msra.gmra.mrb[24].mxu0 %vm196_vm2, %v700_v22 }
 0x53d   :  { %3283 = vmatprep.mubr.msk.bf16.mxu0 %vm3662_vm1, %v3661_v15 }
 0x54a   :  { %v669_v23 = vpop.xlane.xlu0 %668 }
 0x54b   :  { %3573 = vrcp.f32 %v669_v23 }
 0x54e   :  { %v675_v25 = vpop.xlane.xlu0 %674 }
 0x54f   :  { %3575 = vrcp.f32 %v675_v25 }
 0x552   :  { %v993_v27 = vpop.permute.xlu0 %992 }
 0x553   :  { %v998_v30 = vsel %vm708_vm3, %v993_v27, 0 }
 0x555   :  { %v3574_v26 = vpop.eup %3573 }
 0x556   :  { %v688_v46 = vmul.f32 %v3574_v26, %v3959_v51 }
 0x558   :  { %v678_v24 = vpop.xlane.xlu1 %677  ;;  %v699_v28 = vpack.c.bf16 %v688_v46, %v688_v46 }
 0x559   :  { %v3576_v29 = vpop.eup %3575  ;;  %3577 = vrcp.f32 %v678_v24 }
 0x55a   :  { %3266 = vmatmul.mubr.msk.bf16.vlgmr.msra.gmra.mrb[28].mxu1 %vm196_vm2, %v699_v28  ;;  %v692_v31 = vmul.f32 %v3576_v29, %v3963_v60 }
 0x55b   :  { %3276 = vmatpush3.bf16.msra.mxu1 %v998_v30  ;;  %3277 = vmatprep.mubr.msk.bf16.mxu1 %vm3662_vm1, %v3661_v15  ;;  %v2967_v30 = vld [vmem:[%s4470_s7] ss:$0 sm:$0xff] }
 0x55c   :  { %v1041_v32 = vpop.permute.xlu1 %1040  ;;  %3287 = vmatprep.subr.bf16.mxu1 %v3661_v15  ;;  %v701_v54 = vpack.c.bf16 %v692_v31, %v692_v31 }
 0x55d   :  { %v1046_v33 = vsel %vm708_vm3, %v1041_v32, 0 }
 0x55e   :  { %3282 = vmatpush3.bf16.msra.mxu0 %v1046_v33 }
 0x55f   :  { %3295 = vmatprep.subr.bf16.mxu0 %v3661_v15 }
 0x562   :  { %3278 = vmatmul.mubr.msk.bf16.vlgmr.msra.gmra.mrb[32].mxu1 %vm196_vm2, %v701_v54 }
 0x563   :  { %v3578_v34 = vpop.eup %3577  ;;  %3291 = vmatprep.mubr.msk.bf16.mxu1 %vm3662_vm1, %v3661_v15  ;;  %3288 = vmatpush3.bf16.msra.mxu1 %v3515_v3  ;;  %v2971_v3 = vld [vmem:[%s4471_s8] ss:$0 sm:$0xff] }
 0x564   :  { %v694_v35 = vmul.f32 %v3578_v34, %v3968_v63  ;;  %3289 = vmatprep.subr.bf16.mxu1 %v3661_v15 }
 0x566   :  { %v702_v36 = vpack.c.bf16 %v694_v35, %v694_v35 }
 0x567   :  { %3290 = vmatpush3.bf16.msra.mxu1 %v3516_v9 }
 0x568   :  { %3284 = vmatmul.mubr.msk.bf16.vlgmr.msra.gmra.mrb[28].mxu0 %vm196_vm2, %v702_v36  ;;  %3303 = vmatprep.subr.bf16.mxu1 %v3661_v15 }
 0x569   :  { %3299 = vmatprep.mubr.msk.bf16.mxu0 %vm3662_vm1, %v3661_v15 }
 0x59f   :  { %v746_v37 = vpop.f32.mrb[20].mxu1 }
 0x5a0   :  { %v3243_v38 = vpop.f32.mrb[21].mxu1 }
 0x5a1   :  { %v749_v40 = vpop.f32.mrb[22].mxu1 }
 0x5a2   :  { %v3244_v41 = vpop.f32.mrb[23].mxu1 }
 0x5d2   :  { %v794_v43 = vpop.f32.mrb[16].mxu0 }
 0x5d3   :  { %v3249_v45 = vpop.f32.mrb[17].mxu0 }
 0x5d4   :  { %v797_v47 = vpop.f32.mrb[18].mxu0 }
 0x5d5   :  { %v3250_v48 = vpop.f32.mrb[19].mxu0 }
 0x5f8   :  { %v842_v50 = vpop.f32.mrb[24].mxu1 }
 0x5f9   :  { %v3255_v51 = vpop.f32.mrb[25].mxu1 }
 0x5fa   :  { %v845_v52 = vpop.f32.mrb[26].mxu1 }
 0x5fb   :  { %v3256_v57 = vpop.f32.mrb[27].mxu1 }
 0x5fc   :  { %v3517_v57 = vld [vmem:[%s4473_s10] sm:$0xff]  }
 0x5fd   :  { %3296 = vmatpush3.bf16.msra.mxu0 %v3517_v57 }
 0x5fe   :  { %3297 = vmatprep.subr.bf16.mxu0 %v3661_v15 }
 0x607   :  { %v890_v58 = vpop.f32.mrb[20].mxu0 }
 0x608   :  { %v3483_v59 = vpack.i.bf16 %v890_v58, %v842_v50  ;;  %v3261_v60 = vpop.f32.mrb[21].mxu0  ;;  %v3518_v58 = vld [vmem:[%s4473_s10 + $0x8] sm:$0xff]  }
 0x609   :  { %v893_v49 = vpop.f32.mrb[22].mxu0  ;;  %3298 = vmatpush3.bf16.msra.mxu0 %v3518_v58 }
 0x60a   :  { %v3262_v55 = vpop.f32.mrb[23].mxu0  ;;  %3484 = vrot.lane.b32.xlu0 %v3483_v59, %s3668_s1  ;;  %3323 = vmatprep.subr.bf16.mxu0 %v3661_v15 }
 0x60f   :  { %v986_v61 = vpop.f32.mrb[24].mxu0 }
 0x610   :  { %v3273_v62 = vpop.f32.mrb[25].mxu0 }
 0x611   :  { %v989_v63 = vpop.f32.mrb[26].mxu0 }
 0x612   :  { %v3274_v2 = vpop.f32.mrb[27].mxu0 }
 0x62d   :  { %v938_v4 = vpop.f32.mrb[28].mxu1 }
 0x62e   :  { %v3488_v5 = vpack.i.bf16 %v986_v61, %v938_v4  ;;  %v3267_v6 = vpop.f32.mrb[29].mxu1 }
 0x62f   :  { %v941_v7 = vpop.f32.mrb[30].mxu1 }
 0x630   :  { %3489 = vrot.lane.b32.xlu1 %v3488_v5, %s3669_s22  ;;  %v3268_v8 = vpop.f32.mrb[31].mxu1  ;;  %v2972_v7 = vld [vmem:[%s4472_s9] ss:$0 sm:$0xff] }
 0x635   :  { %v1034_v11 = vpop.f32.mrb[32].mxu1 }
 0x636   :  { %v3279_v53 = vpop.f32.mrb[33].mxu1 }
 0x637   :  { %v1037_v56 = vpop.f32.mrb[34].mxu1 }
 0x638   :  { %v3280_v12 = vpop.f32.mrb[35].mxu1  ;;  %v3519_v56 = vld [vmem:[%s4475_s12] sm:$0xff]  }
 0x639   :  { %v3520_v12 = vld [vmem:[%s4475_s12 + $0x8] sm:$0xff]  }
 0x63b   :  { %v1082_v13 = vpop.f32.mrb[28].mxu0 }
 0x63c   :  { %v3493_v10 = vpack.i.bf16 %v1082_v13, %v1034_v11  ;;  %v3285_v14 = vpop.f32.mrb[29].mxu0  ;;  %v3521_v13 = vld [vmem:[%s4475_s12 + $0x10] sm:$0xff]  }
 0x63d   :  { %v1085_v17 = vpop.f32.mrb[30].mxu0  ;;  %v3523_v14 = vld [vmem:[%s4475_s12 + $0x20] sm:$0xff]  }
 0x63e   :  { %v3286_v18 = vpop.f32.mrb[31].mxu0  ;;  %3494 = vrot.lane.b32.xlu0 %v3493_v10, %s4483_s29  ;;  %v3522_v10 = vld [vmem:[%s4475_s12 + $0x18] sm:$0xff]   ;;  %v3524_v17 = vld [vmem:[%s4475_s12 + $0x28] sm:$0xff]  }
 0x63f   :  { %v3525_v18 = vld [vmem:[%s4475_s12 + $0x30] sm:$0xff]  }
 0x67c   :  { %v3485_v20 = vpop.permute.xlu0 %3484 }
 0x67d   :  { %v3487_v44 = vunpack.i.h.bf16 %v3485_v20  ;;  %v3486_v39 = vunpack.i.l.bf16 %v3485_v20  ;;  %v3526_v20 = vld [vmem:[%s4475_s12 + $0x38] sm:$0xff]  }
 0x67f   :  { %v1113_v22 = vsel %vm196_vm2, %v794_v43, %v3487_v44  ;;  %v1112_v23 = vsel %vm196_vm2, %v746_v37, %v3486_v39 }
 0x6a2   :  { %v3490_v42 = vpop.permute.xlu1 %3489 }
 0x6a3   :  { %v3492_v16 = vunpack.i.h.bf16 %v3490_v42  ;;  %v3491_v21 = vunpack.i.l.bf16 %v3490_v42  ;;  %v2973_v42 = vld [vmem:[%s4474_s11] ss:$0 sm:$0xff] }
 0x6a5   :  { %v1115_v46 = vsel %vm1114_vm4, %v1112_v23, %v3491_v21  ;;  %v1116_v27 = vsel %vm1114_vm4, %v1113_v22, %v3492_v16 }
 0x6b0   :  { %v3495_v19 = vpop.permute.xlu0 %3494 }
 0x6b1   :  { %v3497_v25 = vunpack.i.h.bf16 %v3495_v19  ;;  %v3496_v26 = vunpack.i.l.bf16 %v3495_v19 }
 0x6b3   :  { %v1118_v24 = vsel %vm1117_vm5, %v1115_v46, %v3496_v26  ;;  %v1119_v28 = vsel %vm1117_vm5, %v1116_v27, %v3497_v25 }
 0x6b4   :  { %v1120_v29 = vpack.c.bf16 %v1119_v28, %v1118_v24 }
 0x6b6   :  { %3292 = vmatmul.mubr.msk.bf16.vlgmr.msra.gmra.mrb[36].mxu1 %vm64_vm0, %v1120_v29 }
 0x6b7   :  { %3319 = vmatprep.mubr.msk.bf16.mxu1 %vm3662_vm1, %v3661_v15  ;;  %3304 = vmatpush3.bf16.msra.mxu1 %v3519_v56 }
 0x6b8   :  { %3305 = vmatprep.subr.bf16.mxu1 %v3661_v15 }
 0x6bb   :  { %3306 = vmatpush3.bf16.msra.mxu1 %v3520_v12  ;;  %v2988_v12 = vld [vmem:[%s4465_s2 + $0x1] ss:$0 sm:$0xff] }
 0x6bc   :  { %3307 = vmatprep.subr.bf16.mxu1 %v3661_v15 }
 0x6bf   :  { %3308 = vmatpush3.bf16.msra.mxu1 %v3521_v13 }
 0x6c0   :  { %3309 = vmatprep.subr.bf16.mxu1 %v3661_v15 }
 0x6c3   :  { %3310 = vmatpush3.bf16.msra.mxu1 %v3522_v10 }
 0x6c4   :  { %3311 = vmatprep.subr.bf16.mxu1 %v3661_v15 }
 0x6c7   :  { %3312 = vmatpush3.bf16.msra.mxu1 %v3523_v14 }
 0x6c8   :  { %3313 = vmatprep.subr.bf16.mxu1 %v3661_v15 }
 0x6cb   :  { %3314 = vmatpush3.bf16.msra.mxu1 %v3524_v17 }
 0x6cc   :  { %3315 = vmatprep.subr.bf16.mxu1 %v3661_v15 }
 0x6cf   :  { %3316 = vmatpush3.bf16.msra.mxu1 %v3525_v18  ;;  %v2989_v18 = vld [vmem:[%s4466_s3 + $0x1] ss:$0 sm:$0xff] }
 0x6d0   :  { %3317 = vmatprep.subr.bf16.mxu1 %v3661_v15 }
 0x6d3   :  { %3318 = vmatpush3.bf16.msra.mxu1 %v3526_v20 }
 0x6d4   :  { %3349 = vmatprep.subr.bf16.mxu1 %v3661_v15 }
 0x789   :  { %v1181_v31 = vpop.f32.mrb[36].mxu1 }
 0x78a   :  { %v1182_v32 = vadd.f32 %v2967_v30, %v1181_v31  ;;  %v3293_v33 = vpop.f32.mrb[37].mxu1 }
 0x78b   :  { %v1184_v54 = vpop.f32.mrb[38].mxu1 }
 0x78c   :  { %v4043_v34 = vadd.f32 %v1182_v32, %v3766_v0  ;;  %v1185_v35 = vadd.f32 %v2967_v30, %v1184_v54  ;;  %v3294_v36 = vpop.f32.mrb[39].mxu1 }
 0x78e   :  { %v4046_v37 = vadd.f32 %v1185_v35, %v3771_v1  ;;  %v1192_v38 = vsel %vm64_vm0, %v4043_v34, 0.0 }
 0x78f   :  { %1193 = vadd.xlane.f32.xlu1 %v1192_v38 }
 0x790   :  { %v1195_v40 = vsel %vm64_vm0, %v4046_v37, 0.0 }
 0x791   :  { %1196 = vadd.xlane.f32.xlu0 %v1195_v40 }
 0x81c   :  { %v1194_v41 = vpop.xlane.xlu1 %1193 }
 0x81d   :  { %v1198_v43 = vmul.f32 0.03125, %v1194_v41 }
 0x81e   :  { %v1197_v45 = vpop.xlane.xlu0 %1196 }
 0x81f   :  { %v1200_v47 = vsub.f32 %v4043_v34, %v1198_v43  ;;  %v1199_v0 = vmul.f32 0.03125, %v1197_v45  ;;  %v2977_v45 = vld [vmem:[%s4476_s13] ss:$0 sm:$0xff] }
 0x821   :  { %v1201_v48 = vsub.f32 %v4046_v37, %v1199_v0  ;;  %v1202_v50 = vmul.f32 %v1200_v47, %v1200_v47 }
 0x823   :  { %v1204_v1 = vsel %vm64_vm0, %v1202_v50, 0.0  ;;  %v1203_v51 = vmul.f32 %v1201_v48, %v1201_v48 }
 0x824   :  { %1205 = vadd.xlane.f32.xlu0 %v1204_v1 }
 0x825   :  { %v1207_v52 = vsel %vm64_vm0, %v1203_v51, 0.0 }
 0x828   :  { %1208 = vadd.xlane.f32.xlu0 %v1207_v52 }
 0x8b1   :  { %v1206_v59 = vpop.xlane.xlu0 %1205 }
 0x8b2   :  { %v1210_v60 = vmul.f32 0.03125, %v1206_v59 }
 0x8b4   :  { %v1212_v49 = vadd.f32 1e-05, %v1210_v60 }
 0x8b5   :  { %v1209_v55 = vpop.xlane.xlu0 %1208 }
 0x8b6   :  { %3579 = vrsqrt.f32 %v1212_v49  ;;  %v1211_v61 = vmul.f32 0.03125, %v1209_v55 }
 0x8b8   :  { %v1213_v62 = vadd.f32 1e-05, %v1211_v61 }
 0x8ba   :  { %3581 = vrsqrt.f32 %v1213_v62 }
 0x8c0   :  { %v3580_v63 = vpop.eup %3579 }
 0x8c1   :  { %v1216_v2 = vmul.f32 %v3580_v63, %v1200_v47 }
 0x8c3   :  { %v1224_v5 = vmul.f32 %v2971_v3, %v1216_v2 }
 0x8c4   :  { %v3582_v4 = vpop.eup %3581 }
 0x8c5   :  { %v1217_v6 = vmul.f32 %v3582_v4, %v1201_v48  ;;  %v1232_v9 = vadd.f32 %v2972_v7, %v1224_v5  ;;  %v3527_v4 = vld [vmem:[%s4467_s4 + $0x10] sm:$0xff]   ;;  %v3528_v5 = vld [vmem:[%s4467_s4 + $0x18] sm:$0xff]  }
 0x8c7   :  { %v1225_v8 = vmul.f32 %v2971_v3, %v1217_v6 }
 0x8c9   :  { %v1233_v11 = vadd.f32 %v2972_v7, %v1225_v8 }
 0x8cb   :  { %v1234_v53 = vpack.c.bf16 %v1233_v11, %v1232_v9 }
 0x8cd   :  { %3300 = vmatmul.mubr.msk.bf16.vlgmr.msra.gmra.mrb[32].mxu0 %vm64_vm0, %v1234_v53 }
 0x8ce   :  { %3327 = vmatprep.mubr.msk.bf16.mxu0 %vm3662_vm1, %v3661_v15  ;;  %3324 = vmatpush3.bf16.msra.mxu0 %v3527_v4 }
 0x8cf   :  { %3325 = vmatprep.subr.bf16.mxu0 %v3661_v15 }
 0x8d2   :  { %3326 = vmatpush3.bf16.msra.mxu0 %v3528_v5 }
 0x8d3   :  { %3331 = vmatprep.subr.bf16.mxu0 %v3661_v15 }
 0x9a0   :  { %v1295_v44 = vpop.f32.mrb[32].mxu0 }
 0x9a1   :  { %v1296_v39 = vadd.f32 %v2973_v42, %v1295_v44  ;;  %v3301_v16 = vpop.f32.mrb[33].mxu0 }
 0x9a2   :  { %v1298_v21 = vpop.f32.mrb[34].mxu0  ;;  %v2995_v16 = vld [vmem:[%s4468_s5 + $0x1] ss:$0 sm:$0xff] }
 0x9a3   :  { %v1302_v19 = vmul.f32 %v1296_v39, %v1296_v39  ;;  %v1299_v22 = vadd.f32 %v2973_v42, %v1298_v21  ;;  %v3302_v23 = vpop.f32.mrb[35].mxu0 }
 0x9a5   :  { %v1304_v25 = vmul.f32 %v1302_v19, %v1296_v39  ;;  %v1303_v26 = vmul.f32 %v1299_v22, %v1299_v22 }
 0x9a7   :  { %v1306_v46 = vmul.f32 0.044715, %v1304_v25  ;;  %v1305_v27 = vmul.f32 %v1303_v26, %v1299_v22 }
 0x9a9   :  { %v1308_v24 = vadd.f32 %v1306_v46, %v1296_v39  ;;  %v1307_v28 = vmul.f32 0.044715, %v1305_v27 }
 0x9ab   :  { %v1310_v29 = vmul.f32 0.7978846, %v1308_v24  ;;  %v1309_v30 = vadd.f32 %v1307_v28, %v1299_v22 }
 0x9ad   :  { %3583 = vtanh.f32 %v1310_v29  ;;  %v1311_v31 = vmul.f32 0.7978846, %v1309_v30 }
 0x9af   :  { %3585 = vtanh.f32 %v1311_v31 }
 0x9b7   :  { %v3584_v32 = vpop.eup %3583 }
 0x9b8   :  { %v1314_v33 = vadd.f32 1.0, %v3584_v32 }
 0x9b9   :  { %v3586_v54 = vpop.eup %3585 }
 0x9ba   :  { %v1316_v35 = vmul.f32 0.5, %v1314_v33  ;;  %v1315_v36 = vadd.f32 1.0, %v3586_v54 }
 0x9bc   :  { %v1317_v38 = vmul.f32 0.5, %v1315_v36  ;;  %v1318_v40 = vmul.f32 %v1316_v35, %v1296_v39 }
 0x9be   :  { %v1319_v41 = vmul.f32 %v1317_v38, %v1299_v22 }
 0x9c0   :  { %v1320_v43 = vpack.c.bf16 %v1319_v41, %v1318_v40 }
 0x9c2   :  { %3320 = vmatmul.mubr.bf16.vlgmr.msra.gmra.mrb[40].mxu1 %v1320_v43 }
 0x9c3   :  { %3351 = vmatprep.mubr.msk.bf16.mxu1 %vm3662_vm1, %v3661_v15 }
 0xa95   :  { %v1426_v47 = vpop.f32.mrb[40].mxu1 }
 0xa96   :  { %v1427_v0 = vadd.f32 %v2977_v45, %v1426_v47  ;;  %v3321_v48 = vpop.f32.mrb[41].mxu1 }
 0xa97   :  { %v1429_v50 = vpop.f32.mrb[42].mxu1 }
 0xa98   :  { %v4114_v1 = vadd.f32 %v1427_v0, %v4043_v34  ;;  %v1430_v51 = vadd.f32 %v2977_v45, %v1429_v50  ;;  %v3322_v52 = vpop.f32.mrb[43].mxu1 }
 0xa9a   :  { %v4117_v57 = vadd.f32 %v1430_v51, %v4046_v37  ;;  %v1439_v58 = vsel %vm64_vm0, %v4114_v1, 0.0 }
 0xa9b   :  { %1440 = vadd.xlane.f32.xlu1 %v1439_v58 }
 0xa9c   :  { %v1442_v59 = vsel %vm64_vm0, %v4117_v57, 0.0 }
 0xa9d   :  { %1443 = vadd.xlane.f32.xlu0 %v1442_v59 }
 0xb28   :  { %v1441_v60 = vpop.xlane.xlu1 %1440 }
 0xb29   :  { %v1445_v49 = vmul.f32 0.03125, %v1441_v60 }
 0xb2a   :  { %v1444_v55 = vpop.xlane.xlu0 %1443 }
 0xb2b   :  { %v1447_v61 = vsub.f32 %v4114_v1, %v1445_v49  ;;  %v1446_v34 = vmul.f32 0.03125, %v1444_v55 }
 0xb2d   :  { %v1448_v62 = vsub.f32 %v4117_v57, %v1446_v34  ;;  %v1449_v63 = vmul.f32 %v1447_v61, %v1447_v61 }
 0xb2f   :  { %v1451_v37 = vsel %vm64_vm0, %v1449_v63, 0.0  ;;  %v1450_v2 = vmul.f32 %v1448_v62, %v1448_v62 }
 0xb30   :  { %1452 = vadd.xlane.f32.xlu1 %v1451_v37 }
 0xb31   :  { %v1454_v3 = vsel %vm64_vm0, %v1450_v2, 0.0 }
 0xb32   :  { %1455 = vadd.xlane.f32.xlu0 %v1454_v3 }
 0xbbd   :  { %v1453_v6 = vpop.xlane.xlu1 %1452 }
 0xbbe   :  { %v1457_v7 = vmul.f32 0.03125, %v1453_v6  ;;  %v3635_v6 = vld [vmem:[%s4487_s0] sm:$0xff] }
 0xbbf   :  { %v1456_v8 = vpop.xlane.xlu0 %1455 }
 0xbc0   :  { %v1459_v9 = vadd.f32 1e-05, %v1457_v7  ;;  %v1458_v11 = vmul.f32 0.03125, %v1456_v8 }
 0xbc2   :  { %3587 = vrsqrt.f32 %v1459_v9  ;;  %v1460_v53 = vadd.f32 1e-05, %v1458_v11 }
 0xbc4   :  { %3589 = vrsqrt.f32 %v1460_v53 }
 0xbcc   :  { %v3588_v56 = vpop.eup %3587 }
 0xbcd   :  { %v1463_v13 = vmul.f32 %v3588_v56, %v1447_v61 }
 0xbce   :  { %v3590_v10 = vpop.eup %3589 }
 0xbcf   :  { %v1471_v14 = vmul.f32 %v2988_v12, %v1463_v13  ;;  %v1464_v17 = vmul.f32 %v3590_v10, %v1448_v62  ;;  %v3636_v13 = vld [vmem:[%s4487_s0 + $0x8] sm:$0xff] }
 0xbd1   :  { %v1472_v20 = vmul.f32 %v2988_v12, %v1464_v17  ;;  %v1479_v42 = vadd.f32 %v2989_v18, %v1471_v14 }
 0xbd3   :  { %v1480_v44 = vadd.f32 %v2989_v18, %v1472_v20 }
 0xbd5   :  { %v1481_v39 = vpack.c.bf16 %v1480_v44, %v1479_v42 }
 0xbd7   :  { %3328 = vmatmul.mubr.msk.bf16.vlgmr.msra.gmra.mrb[36].mxu0 %vm64_vm0, %v1481_v39 }
 0xbd8   :  { %3333 = vmatprep.mubr.msk.bf16.mxu0 %vm3662_vm1, %v3661_v15 }
 0xcaa   :  { %v1544_v21 = vpop.f32.mrb[36].mxu0 }
 0xcab   :  { %v1545_v19 = vadd.f32 %v2995_v16, %v1544_v21  ;;  %v3329_v22 = vpop.f32.mrb[37].mxu0 }
 0xcac   :  { %v1547_v23 = vpop.f32.mrb[38].mxu0 }
 0xcad   :  { %v3078_v25 = vpack.c.bf16 %v1545_v19, %v1545_v19  ;;  %v1548_v26 = vadd.f32 %v2995_v16, %v1547_v23  ;;  %v3330_v46 = vpop.f32.mrb[39].mxu0 }
 0xcaf   :  { %v4147_v27 = vpack.c.bf16 %v1548_v26, %v1548_v26  ;;  %1557 = vrot.lane.b32.xlu1 %v3078_v25, %s3663_s24 }
 0xcb1   :  { %1559 = vrot.lane.b32.xlu0 %v4147_v27, %s3663_s24 }
 0xcb3   :  { %1561 = vrot.lane.b32.xlu1 %v3078_v25, %s3665_s26 }
 0xcb5   :  { %1567 = vrot.lane.b32.xlu0 %v4147_v27, %s3664_s25 }
 0xcb7   :  { %1563 = vrot.lane.b32.xlu1 %v4147_v27, %s3665_s26 }
 0xcb9   :  { %1617 = vrot.lane.b32.xlu0 %v4147_v27, %s3666_s27 }
 0xcbb   :  { %1565 = vrot.lane.b32.xlu1 %v3078_v25, %s3664_s25 }
 0xcbf   :  { %1569 = vrot.lane.b32.xlu1 %v3078_v25, %s3666_s27 }
 0xd21   :  { %v1558_v24 = vpop.permute.xlu1 %1557 }
 0xd22   :  { %v4161_v28 = vcombine.low %v1558_v24, %v1558_v24 }
 0xd23   :  { %v1560_v29 = vpop.permute.xlu0 %1559 }
 0xd24   :  { %v4163_v30 = vcombine.low %v1560_v29, %v1560_v29  ;;  %1667 = vrot.lane.b32.xlu1 %v4161_v28, %s3666_s27 }
 0xd25   :  { %v1562_v31 = vpop.permute.xlu1 %1561 }
 0xd26   :  { %v4167_v32 = vcombine.low %v1562_v31, %v1562_v31  ;;  %1717 = vrot.lane.b32.xlu0 %v4163_v30, %s3666_s27 }
 0xd27   :  { %v1568_v35 = vpop.permute.xlu0 %1567 }
 0xd28   :  { %1767 = vrot.lane.b32.xlu1 %v4167_v32, %s3666_s27  ;;  %v4177_v38 = vcombine.low %v1568_v35, %v1568_v35 }
 0xd29   :  { %v1564_v33 = vpop.permute.xlu1 %1563 }
 0xd2a   :  { %v4173_v54 = vcombine.low %v1564_v33, %v1564_v33 }
 0xd2b   :  { %v1618_v45 = vpop.permute.xlu0 %1617 }
 0xd2c   :  { %1817 = vrot.lane.b32.xlu0 %v4173_v54, %s3666_s27  ;;  %v1623_v47 = vsel %vm196_vm2, %v1618_v45, 0 }
 0xd2d   :  { %v1566_v36 = vpop.permute.xlu1 %1565 }
 0xd2e   :  { %v4179_v40 = vcombine.low %v1566_v36, %v1566_v36 }
 0xd30   :  { %1867 = vrot.lane.b32.xlu1 %v4179_v40, %s3666_s27  ;;  %1917 = vrot.lane.b32.xlu0 %v4177_v38, %s3666_s27 }
 0xd31   :  { %v1570_v41 = vpop.permute.xlu1 %1569 }
 0xd32   :  { %v1575_v43 = vsel %vm196_vm2, %v1570_v41, 0 }
 0xd33   :  { %3332 = vmatpush3.bf16.xpose.msra.mxu0 %v1575_v43 }
 0xd34   :  { %2077 = vrot.lane.b32.xlu1 %v3078_v25, %s3667_s19  ;;  %3337 = vmatprep.subr.bf16.mxu0 %v3661_v15 }
 0xd3a   :  { %3334 = vmatmul.mubr.msk.bf16.vlgmr.msra.gmra.mrb[40].mxu0 %vm196_vm2, %v3078_v25 }
 0xd3b   :  { %3338 = vmatpush3.bf16.xpose.msra.mxu0 %v1623_v47  ;;  %3339 = vmatprep.mubr.msk.bf16.mxu0 %vm3662_vm1, %v3661_v15 }
 0xd3c   :  { %3343 = vmatprep.subr.bf16.mxu0 %v3661_v15 }
 0xd42   :  { %3340 = vmatmul.mubr.msk.bf16.vlgmr.msra.gmra.mrb[44].mxu0 %vm196_vm2, %v4147_v27 }
 0xd43   :  { %3345 = vmatprep.mubr.msk.bf16.mxu0 %vm3662_vm1, %v3661_v15 }
 0xd96   :  { %v1668_v0 = vpop.permute.xlu1 %1667 }
 0xd97   :  { %v1673_v48 = vsel %vm196_vm2, %v1668_v0, 0 }
 0xd98   :  { %3344 = vmatpush3.bf16.xpose.msra.mxu0 %v1673_v48  ;;  %v1718_v50 = vpop.permute.xlu0 %1717 }
 0xd99   :  { %v1723_v51 = vsel %vm196_vm2, %v1718_v50, 0  ;;  %3355 = vmatprep.subr.bf16.mxu0 %v3661_v15 }
 0xd9a   :  { %3350 = vmatpush3.bf16.xpose.msra.mxu1 %v1723_v51  ;;  %v1768_v52 = vpop.permute.xlu1 %1767 }
 0xd9b   :  { %3361 = vmatprep.subr.bf16.mxu1 %v3661_v15  ;;  %v1773_v59 = vsel %vm196_vm2, %v1768_v52, 0 }
 0xd9e   :  { %v1818_v58 = vpop.permute.xlu0 %1817 }
 0xd9f   :  { %3346 = vmatmul.mubr.msk.bf16.vlgmr.msra.gmra.mrb[48].mxu0 %vm196_vm2, %v1558_v24  ;;  %v1823_v60 = vsel %vm196_vm2, %v1818_v58, 0 }
 0xda0   :  { %3356 = vmatpush3.bf16.xpose.msra.mxu0 %v1773_v59  ;;  %3357 = vmatprep.mubr.msk.bf16.mxu0 %vm3662_vm1, %v3661_v15 }
 0xda1   :  { %3352 = vmatmul.mubr.msk.bf16.vlgmr.msra.gmra.mrb[44].mxu1 %vm196_vm2, %v1560_v29  ;;  %3367 = vmatprep.subr.bf16.mxu0 %v3661_v15 }
 0xda2   :  { %3362 = vmatpush3.bf16.xpose.msra.mxu1 %v1823_v60  ;;  %3363 = vmatprep.mubr.msk.bf16.mxu1 %vm3662_vm1, %v3661_v15  ;;  %v1868_v49 = vpop.permute.xlu1 %1867  ;;  %v1918_v55 = vpop.permute.xlu0 %1917 }
 0xda3   :  { %3373 = vmatprep.subr.bf16.mxu1 %v3661_v15  ;;  %v1873_v61 = vsel %vm196_vm2, %v1868_v49, 0  ;;  %v1923_v34 = vsel %vm196_vm2, %v1918_v55, 0 }
 0xda6   :  { %v2078_v62 = vpop.permute.xlu1 %2077 }
 0xda7   :  { %3358 = vmatmul.mubr.msk.bf16.vlgmr.msra.gmra.mrb[52].mxu0 %vm196_vm2, %v1562_v31  ;;  %v2083_v63 = vsel %vm708_vm3, %v2078_v62, 0 }
 0xda8   :  { %3368 = vmatpush3.bf16.xpose.msra.mxu0 %v1873_v61  ;;  %3369 = vmatprep.mubr.msk.bf16.mxu0 %vm3662_vm1, %v3661_v15 }
 0xda9   :  { %3364 = vmatmul.mubr.msk.bf16.vlgmr.msra.gmra.mrb[48].mxu1 %vm196_vm2, %v1564_v33  ;;  %3379 = vmatprep.subr.bf16.mxu0 %v3661_v15 }
 0xdaa   :  { %3374 = vmatpush3.bf16.xpose.msra.mxu1 %v1923_v34  ;;  %3375 = vmatprep.mubr.msk.bf16.mxu1 %vm3662_vm1, %v3661_v15 }
 0xdab   :  { %3385 = vmatprep.subr.bf16.mxu1 %v3661_v15 }
 0xdaf   :  { %3370 = vmatmul.mubr.msk.bf16.vlgmr.msra.gmra.mrb[56].mxu0 %vm196_vm2, %v1566_v36 }
 0xdb0   :  { %3380 = vmatpush3.bf16.msra.mxu0 %v2083_v63  ;;  %3381 = vmatprep.mubr.msk.bf16.mxu0 %vm3662_vm1, %v3661_v15 }
 0xdb1   :  { %3376 = vmatmul.mubr.msk.bf16.vlgmr.msra.gmra.mrb[52].mxu1 %vm196_vm2, %v1568_v35  ;;  %3391 = vmatprep.subr.bf16.mxu0 %v3661_v15 }
 0xdb2   :  { %3387 = vmatprep.mubr.msk.bf16.mxu1 %vm3662_vm1, %v3661_v15 }
 0xe0d   :  { %v1611_v37 = vpop.f32.mrb[40].mxu0 }
 0xe0e   :  { %v1965_v2 = vmul.f32 0.35355338, %v1611_v37  ;;  %v3335_v3 = vpop.f32.mrb[41].mxu0 }
 0xe0f   :  { %v1614_v4 = vpop.f32.mrb[42].mxu0 }
 0xe10   :  { %v3336_v5 = vpop.f32.mrb[43].mxu0  ;;  %v4232_v7 = vadd.f32 %v3635_v6, %v1965_v2 }
 0xe12   :  { %v1981_v8 = vsel %vm196_vm2, %v4232_v7, -inf }
 0xe13   :  { %1982 = vmax.xlane.f32.xlu1 %v1981_v8 }
 0xe15   :  { %v1659_v9 = vpop.f32.mrb[44].mxu0 }
 0xe16   :  { %v1966_v11 = vmul.f32 0.35355338, %v1659_v9  ;;  %v3341_v53 = vpop.f32.mrb[45].mxu0 }
 0xe17   :  { %v1662_v56 = vpop.f32.mrb[46].mxu0 }
 0xe18   :  { %v3342_v12 = vpop.f32.mrb[47].mxu0  ;;  %v1974_v10 = vadd.f32 %v3636_v13, %v1966_v11 }
 0xe1a   :  { %v1984_v14 = vsel %vm196_vm2, %v1974_v10, -inf }
 0xe1b   :  { %1985 = vmax.xlane.f32.xlu0 %v1984_v14 }
 0xe72   :  { %v1709_v17 = vpop.f32.mrb[48].mxu0 }
 0xe73   :  { %v1967_v18 = vmul.f32 0.35355338, %v1709_v17  ;;  %v3347_v20 = vpop.f32.mrb[49].mxu0 }
 0xe74   :  { %v1712_v42 = vpop.f32.mrb[50].mxu0  ;;  %v1759_v44 = vpop.f32.mrb[44].mxu1 }
 0xe75   :  { %v1968_v39 = vmul.f32 0.35355338, %v1759_v44  ;;  %v3348_v16 = vpop.f32.mrb[51].mxu0  ;;  %v3353_v21 = vpop.f32.mrb[45].mxu1  ;;  %v1975_v19 = vadd.f32 %v3635_v6, %v1967_v18 }
 0xe76   :  { %v1762_v22 = vpop.f32.mrb[46].mxu1 }
 0xe77   :  { %v3354_v23 = vpop.f32.mrb[47].mxu1  ;;  %v1987_v25 = vsel %vm196_vm2, %v1975_v19, -inf  ;;  %v1976_v26 = vadd.f32 %v3636_v13, %v1968_v39 }
 0xe78   :  { %1988 = vmax.xlane.f32.xlu0 %v1987_v25 }
 0xe79   :  { %v1990_v31 = vsel %vm196_vm2, %v1976_v26, -inf }
 0xe7a   :  { %v1809_v46 = vpop.f32.mrb[52].mxu0 }
 0xe7b   :  { %v1969_v24 = vmul.f32 0.35355338, %v1809_v46  ;;  %v3359_v29 = vpop.f32.mrb[53].mxu0 }
 0xe7c   :  { %v1812_v33 = vpop.f32.mrb[54].mxu0  ;;  %1991 = vmax.xlane.f32.xlu0 %v1990_v31  ;;  %v1859_v35 = vpop.f32.mrb[48].mxu1 }
 0xe7d   :  { %v1970_v36 = vmul.f32 0.35355338, %v1859_v35  ;;  %v3360_v41 = vpop.f32.mrb[55].mxu0  ;;  %v3365_v43 = vpop.f32.mrb[49].mxu1  ;;  %v1977_v45 = vadd.f32 %v3635_v6, %v1969_v24 }
 0xe7e   :  { %v1862_v47 = vpop.f32.mrb[50].mxu1 }
 0xe7f   :  { %v3366_v0 = vpop.f32.mrb[51].mxu1  ;;  %v1993_v48 = vsel %vm196_vm2, %v1977_v45, -inf  ;;  %v4243_v50 = vadd.f32 %v3636_v13, %v1970_v36 }
 0xe80   :  { %1994 = vmax.xlane.f32.xlu1 %v1993_v48 }
 0xe81   :  { %v1996_v51 = vsel %vm196_vm2, %v4243_v50, -inf }
 0xe82   :  { %v1909_v52 = vpop.f32.mrb[56].mxu0  ;;  %1997 = vmax.xlane.f32.xlu0 %v1996_v51 }
 0xe83   :  { %v1971_v58 = vmul.f32 0.35355338, %v1909_v52  ;;  %v3371_v59 = vpop.f32.mrb[57].mxu0 }
 0xe84   :  { %v1912_v60 = vpop.f32.mrb[58].mxu0  ;;  %v1959_v49 = vpop.f32.mrb[52].mxu1 }
 0xe85   :  { %v1972_v55 = vmul.f32 0.35355338, %v1959_v49  ;;  %v3372_v61 = vpop.f32.mrb[59].mxu0  ;;  %v3377_v34 = vpop.f32.mrb[53].mxu1  ;;  %v1979_v62 = vadd.f32 %v3635_v6, %v1971_v58 }
 0xe86   :  { %v1962_v63 = vpop.f32.mrb[54].mxu1 }
 0xe87   :  { %v3378_v37 = vpop.f32.mrb[55].mxu1  ;;  %v1999_v2 = vsel %vm196_vm2, %v1979_v62, -inf  ;;  %v1980_v3 = vadd.f32 %v3636_v13, %v1972_v55 }
 0xe88   :  { %2000 = vmax.xlane.f32.xlu1 %v1999_v2 }
 0xe89   :  { %v2002_v4 = vsel %vm196_vm2, %v1980_v3, -inf }
 0xe8a   :  { %2003 = vmax.xlane.f32.xlu0 %v2002_v4 }
 0xe99   :  { %2173 = vrot.lane.b32.xlu1 %v4161_v28, %s3667_s19 }
 0xe9d   :  { %2221 = vrot.lane.b32.xlu1 %v4163_v30, %s3667_s19 }
 0xea0   :  { %2125 = vrot.lane.b32.xlu0 %v4147_v27, %s3667_s19  ;;  %v1983_v5 = vpop.xlane.xlu1 %1982 }
 0xea1   :  { %v2005_v9 = vsub.f32 %v4232_v7, %v1983_v5 }
 0xea3   :  { %v2013_v53 = vmul.f32 1.442695, %v2005_v9 }
 0xea8   :  { %v1986_v6 = vpop.xlane.xlu0 %1985 }
 0xea9   :  { %v2006_v8 = vsub.f32 %v1974_v10, %v1986_v6 }
 0xeab   :  { %v2015_v11 = vmul.f32 1.442695, %v2006_v8 }
 0xead   :  { %3591 = vpow2.f32 %v2015_v11 }
 0xeae   :  { %3593 = vpow2.f32 %v2013_v53 }
 0xeb7   :  { %v3592_v56 = vpop.eup %3591 }
 0xeb8   :  { %v4256_v12 = vpop.eup %3593  ;;  %v2032_v28 = vsel %vm196_vm2, %v3592_v56, 0.0 }
 0xeb9   :  { %v2029_v30 = vsel %vm196_vm2, %v4256_v12, 0.0 }
 0xebf   :  { %2033 = vadd.xlane.f32.xlu0 %v2032_v28 }
 0xec1   :  { %2030 = vadd.xlane.f32.xlu1 %v2029_v30 }
 0xed2   :  { %2269 = vrot.lane.b32.xlu1 %v4167_v32, %s3667_s19 }
 0xf05   :  { %v1989_v27 = vpop.xlane.xlu0 %1988 }
 0xf06   :  { %v2007_v13 = vsub.f32 %v1975_v19, %v1989_v27 }
 0xf08   :  { %v2017_v7 = vmul.f32 1.442695, %v2007_v13 }
 0xf09   :  { %v1992_v10 = vpop.xlane.xlu0 %1991 }
 0xf0a   :  { %3595 = vpow2.f32 %v2017_v7  ;;  %v2008_v14 = vsub.f32 %v1976_v26, %v1992_v10 }
 0xf0c   :  { %v2019_v17 = vmul.f32 1.442695, %v2008_v14 }
 0xf0d   :  { %v1995_v18 = vpop.xlane.xlu1 %1994 }
 0xf0e   :  { %3597 = vpow2.f32 %v2019_v17  ;;  %v2009_v20 = vsub.f32 %v1977_v45, %v1995_v18 }
 0xf0f   :  { %v1998_v44 = vpop.xlane.xlu0 %1997 }
 0xf10   :  { %v2021_v42 = vmul.f32 1.442695, %v2009_v20  ;;  %v2010_v35 = vsub.f32 %v4243_v50, %v1998_v44 }
 0xf12   :  { %3599 = vpow2.f32 %v2021_v42  ;;  %v2023_v36 = vmul.f32 1.442695, %v2010_v35 }
 0xf14   :  { %v4263_v39 = vpop.eup %3595 }
 0xf15   :  { %v2001_v16 = vpop.xlane.xlu1 %2000  ;;  %v2035_v21 = vsel %vm196_vm2, %v4263_v39, 0.0 }
 0xf16   :  { %v2011_v32 = vsub.f32 %v1979_v62, %v2001_v16  ;;  %2036 = vadd.xlane.f32.xlu1 %v2035_v21 }
 0xf17   :  { %v2004_v19 = vpop.xlane.xlu0 %2003 }
 0xf18   :  { %v4267_v22 = vpop.eup %3597  ;;  %v2025_v23 = vmul.f32 1.442695, %v2011_v32  ;;  %v2012_v41 = vsub.f32 %v1980_v3, %v2004_v19 }
 0xf19   :  { %v2038_v25 = vsel %vm196_vm2, %v4267_v22, 0.0  ;;  %v2174_v45 = vpop.permute.xlu1 %2173 }
 0xf1a   :  { %3601 = vpow2.f32 %v2025_v23  ;;  %2039 = vadd.xlane.f32.xlu0 %v2038_v25  ;;  %v2027_v43 = vmul.f32 1.442695, %v2012_v41  ;;  %v2179_v34 = vsel %vm708_vm3, %v2174_v45, 0 }
 0xf1b   :  { %v2126_v26 = vpop.permute.xlu0 %2125  ;;  %3603 = vpow2.f32 %v2023_v36 }
 0xf1c   :  { %v4271_v46 = vpop.eup %3599  ;;  %v2131_v24 = vsel %vm708_vm3, %v2126_v26, 0  ;;  %3605 = vpow2.f32 %v2027_v43 }
 0xf1d   :  { %3386 = vmatpush3.bf16.msra.mxu1 %v2131_v24  ;;  %v2041_v29 = vsel %vm196_vm2, %v4271_v46, 0.0  ;;  %v2222_v47 = vpop.permute.xlu1 %2221 }
 0xf1e   :  { %2042 = vadd.xlane.f32.xlu1 %v2041_v29  ;;  %3397 = vmatprep.subr.bf16.mxu1 %v3661_v15  ;;  %v2227_v55 = vsel %vm708_vm3, %v2222_v47, 0 }
 0xf24   :  { %v4277_v31 = vpop.eup %3601 }
 0xf25   :  { %v2047_v33 = vsel %vm196_vm2, %v4277_v31, 0.0  ;;  %v4286_v0 = vpop.eup %3603 }
 0xf26   :  { %2048 = vadd.xlane.f32.xlu1 %v2047_v33  ;;  %v4290_v52 = vpop.eup %3605 }
 0xf30   :  { %2317 = vrot.lane.b32.xlu0 %v4173_v54, %s3667_s19  ;;  %v2044_v54 = vsel %vm196_vm2, %v4286_v0, 0.0 }
 0xf37   :  { %2365 = vrot.lane.b32.xlu1 %v4179_v40, %s3667_s19  ;;  %v2050_v40 = vsel %vm196_vm2, %v4290_v52, 0.0 }
 0xf4c   :  { %v2034_v48 = vpop.xlane.xlu0 %2033 }
 0xf4d   :  { %3607 = vrcp.f32 %v2034_v48 }
 0xf4e   :  { %v2031_v51 = vpop.xlane.xlu1 %2030 }
 0xf4f   :  { %3609 = vrcp.f32 %v2031_v51  ;;  %2045 = vadd.xlane.f32.xlu0 %v2044_v54 }
 0xf52   :  { %v2270_v62 = vpop.permute.xlu1 %2269 }
 0xf53   :  { %2051 = vadd.xlane.f32.xlu0 %v2050_v40  ;;  %v2275_v8 = vsel %vm708_vm3, %v2270_v62, 0 }
 0xf57   :  { %v3608_v50 = vpop.eup %3607 }
 0xf58   :  { %v2056_v58 = vmul.f32 %v3608_v50, %v3592_v56 }
 0xf59   :  { %v3610_v59 = vpop.eup %3609 }
 0xf5a   :  { %v2054_v60 = vmul.f32 %v3610_v59, %v4256_v12  ;;  %v2070_v49 = vpack.c.bf16 %v2056_v58, %v2056_v58 }
 0xf5c   :  { %3388 = vmatmul.mubr.msk.bf16.vlgmr.msra.gmra.mrb[56].mxu1 %vm196_vm2, %v2070_v49  ;;  %v2069_v61 = vpack.c.bf16 %v2054_v60, %v2054_v60  ;;  %v3529_v49 = vld [vmem:[%s4469_s6 + $0x10] sm:$0xff]  }
 0xf5d   :  { %3398 = vmatpush3.bf16.msra.mxu1 %v2227_v55  ;;  %3399 = vmatprep.mubr.msk.bf16.mxu1 %vm3662_vm1, %v3661_v15  ;;  %v3530_v55 = vld [vmem:[%s4469_s6 + $0x18] sm:$0xff]  }
 0xf5e   :  { %3382 = vmatmul.mubr.msk.bf16.vlgmr.msra.gmra.mrb[60].mxu0 %vm196_vm2, %v2069_v61  ;;  %3409 = vmatprep.subr.bf16.mxu1 %v3661_v15 }
 0xf5f   :  { %3392 = vmatpush3.bf16.msra.mxu0 %v2179_v34  ;;  %3393 = vmatprep.mubr.msk.bf16.mxu0 %vm3662_vm1, %v3661_v15 }
 0xf60   :  { %3403 = vmatprep.subr.bf16.mxu0 %v3661_v15 }
 0xf69   :  { %2413 = vrot.lane.b32.xlu0 %v4177_v38, %s3667_s19  ;;  %s4488_s19 = smov 24  }
 0xfa3   :  { %v2037_v63 = vpop.xlane.xlu1 %2036 }
 0xfa4   :  { %3611 = vrcp.f32 %v2037_v63 }
 0xfa7   :  { %v2040_v37 = vpop.xlane.xlu0 %2039 }
 0xfa8   :  { %3613 = vrcp.f32 %v2040_v37 }
 0xfab   :  { %v2043_v2 = vpop.xlane.xlu1 %2042  ;;  %v2318_v38 = vpop.permute.xlu0 %2317 }
 0xfac   :  { %3615 = vrcp.f32 %v2043_v2  ;;  %v2323_v28 = vsel %vm708_vm3, %v2318_v38, 0 }
 0xfae   :  { %v3612_v3 = vpop.eup %3611 }
 0xfaf   :  { %v2058_v4 = vmul.f32 %v3612_v3, %v4263_v39 }
 0xfb1   :  { %v2071_v5 = vpack.c.bf16 %v2058_v4, %v2058_v4 }
 0xfb2   :  { %v3614_v6 = vpop.eup %3613 }
 0xfb3   :  { %v2060_v9 = vmul.f32 %v3614_v6, %v4267_v22  ;;  %3394 = vmatmul.mubr.msk.bf16.vlgmr.msra.gmra.mrb[64].mxu0 %vm196_vm2, %v2071_v5  ;;  %v2049_v11 = vpop.xlane.xlu1 %2048 }
 0xfb4   :  { %3404 = vmatpush3.bf16.msra.mxu0 %v2275_v8  ;;  %3617 = vrcp.f32 %v2049_v11  ;;  %3405 = vmatprep.mubr.msk.bf16.mxu0 %vm3662_vm1, %v3661_v15 }
 0xfb5   :  { %v2072_v53 = vpack.c.bf16 %v2060_v9, %v2060_v9  ;;  %3415 = vmatprep.subr.bf16.mxu0 %v3661_v15 }
 0xfb6   :  { %v3616_v56 = vpop.eup %3615 }
 0xfb7   :  { %v2062_v12 = vmul.f32 %v3616_v56, %v4271_v46  ;;  %3400 = vmatmul.mubr.msk.bf16.vlgmr.msra.gmra.mrb[60].mxu1 %vm196_vm2, %v2072_v53  ;;  %v2366_v30 = vpop.permute.xlu1 %2365 }
 0xfb8   :  { %3410 = vmatpush3.bf16.msra.mxu1 %v2323_v28  ;;  %3411 = vmatprep.mubr.msk.bf16.mxu1 %vm3662_vm1, %v3661_v15  ;;  %v2371_v13 = vsel %vm708_vm3, %v2366_v30, 0 }
 0xfb9   :  { %v2073_v27 = vpack.c.bf16 %v2062_v12, %v2062_v12  ;;  %3421 = vmatprep.subr.bf16.mxu1 %v3661_v15 }
 0xfbb   :  { %3406 = vmatmul.mubr.msk.bf16.vlgmr.msra.gmra.mrb[68].mxu0 %vm196_vm2, %v2073_v27 }
 0xfbc   :  { %3416 = vmatpush3.bf16.msra.mxu0 %v2371_v13  ;;  %3417 = vmatprep.mubr.msk.bf16.mxu0 %vm3662_vm1, %v3661_v15 }
 0xfbd   :  { %3427 = vmatprep.subr.bf16.mxu0 %v3661_v15 }
 0xfbe   :  { %v3618_v7 = vpop.eup %3617 }
 0xfbf   :  { %v2066_v10 = vmul.f32 %v3618_v7, %v4277_v31 }
 0xfc1   :  { %v2075_v14 = vpack.c.bf16 %v2066_v10, %v2066_v10 }
 0xfc3   :  { %3418 = vmatmul.mubr.msk.bf16.vlgmr.msra.gmra.mrb[72].mxu0 %vm196_vm2, %v2075_v14 }
 0xfc4   :  { %3431 = vmatprep.mubr.msk.bf16.mxu0 %vm3662_vm1, %v3661_v15  ;;  %3428 = vmatpush3.bf16.msra.mxu0 %v3529_v49  ;;  %v3035_v49 = vld [vmem:[%s4472_s9 + $0x1] ss:$0 sm:$0xff] }
 0xfc5   :  { %3429 = vmatprep.subr.bf16.mxu0 %v3661_v15 }
 0xfc8   :  { %3430 = vmatpush3.bf16.msra.mxu0 %v3530_v55 }
 0xfc9   :  { %3443 = vmatprep.subr.bf16.mxu0 %v3661_v15 }
 0xfdc   :  { %v2046_v17 = vpop.xlane.xlu0 %2045 }
 0xfdd   :  { %3619 = vrcp.f32 %v2046_v17 }
 0xfe0   :  { %v2052_v18 = vpop.xlane.xlu0 %2051 }
 0xfe1   :  { %3621 = vrcp.f32 %v2052_v18 }
 0xfe4   :  { %v2414_v44 = vpop.permute.xlu0 %2413 }
 0xfe5   :  { %v2419_v21 = vsel %vm708_vm3, %v2414_v44, 0 }
 0xfe7   :  { %v3620_v20 = vpop.eup %3619 }
 0xfe8   :  { %v2064_v42 = vmul.f32 %v3620_v20, %v4286_v0  ;;  %v3028_v20 = vld [vmem:[%s4470_s7 + $0x1] ss:$0 sm:$0xff] }
 0xfea   :  { %v2074_v39 = vpack.c.bf16 %v2064_v42, %v2064_v42 }
 0xfeb   :  { %v3622_v16 = vpop.eup %3621 }
 0xfec   :  { %3412 = vmatmul.mubr.msk.bf16.vlgmr.msra.gmra.mrb[64].mxu1 %vm196_vm2, %v2074_v39  ;;  %v2068_v32 = vmul.f32 %v3622_v16, %v4290_v52 }
 0xfed   :  { %3422 = vmatpush3.bf16.msra.mxu1 %v2419_v21  ;;  %3423 = vmatprep.mubr.msk.bf16.mxu1 %vm3662_vm1, %v3661_v15 }
 0xfee   :  { %3435 = vmatprep.subr.bf16.mxu1 %v3661_v15  ;;  %v2076_v19 = vpack.c.bf16 %v2068_v32, %v2068_v32 }
 0xff4   :  { %3424 = vmatmul.mubr.msk.bf16.vlgmr.msra.gmra.mrb[68].mxu1 %vm196_vm2, %v2076_v19 }
 0xff5   :  { %3439 = vmatprep.mubr.msk.bf16.mxu1 %vm3662_vm1, %v3661_v15 }
0x102f   :  { %v2167_v22 = vpop.f32.mrb[56].mxu1 }
0x1030   :  { %v3389_v23 = vpop.f32.mrb[57].mxu1 }
0x1031   :  { %v2119_v25 = vpop.f32.mrb[60].mxu0  ;;  %v2170_v26 = vpop.f32.mrb[58].mxu1 }
0x1032   :  { %v3383_v46 = vpop.f32.mrb[61].mxu0  ;;  %v3390_v24 = vpop.f32.mrb[59].mxu1 }
0x1033   :  { %v2122_v29 = vpop.f32.mrb[62].mxu0 }
0x1034   :  { %v3384_v31 = vpop.f32.mrb[63].mxu0 }
0x1086   :  { %v2215_v33 = vpop.f32.mrb[64].mxu0 }
0x1087   :  { %v3395_v35 = vpop.f32.mrb[65].mxu0 }
0x1088   :  { %v2218_v36 = vpop.f32.mrb[66].mxu0 }
0x1089   :  { %v3396_v41 = vpop.f32.mrb[67].mxu0 }
0x108a   :  { %v2263_v43 = vpop.f32.mrb[60].mxu1  ;;  %v3531_v41 = vld [vmem:[%s4473_s10 + $0x10] sm:$0xff]  }
0x108b   :  { %v3498_v45 = vpack.i.bf16 %v2263_v43, %v2215_v33  ;;  %v3401_v47 = vpop.f32.mrb[61].mxu1  ;;  %3436 = vmatpush3.bf16.msra.mxu1 %v3531_v41  ;;  %v3532_v43 = vld [vmem:[%s4473_s10 + $0x18] sm:$0xff]  }
0x108c   :  { %v2266_v0 = vpop.f32.mrb[62].mxu1  ;;  %3437 = vmatprep.subr.bf16.mxu1 %v3661_v15 }
0x108d   :  { %3499 = vrot.lane.b32.xlu1 %v3498_v45, %s3668_s1  ;;  %v3402_v48 = vpop.f32.mrb[63].mxu1 }
0x108e   :  { %v2311_v51 = vpop.f32.mrb[68].mxu0 }
0x108f   :  { %v3407_v54 = vpop.f32.mrb[69].mxu0  ;;  %3438 = vmatpush3.bf16.msra.mxu1 %v3532_v43 }
0x1090   :  { %v2314_v52 = vpop.f32.mrb[70].mxu0  ;;  %3463 = vmatprep.subr.bf16.mxu1 %v3661_v15 }
0x1091   :  { %v3408_v40 = vpop.f32.mrb[71].mxu0 }
0x1096   :  { %v2407_v50 = vpop.f32.mrb[72].mxu0 }
0x1097   :  { %v3419_v58 = vpop.f32.mrb[73].mxu0 }
0x1098   :  { %v2410_v59 = vpop.f32.mrb[74].mxu0 }
0x1099   :  { %v3420_v60 = vpop.f32.mrb[75].mxu0 }
0x10bf   :  { %v2359_v61 = vpop.f32.mrb[64].mxu1 }
0x10c0   :  { %v3503_v34 = vpack.i.bf16 %v2359_v61, %v2311_v51  ;;  %v3413_v62 = vpop.f32.mrb[65].mxu1 }
0x10c1   :  { %v2362_v63 = vpop.f32.mrb[66].mxu1 }
0x10c2   :  { %3504 = vrot.lane.b32.xlu0 %v3503_v34, %s3669_s22  ;;  %v3414_v37 = vpop.f32.mrb[67].mxu1  ;;  %v3533_v63 = vld [vmem:[%s4475_s12 + $0x40] sm:$0xff]  }
0x10c3   :  { %v3534_v37 = vld [vmem:[%s4475_s12 + $0x48] sm:$0xff]  }
0x10c7   :  { %v2455_v2 = vpop.f32.mrb[68].mxu1 }
0x10c8   :  { %v3508_v3 = vpack.i.bf16 %v2455_v2, %v2407_v50  ;;  %v3425_v4 = vpop.f32.mrb[69].mxu1  ;;  %v3034_v50 = vld [vmem:[%s4471_s8 + $0x1] ss:$0 sm:$0xff]  ;;  %v3535_v2 = vld [vmem:[%s4475_s12 + $0x50] sm:$0xff]   ;;  %s2926_s8 = sshll.u32 %s3671_s23, 4  ;;  %s2927_s8 = int_to_ptr.vmem [resolvable:$true] %s2926_s8 }
0x10c9   :  { %v2458_v5 = vpop.f32.mrb[70].mxu1  ;;  %v3537_v4 = vld [vmem:[%s4475_s12 + $0x60] sm:$0xff]   ;;  %p3642_p1 = scmp.lt.s32.totalorder %s2927_s8, %s2927_s8 }
0x10ca   :  { %3509 = vrot.lane.b32.xlu1 %v3508_v3, %s4488_s19  ;;  %v3426_v6 = vpop.f32.mrb[71].mxu1  ;;  %v3536_v3 = vld [vmem:[%s4475_s12 + $0x58] sm:$0xff]   ;;  %v3538_v5 = vld [vmem:[%s4475_s12 + $0x68] sm:$0xff]  }
0x10cb   :  { %v3539_v6 = vld [vmem:[%s4475_s12 + $0x70] sm:$0xff]  }
0x10ff   :  { %v3500_v8 = vpop.permute.xlu1 %3499 }
0x1100   :  { %v3502_v11 = vunpack.i.h.bf16 %v3500_v8  ;;  %v3501_v38 = vunpack.i.l.bf16 %v3500_v8  ;;  %v3540_v8 = vld [vmem:[%s4475_s12 + $0x78] sm:$0xff]  }
0x1102   :  { %v2486_v28 = vsel %vm196_vm2, %v2167_v22, %v3502_v11  ;;  %v2485_v30 = vsel %vm196_vm2, %v2119_v25, %v3501_v38 }
0x1134   :  { %v3505_v9 = vpop.permute.xlu0 %3504 }
0x1135   :  { %v3507_v53 = vunpack.i.h.bf16 %v3505_v9  ;;  %v3506_v56 = vunpack.i.l.bf16 %v3505_v9  ;;  %v3041_v9 = vld [vmem:[%s4474_s11 + $0x1] ss:$0 sm:$0xff] }
0x1137   :  { %v2488_v7 = vsel %vm1114_vm4, %v2486_v28, %v3507_v53  ;;  %v2487_v10 = vsel %vm1114_vm4, %v2485_v30, %v3506_v56 }
0x113c   :  { %v3510_v12 = vpop.permute.xlu1 %3509 }
0x113d   :  { %v3512_v27 = vunpack.i.h.bf16 %v3510_v12  ;;  %v3511_v13 = vunpack.i.l.bf16 %v3510_v12 }
0x113f   :  { %v2490_v14 = vsel %vm1117_vm5, %v2488_v7, %v3512_v27  ;;  %v2489_v17 = vsel %vm1117_vm5, %v2487_v10, %v3511_v13 }
0x1140   :  { %v2491_v18 = vpack.c.bf16 %v2490_v14, %v2489_v17 }
0x1142   :  { %3432 = vmatmul.mubr.msk.bf16.vlgmr.msra.gmra.mrb[76].mxu0 %vm64_vm0, %v2491_v18 }
0x1143   :  { %3459 = vmatprep.mubr.msk.bf16.mxu0 %vm3662_vm1, %v3661_v15  ;;  %3444 = vmatpush3.bf16.msra.mxu0 %v3533_v63 }
0x1144   :  { %3445 = vmatprep.subr.bf16.mxu0 %v3661_v15 }
0x1147   :  { %3446 = vmatpush3.bf16.msra.mxu0 %v3534_v37  ;;  %v3071_v37 = vld [vmem:[%s4477_s14] ss:$0 sm:$0xff]  ;;  %s3637_s14 = scalar_lea.vmem %s2927_s8, 256 }
0x1148   :  { %3447 = vmatprep.subr.bf16.mxu0 %v3661_v15  ;;  %p3638_p0 = scmp.ne.s32.totalorder %s2927_s8, %s3637_s14  ;;  %p3643_p2 = scmp.lt.s32.totalorder %s3637_s14, %s3637_s14 }
0x114a   :  { %p3644_p3 = por %p3643_p2, %p3642_p1 }
0x114b   :  { %3448 = vmatpush3.bf16.msra.mxu0 %v3535_v2 }
0x114c   :  { %3449 = vmatprep.subr.bf16.mxu0 %v3661_v15  ;;  %p3645_p4 = pnand %p3644_p3, %p3638_p0 }
0x114f   :  { %3450 = vmatpush3.bf16.msra.mxu0 %v3536_v3 }
0x1150   :  { %3451 = vmatprep.subr.bf16.mxu0 %v3661_v15 }
0x1153   :  { %3452 = vmatpush3.bf16.msra.mxu0 %v3537_v4 }
0x1154   :  { %3453 = vmatprep.subr.bf16.mxu0 %v3661_v15 }
0x1157   :  { %3454 = vmatpush3.bf16.msra.mxu0 %v3538_v5 }
0x1158   :  { %3455 = vmatprep.subr.bf16.mxu0 %v3661_v15 }
0x115b   :  { %3456 = vmatpush3.bf16.msra.mxu0 %v3539_v6 }
0x115c   :  { %3457 = vmatprep.subr.bf16.mxu0 %v3661_v15 }
0x115f   :  { %3458 = vmatpush3.bf16.msra.mxu0 %v3540_v8 }
0x1215   :  { %v2554_v42 = vpop.f32.mrb[76].mxu0 }
0x1216   :  { %v2555_v44 = vadd.f32 %v3028_v20, %v2554_v42  ;;  %v3433_v39 = vpop.f32.mrb[77].mxu0 }
0x1217   :  { %v2557_v16 = vpop.f32.mrb[78].mxu0 }
0x1218   :  { %v4363_v21 = vadd.f32 %v2555_v44, %v4114_v1  ;;  %v2558_v32 = vadd.f32 %v3028_v20, %v2557_v16  ;;  %v3434_v19 = vpop.f32.mrb[79].mxu0 }
0x121a   :  { %v4366_v22 = vadd.f32 %v2558_v32, %v4117_v57  ;;  %v2567_v23 = vsel %vm64_vm0, %v4363_v21, 0.0 }
0x121b   :  { %2568 = vadd.xlane.f32.xlu0 %v2567_v23 }
0x121c   :  { %v2570_v25 = vsel %vm64_vm0, %v4366_v22, 0.0 }
0x121d   :  { %2571 = vadd.xlane.f32.xlu1 %v2570_v25 }
0x12a8   :  { %v2569_v26 = vpop.xlane.xlu0 %2568 }
0x12a9   :  { %v2573_v46 = vmul.f32 0.03125, %v2569_v26 }
0x12aa   :  { %v2572_v24 = vpop.xlane.xlu1 %2571 }
0x12ab   :  { %v2575_v29 = vsub.f32 %v4363_v21, %v2573_v46  ;;  %v2574_v1 = vmul.f32 0.03125, %v2572_v24  ;;  %v3062_v24 = vld [vmem:[%s4476_s13 + $0x1] ss:$0 sm:$0xff] }
0x12ad   :  { %v2576_v31 = vsub.f32 %v4366_v22, %v2574_v1  ;;  %v2577_v33 = vmul.f32 %v2575_v29, %v2575_v29 }
0x12af   :  { %v2579_v57 = vsel %vm64_vm0, %v2577_v33, 0.0  ;;  %v2578_v35 = vmul.f32 %v2576_v31, %v2576_v31 }
0x12b0   :  { %2580 = vadd.xlane.f32.xlu0 %v2579_v57 }
0x12b1   :  { %v2582_v36 = vsel %vm64_vm0, %v2578_v35, 0.0 }
0x12b4   :  { %2583 = vadd.xlane.f32.xlu0 %v2582_v36 }
0x133d   :  { %v2581_v45 = vpop.xlane.xlu0 %2580 }
0x133e   :  { %v2585_v47 = vmul.f32 0.03125, %v2581_v45 }
0x1340   :  { %v2587_v0 = vadd.f32 1e-05, %v2585_v47 }
0x1341   :  { %v2584_v48 = vpop.xlane.xlu0 %2583 }
0x1342   :  { %3623 = vrsqrt.f32 %v2587_v0  ;;  %v2586_v51 = vmul.f32 0.03125, %v2584_v48 }
0x1344   :  { %v2588_v54 = vadd.f32 1e-05, %v2586_v51 }
0x1346   :  { %3625 = vrsqrt.f32 %v2588_v54 }
0x134c   :  { %v3624_v52 = vpop.eup %3623 }
0x134d   :  { %v2591_v40 = vmul.f32 %v3624_v52, %v2575_v29 }
0x134f   :  { %v2599_v59 = vmul.f32 %v3034_v50, %v2591_v40 }
0x1350   :  { %v3626_v58 = vpop.eup %3625 }
0x1351   :  { %v2592_v60 = vmul.f32 %v3626_v58, %v2576_v31  ;;  %v2607_v61 = vadd.f32 %v3035_v49, %v2599_v59  ;;  %v3542_v59 = vld [vmem:[%s4479_s16 + $0x8] sm:$0xff]  }
0x1353   :  { %v2600_v55 = vmul.f32 %v3034_v50, %v2592_v60 }
0x1355   :  { %v2608_v34 = vadd.f32 %v3035_v49, %v2600_v55 }
0x1357   :  { %v2609_v62 = vpack.c.bf16 %v2608_v34, %v2607_v61 }
0x1359   :  { %3440 = vmatmul.mubr.msk.bf16.vlgmr.msra.gmra.mrb[72].mxu1 %vm64_vm0, %v2609_v62 }
0x135a   :  { %3467 = vmatprep.mubr.msk.bf16.mxu1 %vm3662_vm1, %v3661_v15 }
0x142c   :  { %v2672_v11 = vpop.f32.mrb[72].mxu1 }
0x142d   :  { %v2673_v38 = vadd.f32 %v3041_v9, %v2672_v11  ;;  %v3441_v53 = vpop.f32.mrb[73].mxu1 }
0x142e   :  { %v2675_v56 = vpop.f32.mrb[74].mxu1 }
0x142f   :  { %v2679_v12 = vmul.f32 %v2673_v38, %v2673_v38  ;;  %v2676_v28 = vadd.f32 %v3041_v9, %v2675_v56  ;;  %v3442_v30 = vpop.f32.mrb[75].mxu1 }
0x1431   :  { %v2681_v27 = vmul.f32 %v2679_v12, %v2673_v38  ;;  %v2680_v13 = vmul.f32 %v2676_v28, %v2676_v28 }
0x1433   :  { %v2683_v7 = vmul.f32 0.044715, %v2681_v27  ;;  %v2682_v10 = vmul.f32 %v2680_v13, %v2676_v28 }
0x1435   :  { %v2685_v14 = vadd.f32 %v2683_v7, %v2673_v38  ;;  %v2684_v17 = vmul.f32 0.044715, %v2682_v10 }
0x1437   :  { %v2687_v18 = vmul.f32 0.7978846, %v2685_v14  ;;  %v2686_v20 = vadd.f32 %v2684_v17, %v2676_v28 }
0x1439   :  { %3627 = vtanh.f32 %v2687_v18  ;;  %v2688_v42 = vmul.f32 0.7978846, %v2686_v20 }
0x143b   :  { %3629 = vtanh.f32 %v2688_v42 }
0x1443   :  { %v3628_v44 = vpop.eup %3627 }
0x1444   :  { %v2691_v39 = vadd.f32 1.0, %v3628_v44 }
0x1445   :  { %v3630_v16 = vpop.eup %3629 }
0x1446   :  { %v2693_v32 = vmul.f32 0.5, %v2691_v39  ;;  %v2692_v19 = vadd.f32 1.0, %v3630_v16 }
0x1448   :  { %v2694_v23 = vmul.f32 0.5, %v2692_v19  ;;  %v2695_v25 = vmul.f32 %v2693_v32, %v2673_v38 }
0x144a   :  { %v2696_v26 = vmul.f32 %v2694_v23, %v2676_v28 }
0x144c   :  { %v2697_v46 = vpack.c.bf16 %v2696_v26, %v2695_v25 }
0x144e   :  { %3460 = vmatmul.mubr.bf16.vlgmr.msra.gmra.mrb[80].mxu0 %v2697_v46 }
0x1521   :  { %v2805_v29 = vpop.f32.mrb[80].mxu0 }
0x1522   :  { %v2806_v1 = vadd.f32 %v3062_v24, %v2805_v29  ;;  %v3461_v31 = vpop.f32.mrb[81].mxu0 }
0x1523   :  { %v2808_v33 = vpop.f32.mrb[82].mxu0 }
0x1524   :  { %v2812_v57 = vadd.f32 %v2806_v1, %v4363_v21  ;;  %v2809_v35 = vadd.f32 %v3062_v24, %v2808_v33  ;;  %v3462_v36 = vpop.f32.mrb[83].mxu0 }
0x1526   :  { %v2813_v41 = vadd.f32 %v2809_v35, %v4366_v22  ;;  %v2816_v43 = vsel %vm64_vm0, %v2812_v57, 0.0  ;;  %v3541_v22 = vld [vmem:[%s4479_s16] sm:$0xff]  }
0x1527   :  { %2817 = vadd.xlane.f32.xlu0 %v2816_v43  ;;  %3464 = vmatpush3.bf16.msra.mxu1 %v3541_v22 }
0x1528   :  { %v2819_v45 = vsel %vm64_vm0, %v2813_v41, 0.0  ;;  %3465 = vmatprep.subr.bf16.mxu1 %v3661_v15  ;;  %v3072_v15 = vld [vmem:[%s4478_s15] ss:$0 sm:$0xff] }
0x1529   :  { %2820 = vadd.xlane.f32.xlu1 %v2819_v45 }
0x152b   :  { %3466 = vmatpush3.bf16.msra.mxu1 %v3542_v59 }
0x15b4   :  { %v2818_v47 = vpop.xlane.xlu0 %2817 }
0x15b5   :  { %v2822_v0 = vmul.f32 0.03125, %v2818_v47 }
0x15b6   :  { %v2821_v48 = vpop.xlane.xlu1 %2820 }
0x15b7   :  { %v2824_v51 = vsub.f32 %v2812_v57, %v2822_v0  ;;  %v2823_v54 = vmul.f32 0.03125, %v2821_v48 }
0x15b9   :  { %v2825_v52 = vsub.f32 %v2813_v41, %v2823_v54  ;;  %v2826_v40 = vmul.f32 %v2824_v51, %v2824_v51 }
0x15bb   :  { %v2828_v50 = vsel %vm64_vm0, %v2826_v40, 0.0  ;;  %v2827_v21 = vmul.f32 %v2825_v52, %v2825_v52 }
0x15bc   :  { %2829 = vadd.xlane.f32.xlu0 %v2828_v50 }
0x15bd   :  { %v2831_v58 = vsel %vm64_vm0, %v2827_v21, 0.0 }
0x15be   :  { %2832 = vadd.xlane.f32.xlu1 %v2831_v58 }
0x1649   :  { %v2830_v60 = vpop.xlane.xlu0 %2829 }
0x164a   :  { %v2834_v49 = vmul.f32 0.03125, %v2830_v60 }
0x164b   :  { %v2833_v55 = vpop.xlane.xlu1 %2832 }
0x164c   :  { %v2836_v61 = vadd.f32 1e-05, %v2834_v49  ;;  %v2835_v34 = vmul.f32 0.03125, %v2833_v55 }
0x164e   :  { %3631 = vrsqrt.f32 %v2836_v61  ;;  %v2837_v62 = vadd.f32 1e-05, %v2835_v34 }
0x1650   :  { %3633 = vrsqrt.f32 %v2837_v62 }
0x1658   :  { %v3632_v63 = vpop.eup %3631 }
0x1659   :  { %v2840_v2 = vmul.f32 %v3632_v63, %v2824_v51 }
0x165a   :  { %v3634_v3 = vpop.eup %3633 }
0x165b   :  { %v2848_v4 = vmul.f32 %v3071_v37, %v2840_v2  ;;  %v2841_v5 = vmul.f32 %v3634_v3, %v2825_v52 }
0x165d   :  { %v2849_v6 = vmul.f32 %v3071_v37, %v2841_v5  ;;  %v2856_v8 = vadd.f32 %v3072_v15, %v2848_v4 }
0x165f   :  { %v2857_v9 = vadd.f32 %v3072_v15, %v2849_v6 }
0x1661   :  { %v2858_v11 = vpack.c.bf16 %v2857_v9, %v2856_v8 }
0x1663   :  { %3468 = vmatmul.mubr.msk.bf16.vlgmr.msra.gmra.mrb[76].mxu1 %vm64_vm0, %v2858_v11 }
0x1736   :  { %v2912_v38 = vpop.f32.mrb[76].mxu1 }
0x1737   :  { %2919 = vst [vmem:[#allocation2] sm:$0xff] %v2912_v38  ;;  %v3469_v53 = vpop.f32.mrb[77].mxu1 }
0x1738   :  { %v2915_v56 = vpop.f32.mrb[78].mxu1 }
0x1739   :  { %2920 = vst [vmem:[#allocation2 + $0x8] sm:$0xff] %v2915_v56  ;;  %v3470_v12 = vpop.f32.mrb[79].mxu1 }
0x173a   :  { %3648 = shalt.err (!%p3645_p4)
}
0x173b   :  { %s3649_s9 = scalar_lea.hbm %s4480_s17, 256 }
0x173c   :  { %p3650_p5 = scmp.ne.s32.totalorder %s4480_s17, %s3649_s9  ;;  %p3653_p6 = scmp.lt.u32.totalorder %s3649_s9, %s4480_s17 }
0x173e   :  { %p3655_p7 = pnand %p3653_p6, %p3650_p5 }
0x1740   :  { %3658 = shalt.err (!%p3655_p7)
}
0x1741   :  { %s3672_s26 = smov 128  }
0x1742   :  { %2932 = dma.vmem_to_hbm [thread:$0]  %s2927_s8, 256, %s4480_s17, [#allocation3], %s3672_s26, %s3672_s26, %s3668_s1  }
0x1743   :  { %3659 = dma.done.wait [#allocation3], 256  }
0x1744   :  { %3660 = vsyncadd [#allocation3], 4294967040 }
0x1745   :  { %2936 = vsyncpa [#allocation3], 1 }

</bundles_post_ra>
